<compile_context>
chip_gen: v7x
topology: tpu7x:2x2x1
jax: 0.10.0
libtpu: 0.0.40
codegen_flags: <defaults>
</compile_context>

<pallas_src>
import functools

import jax
import jax.numpy as jnp
from jax.experimental import pallas as pl
from jax.experimental.pallas import tpu as pltpu

EPS = 1e-5
LANE = 128          # channel axis padded to a multiple of this -> lane-dense vectors
SUBLANE = 8
MAX_ROW_TILE = 512  # rows per grid step (multiple of 8)


def _round_up(x, m):
    return (x + m - 1) // m * m


def _row_tile(m):
    return MAX_ROW_TILE if m >= MAX_ROW_TILE else _round_up(m, SUBLANE)


def _pad2(a, rows, cols):
    return jnp.pad(a, ((0, rows - a.shape[0]), (0, cols - a.shape[1])))


def _cparams():
    # "parallel" grid axis: shards work across both TensorCores on v7x, harmless on
    # v5e/v6e.  Explicit VMEM limit keeps headroom on v7x (64 MiB physical).
    return pltpu.CompilerParams(dimension_semantics=("parallel",),
                                vmem_limit_bytes=32 * 1024 * 1024)


# ---------------------------------------------------------------------------
# Kernel 1: (optional fused BN-apply+ReLU on the input) -> bf16 matmul -> raw y
#           + per-tile BatchNorm partial statistics
# ---------------------------------------------------------------------------
def _matmul_stats_kernel(x_ref, w_ref, sc_ref, sh_ref, y_ref, stat_ref, *,
                         in_act, m_true, tm):
    x = x_ref[...]
    if in_act:
        # previous layer's BatchNorm "apply" + ReLU, folded into this load
        x = jnp.maximum(x * sc_ref[...] + sh_ref[...], 0.0)
    y = jnp.dot(x.astype(jnp.bfloat16), w_ref[...],
                preferred_element_type=jnp.float32)
    y_ref[...] = y
    # Per-tile partial BN statistics; rows beyond the true row count are masked so
    # row padding never corrupts the global batch statistics.
    row = jax.lax.broadcasted_iota(jnp.int32, (tm, 1), 0) + pl.program_id(0) * tm
    ym = jnp.where(row < m_true, y, 0.0)
    c = y.shape[1]
    stat_ref[0] = jnp.concatenate(
        [jnp.sum(ym, axis=0, keepdims=True),
         jnp.sum(ym * ym, axis=0, keepdims=True),
         jnp.zeros((SUBLANE - 2, c), jnp.float32)], axis=0)


def matmul_stats(x, w, scale, shift, *, in_act):
    """Row-tiled x @ w with fused input-affine and BN-stat accumulation."""
    m_true, k = x.shape
    c = w.shape[1]
    tm = _row_tile(_round_up(m_true, SUBLANE))
    m_pad = _round_up(m_true, tm)
    if m_pad != m_true:
        x = jnp.pad(x, ((0, m_pad - m_true), (0, 0)))
    grid = (m_pad // tm,)
    kernel = functools.partial(_matmul_stats_kernel, in_act=in_act,
                               m_true=m_true, tm=tm)
    y, stats = pl.pallas_call(
        kernel,
        out_shape=(jax.ShapeDtypeStruct((m_pad, c), jnp.float32),
                   jax.ShapeDtypeStruct((grid[0], SUBLANE, c), jnp.float32)),
        grid=grid,
        in_specs=[pl.BlockSpec((tm, k), lambda i: (i, 0)),
                  pl.BlockSpec((k, c), lambda i: (0, 0)),   # weights resident in VMEM
                  pl.BlockSpec((1, k), lambda i: (0, 0)),
                  pl.BlockSpec((1, k), lambda i: (0, 0))],
        out_specs=(pl.BlockSpec((tm, c), lambda i: (i, 0)),
                   pl.BlockSpec((1, SUBLANE, c), lambda i: (i, 0, 0))),
        compiler_params=_cparams(),
    )(x, w, scale, shift)
    return y, jnp.sum(stats[:, 0, :], axis=0), jnp.sum(stats[:, 1, :], axis=0)


# ---------------------------------------------------------------------------
# Kernel 2: 3x3 conv (stride s) as 9 accumulating MXU dots over a resident block,
#           fused with BN partial statistics (no im2col HBM tensor).
# ---------------------------------------------------------------------------
def _conv3x3_stats_kernel(ph_ref, w_ref, y_ref, stat_ref, *, stride, hh, ho, wo):
    cin = ph_ref.shape[-1]
    cout = w_ref.shape[-1]
    acc = jnp.zeros((ho * wo, cout), jnp.float32)
    # The input was pre-split into stride*stride spatial phases (stacked along the
    # row axis), so every stride-s tap reduces to a unit-stride static slice.
    for dy in range(3):
        for dx in range(3):
            p = (dy % stride) * stride + (dx % stride)
            oy, ox = dy // stride, dx // stride
            tap = ph_ref[0, p * hh + oy:p * hh + oy + ho, ox:ox + wo, :]
            acc = acc + jnp.dot(tap.reshape(ho * wo, cin), w_ref[dy, dx],
                                preferred_element_type=jnp.float32)
    y_ref[0] = acc
    stat_ref[0] = jnp.concatenate(
        [jnp.sum(acc, axis=0, keepdims=True),
         jnp.sum(acc * acc, axis=0, keepdims=True),
         jnp.zeros((SUBLANE - 2, cout), jnp.float32)], axis=0)


def conv3x3_stats(phases, w2, *, stride, hh, ww, ho, wo):
    n, rows = phases.shape[0], phases.shape[1]
    cin, cout = phases.shape[-1], w2.shape[-1]
    kernel = functools.partial(_conv3x3_stats_kernel, stride=stride, hh=hh,
                               ho=ho, wo=wo)
    y, stats = pl.pallas_call(
        kernel,
        out_shape=(jax.ShapeDtypeStruct((n, ho * wo, cout), jnp.float32),
                   jax.ShapeDtypeStruct((n, SUBLANE, cout), jnp.float32)),
        grid=(n,),
        in_specs=[pl.BlockSpec((1, rows, ww, cin), lambda i: (i, 0, 0, 0)),
                  pl.BlockSpec((3, 3, cin, cout), lambda i: (0, 0, 0, 0))],
        out_specs=(pl.BlockSpec((1, ho * wo, cout), lambda i: (i, 0, 0)),
                   pl.BlockSpec((1, SUBLANE, cout), lambda i: (i, 0, 0))),
        compiler_params=_cparams(),
    )(phases, w2)
    return (y.reshape(n * ho * wo, cout),
            jnp.sum(stats[:, 0, :], axis=0), jnp.sum(stats[:, 1, :], axis=0))


# ---------------------------------------------------------------------------
# Kernel 3: BN3-apply + (optionally BN-applied) residual add + ReLU, row-tiled.
# ---------------------------------------------------------------------------
def _bn_add_relu_kernel(y_ref, id_ref, sc_ref, sh_ref, si_ref, bi_ref, o_ref, *,
                        id_affine):
    main = y_ref[...] * sc_ref[...] + sh_ref[...]
    ident = id_ref[...]
    if id_affine:   # downsample branch: its BatchNorm "apply" is fused here too
        ident = ident * si_ref[...] + bi_ref[...]
    o_ref[...] = jnp.maximum(main + ident, 0.0)


def bn_add_relu(y, ident, scale, shift, id_scale, id_shift, *, id_affine):
    m_pad, c = y.shape
    tm = _row_tile(m_pad)
    assert m_pad % tm == 0
    kernel = functools.partial(_bn_add_relu_kernel, id_affine=id_affine)
    return pl.pallas_call(
        kernel,
        out_shape=jax.ShapeDtypeStruct((m_pad, c), jnp.float32),
        grid=(m_pad // tm,),
        in_specs=[pl.BlockSpec((tm, c), lambda i: (i, 0)),
                  pl.BlockSpec((tm, c), lambda i: (i, 0)),
                  pl.BlockSpec((1, c), lambda i: (0, 0)),
                  pl.BlockSpec((1, c), lambda i: (0, 0)),
                  pl.BlockSpec((1, c), lambda i: (0, 0)),
                  pl.BlockSpec((1, c), lambda i: (0, 0))],
        out_specs=pl.BlockSpec((tm, c), lambda i: (i, 0)),
        compiler_params=_cparams(),
    )(y, ident, scale, shift, id_scale, id_shift)


# ---------------------------------------------------------------------------
# JAX-side glue (tiny (1,C) ops and layout plumbing only)
# ---------------------------------------------------------------------------
def _bn_scale_shift(s, sq, m, gamma, beta):
    """Fold batch stats + affine into per-channel (scale, shift) so the BN 'apply'
    can be fused into the next kernel's input load."""
    mean = (s / m)[None, :]
    var = jnp.maximum((sq / m)[None, :] - mean * mean, 0.0)   # biased variance
    inv = jax.lax.rsqrt(var + EPS)
    return gamma * inv, beta - mean * gamma * inv


def _phase_split(h, stride):
    """Zero-pad (pad=1) and split into stride*stride spatial phases, stacked along H,
    so the 3x3 conv kernel only needs unit-stride static slices."""
    n, hgt, wid, c = h.shape
    hp2 = _round_up(hgt + 2, stride)
    wp2 = _round_up(wid + 2, stride)
    hp = jnp.pad(h, ((0, 0), (1, hp2 - hgt - 1), (1, wp2 - wid - 1), (0, 0)))
    hh, ww = hp2 // stride, wp2 // stride
    phases = [hp[:, py::stride, px::stride, :]
              for py in range(stride) for px in range(stride)]
    return jnp.concatenate(phases, axis=1), hh, ww


# ---------------------------------------------------------------------------
# BottleNeck module (parameters built deterministically in-script)
# ---------------------------------------------------------------------------
class BottleNeckPallas:
    expansion = 4

    def __init__(self, key, in_channels, out_channels, stride=1, is_first_block=False):
        self.in_channels = in_channels
        self.out_channels = out_channels
        self.stride = stride
        self.is_first_block = is_first_block
        if not is_first_block:
            assert stride == 1 and in_channels == out_channels * self.expansion, (
                "identity path requires stride=1 and in_channels == expansion*out_channels")
        Cin, C = in_channels, out_channels
        Ce = C * self.expansion
        ks = jax.random.split(key, 4)

        # f32 master weights (conv biases omitted: a per-channel conv bias immediately
        # followed by BatchNorm is exactly cancelled by the mean subtraction).
        self.w1 = 0.1 * jax.random.normal(ks[0], (Cin, C), jnp.float32)
        self.w2 = 0.1 * jax.random.normal(ks[1], (3, 3, C, C), jnp.float32)  # HWIO
        self.w3 = 0.1 * jax.random.normal(ks[2], (C, Ce), jnp.float32)
        if is_first_block:
            self.wd = 0.1 * jax.random.normal(ks[3], (Cin, Ce), jnp.float32)

        # Lane-dense (multiple-of-128) channel padding + ahead-of-time bf16 weights.
        self.cin_p = _round_up(Cin, LANE)
        self.c_p = _round_up(C, LANE)
        self.ce_p = _round_up(Ce, LANE)
        self.w1_k = _pad2(self.w1, self.cin_p, self.c_p).astype(jnp.bfloat16)
        self.w2_k = jnp.pad(self.w2, ((0, 0), (0, 0), (0, self.c_p - C),
                                      (0, self.c_p - C))).astype(jnp.bfloat16)
        self.w3_k = _pad2(self.w3, self.c_p, self.ce_p).astype(jnp.bfloat16)
        if is_first_block:
            self.wd_k = _pad2(self.wd, self.cin_p, self.ce_p).astype(jnp.bfloat16)

        # BatchNorm affine parameters (PyTorch init: gamma=1, beta=0), padded widths.
        self.g1 = jnp.ones((1, self.c_p), jnp.float32)
        self.b1 = jnp.zeros((1, self.c_p), jnp.float32)
        self.g2 = jnp.ones((1, self.c_p), jnp.float32)
        self.b2 = jnp.zeros((1, self.c_p), jnp.float32)
        self.g3 = jnp.ones((1, self.ce_p), jnp.float32)
        self.b3 = jnp.zeros((1, self.ce_p), jnp.float32)
        self.gd = jnp.ones((1, self.ce_p), jnp.float32)
        self.bd = jnp.zeros((1, self.ce_p), jnp.float32)

    def __call__(self, x_nchw):
        N, Cin, H, W = x_nchw.shape
        C, Ce = self.out_channels, self.out_channels * self.expansion
        s = self.stride
        Ho = (H - 1) // s + 1
        Wo = (W - 1) // s + 1
        M1, M2 = N * H * W, N * Ho * Wo

        # NCHW -> NHWC once for the whole block; channels padded to lane width.
        x = jnp.transpose(x_nchw, (0, 2, 3, 1))
        x_p = jnp.pad(x, ((0, 0), (0, 0), (0, 0), (0, self.cin_p - Cin)))
        x_rows = x_p.reshape(M1, self.cin_p)
        one_in = jnp.ones((1, self.cin_p), jnp.float32)
        zero_in = jnp.zeros((1, self.cin_p), jnp.float32)

        # conv1 (1x1) + BN1 batch statistics (fused, row-tiled, bf16 MXU).
        y1, s1, q1 = matmul_stats(x_rows.astype(jnp.bfloat16), self.w1_k,
                                  one_in, zero_in, in_act=False)
        sc1, sh1 = _bn_scale_shift(s1, q1, M1, self.g1, self.b1)

        # BN1-apply + ReLU folded into the (unavoidable, XLA-fused) spatial pad /
        # phase-split pass that conv2 needs; stored bf16 to halve conv2 input DMA.
        h1 = jnp.maximum(y1[:M1] * sc1 + sh1, 0.0).astype(jnp.bfloat16)
        phases, hh, ww = _phase_split(h1.reshape(N, H, W, self.c_p), s)

        # conv2 (3x3, stride s): 9 accumulating in-kernel dots + BN2 statistics.
        y2, s2, q2 = conv3x3_stats(phases, self.w2_k, stride=s, hh=hh, ww=ww,
                                   ho=Ho, wo=Wo)
        sc2, sh2 = _bn_scale_shift(s2, q2, M2, self.g2, self.b2)

        # conv3 (1x1): BN2-apply + ReLU folded into the input load, + BN3 statistics.
        y3, s3, q3 = matmul_stats(y2, self.w3_k, sc2, sh2, in_act=True)
        sc3, sh3 = _bn_scale_shift(s3, q3, M2, self.g3, self.b3)

        # Identity path.
        if self.is_first_block:
            xs = x_p[:, ::s, ::s, :].reshape(M2, self.cin_p).astype(jnp.bfloat16)
            yd, sd, qd = matmul_stats(xs, self.wd_k, one_in, zero_in, in_act=False)
            scd, shd = _bn_scale_shift(sd, qd, M2, self.gd, self.bd)
            ident, id_affine = yd, True
        else:
            ident = jnp.pad(x_p.reshape(M1, self.cin_p),
                            ((0, y3.shape[0] - M1), (0, 0)))
            scd = jnp.ones((1, self.ce_p), jnp.float32)
            shd = jnp.zeros((1, self.ce_p), jnp.float32)
            id_affine = False

        # BN3-apply + residual add + ReLU (row-tiled, lane-dense output).
        out = bn_add_relu(y3, ident, sc3, sh3, scd, shd, id_affine=id_affine)
        out = out[:M2, :Ce].reshape(N, Ho, Wo, Ce)
        return jnp.transpose(out, (0, 3, 1, 2))  # NHWC -> NCHW


# ---------------------------------------------------------------------------
# Pure-JAX reference (same math: bf16 conv operands, f32 accumulation, batch-stat
# BatchNorm with gamma=1/beta=0, no conv bias) for a correctness check.
# ---------------------------------------------------------------------------
def reference(x_nchw, m):
    x = jnp.transpose(x_nchw, (0, 2, 3, 1))
    dn = ("NHWC", "HWIO", "NHWC")

    def conv(inp, w, stride, pad):
        return jax.lax.conv_general_dilated(
            inp.astype(jnp.bfloat16), w.astype(jnp.bfloat16), (stride, stride), pad,
            dimension_numbers=dn, preferred_element_type=jnp.float32)

    def bn(y):
        mean = jnp.mean(y, axis=(0, 1, 2), keepdims=True)
        var = jnp.mean((y - mean) ** 2, axis=(0, 1, 2), keepdims=True)
        return (y - mean) * jax.lax.rsqrt(var + EPS)

    relu = lambda z: jnp.maximum(z, 0.0)
    Cin, C = m.in_channels, m.out_channels
    Ce = C * m.expansion
    h = relu(bn(conv(x, m.w1.reshape(1, 1, Cin, C), 1, "VALID")))
    h = relu(bn(conv(h, m.w2, m.stride, [(1, 1), (1, 1)])))
    h = bn(conv(h, m.w3.reshape(1, 1, C, Ce), 1, "VALID"))
    if m.is_first_block:
        ident = bn(conv(x, m.wd.reshape(1, 1, Cin, Ce), m.stride, "VALID"))
    else:
        ident = x
    return jnp.transpose(relu(h + ident), (0, 3, 1, 2))


if __name__ == "__main__":
    N, H, W = 2, 16, 16
    configs = [
        dict(in_channels=8, out_channels=4, stride=2, is_first_block=True),
        dict(in_channels=16, out_channels=4, stride=1, is_first_block=False),
    ]
    for i, cfg in enumerate(configs):
        block = BottleNeckPallas(jax.random.PRNGKey(42 + i), **cfg)
        x = jax.random.normal(jax.random.PRNGKey(i),
                              (N, cfg["in_channels"], H, W), jnp.float32)
        out = jax.block_until_ready(jax.jit(block.__call__)(x))
        ref = reference(x, block)
        s = cfg["stride"]
        expect = (N, cfg["out_channels"] * BottleNeckPallas.expansion,
                  (H - 1) // s + 1, (W - 1) // s + 1)
        assert out.shape == expect, (out.shape, expect)
        assert bool(jnp.all(jnp.isfinite(out)))
        err = float(jnp.max(jnp.abs(out - ref)))
        assert bool(jnp.allclose(out, ref, rtol=5e-3, atol=5e-3)), err
    print("KERNEL_OK")
</pallas_src>

<mosaic_0001>
module attributes {stable_mosaic.version = 11 : i64} {
  func.func @_matmul_stats_kernel(%arg0: i32, %arg1: memref<512x128xbf16, #tpu.memory_space<vmem>>, %arg2: memref<128x128xbf16, #tpu.memory_space<vmem>>, %arg3: memref<1x128xf32, #tpu.memory_space<vmem>>, %arg4: memref<1x128xf32, #tpu.memory_space<vmem>>, %arg5: memref<512x128xf32, #tpu.memory_space<vmem>>, %arg6: memref<1x8x128xf32, #tpu.memory_space<vmem>>) attributes {dimension_semantics = [#tpu.dimension_semantics<parallel>], iteration_bounds = array<i64: 1>, scalar_prefetch = 0 : i64, scratch_operands = 0 : i64, tpu.core_type = #tpu.core_type<tc>, window_params = [{transform_indices = @transform_0, window_bounds = array<i64: 512, 128>}, {pipeline_mode = #tpu.pipeline_mode<synchronous>, transform_indices = @transform_1, window_bounds = array<i64: 128, 128>}, {pipeline_mode = #tpu.pipeline_mode<synchronous>, transform_indices = @transform_2, window_bounds = array<i64: 1, 128>}, {pipeline_mode = #tpu.pipeline_mode<synchronous>, transform_indices = @transform_3, window_bounds = array<i64: 1, 128>}, {transform_indices = @transform_4, window_bounds = array<i64: 512, 128>}, {transform_indices = @transform_5, window_bounds = array<i64: 1, 8, 128>}]} {
    %c0 = arith.constant 0 : index
    %c0_0 = arith.constant 0 : index
    %0 = vector.load %arg1[%c0, %c0_0] : memref<512x128xbf16, #tpu.memory_space<vmem>>, vector<512x128xbf16>
    %c0_1 = arith.constant 0 : index
    %c0_2 = arith.constant 0 : index
    %1 = vector.load %arg2[%c0_1, %c0_2] : memref<128x128xbf16, #tpu.memory_space<vmem>>, vector<128x128xbf16>
    %cst = arith.constant dense<0.000000e+00> : vector<512x128xf32>
    %2 = tpu.matmul %0, %1, %cst {dimension_numbers = #tpu.dot_dimension_numbers<[1], [0], [0], [1], [0, 0, 1, 1], [], []>} : vector<512x128xbf16>, vector<128x128xbf16>, vector<512x128xf32> -> vector<512x128xf32>
    %c0_3 = arith.constant 0 : index
    %c0_4 = arith.constant 0 : index
    %3 = vector.load %arg5[%c0_3, %c0_4] : memref<512x128xf32, #tpu.memory_space<vmem>>, vector<512x128xf32>
    tpu.vector_store %arg5[%c0_3, %c0_4], %2 {strides = array<i32>} : memref<512x128xf32, #tpu.memory_space<vmem>>, vector<512x128xf32>,
    %4 = tpu.iota {dimensions = array<i32: 0>} : vector<512x1xi32>
    %c512_i32 = arith.constant 512 : i32
    %5 = arith.muli %arg0, %c512_i32 : i32
    %6 = vector.broadcast %5 : i32 to vector<512x1xi32>
    %7 = arith.addi %4, %6 : vector<512x1xi32>
    %c512_i32_5 = arith.constant 512 : i32
    %8 = vector.broadcast %c512_i32_5 : i32 to vector<512x1xi32>
    %9 = arith.cmpi slt, %7, %8 : vector<512x1xi32>
    %cst_6 = arith.constant 0.000000e+00 : f32
    %10 = vector.shape_cast %9 : vector<512x1xi1> to vector<512x1xi1>
    %11 = vector.broadcast %10 : vector<512x1xi1> to vector<512x128xi1>
    %12 = vector.broadcast %cst_6 : f32 to vector<512x128xf32>
    %13 = arith.select %11, %2, %12 : vector<512x128xi1>, vector<512x128xf32>
    %cst_7 = arith.constant dense<0.000000e+00> : vector<128xf32>
    %14 = vector.multi_reduction <add>, %13, %cst_7 [0] : vector<512x128xf32> to vector<128xf32>
    %15 = vector.shape_cast %14 : vector<128xf32> to vector<1x128xf32>
    %16 = arith.mulf %13, %13 : vector<512x128xf32>
    %cst_8 = arith.constant dense<0.000000e+00> : vector<128xf32>
    %17 = vector.multi_reduction <add>, %16, %cst_8 [0] : vector<512x128xf32> to vector<128xf32>
    %18 = vector.shape_cast %17 : vector<128xf32> to vector<1x128xf32>
    %cst_9 = arith.constant 0.000000e+00 : f32
    %19 = vector.broadcast %cst_9 : f32 to vector<6x128xf32>
    %20 = tpu.concatenate %15, %18, %19 in 0 : vector<1x128xf32>, vector<1x128xf32>, vector<6x128xf32> -> vector<8x128xf32>
    %c0_10 = arith.constant 0 : index
    %c0_11 = arith.constant 0 : index
    %c0_12 = arith.constant 0 : index
    %21 = vector.load %arg6[%c0_10, %c0_11, %c0_12] : memref<1x8x128xf32, #tpu.memory_space<vmem>>, vector<1x8x128xf32>
    %22 = vector.shape_cast %21 : vector<1x8x128xf32> to vector<8x128xf32>
    %23 = vector.shape_cast %20 : vector<8x128xf32> to vector<1x8x128xf32>
    tpu.vector_store %arg6[%c0_10, %c0_11, %c0_12], %23 {strides = array<i32>} : memref<1x8x128xf32, #tpu.memory_space<vmem>>, vector<1x8x128xf32>,
    return
  }
  func.func @transform_0(%arg0: i32) -> (i32, i32) {
    %c0_i32 = arith.constant 0 : i32
    %c0_i32_0 = arith.constant 0 : i32
    return %arg0, %c0_i32 : i32, i32
  }
  func.func @transform_1(%arg0: i32) -> (i32, i32) {
    %c0_i32 = arith.constant 0 : i32
    %c0_i32_0 = arith.constant 0 : i32
    %c0_i32_1 = arith.constant 0 : i32
    return %c0_i32, %c0_i32_0 : i32, i32
  }
  func.func @transform_2(%arg0: i32) -> (i32, i32) {
    %c0_i32 = arith.constant 0 : i32
    %c0_i32_0 = arith.constant 0 : i32
    %c0_i32_1 = arith.constant 0 : i32
    return %c0_i32, %c0_i32_0 : i32, i32
  }
  func.func @transform_3(%arg0: i32) -> (i32, i32) {
    %c0_i32 = arith.constant 0 : i32
    %c0_i32_0 = arith.constant 0 : i32
    %c0_i32_1 = arith.constant 0 : i32
    return %c0_i32, %c0_i32_0 : i32, i32
  }
  func.func @transform_4(%arg0: i32) -> (i32, i32) {
    %c0_i32 = arith.constant 0 : i32
    %c0_i32_0 = arith.constant 0 : i32
    return %arg0, %c0_i32 : i32, i32
  }
  func.func @transform_5(%arg0: i32) -> (i32, i32, i32) {
    %c0_i32 = arith.constant 0 : i32
    %c0_i32_0 = arith.constant 0 : i32
    %c0_i32_1 = arith.constant 0 : i32
    return %arg0, %c0_i32, %c0_i32_0 : i32, i32, i32
  }
}

module attributes {stable_mosaic.version = 11 : i64} {
  func.func @_conv3x3_stats_kernel(%arg0: i32, %arg1: memref<1x36x9x128xbf16, #tpu.memory_space<vmem>>, %arg2: memref<3x3x128x128xbf16, #tpu.memory_space<vmem>>, %arg3: memref<1x64x128xf32, #tpu.memory_space<vmem>>, %arg4: memref<1x8x128xf32, #tpu.memory_space<vmem>>) attributes {dimension_semantics = [#tpu.dimension_semantics<parallel>], iteration_bounds = array<i64: 2>, scalar_prefetch = 0 : i64, scratch_operands = 0 : i64, tpu.core_type = #tpu.core_type<tc>, window_params = [{transform_indices = @transform_0, window_bounds = array<i64: 1, 36, 9, 128>}, {pipeline_mode = #tpu.pipeline_mode<synchronous>, transform_indices = @transform_1, window_bounds = array<i64: 3, 3, 128, 128>}, {transform_indices = @transform_2, window_bounds = array<i64: 1, 64, 128>}, {transform_indices = @transform_3, window_bounds = array<i64: 1, 8, 128>}]} {
    %cst = arith.constant 0.000000e+00 : f32
    %0 = vector.broadcast %cst : f32 to vector<64x128xf32>
    %c0 = arith.constant 0 : index
    %c0_0 = arith.constant 0 : index
    %c0_1 = arith.constant 0 : index
    %c0_2 = arith.constant 0 : index
    %1 = vector.load %arg1[%c0, %c0_0, %c0_1, %c0_2] : memref<1x36x9x128xbf16, #tpu.memory_space<vmem>>, vector<1x8x8x128xbf16>
    %2 = vector.shape_cast %1 : vector<1x8x8x128xbf16> to vector<8x8x128xbf16>
    %3 = vector.shape_cast %2 : vector<8x8x128xbf16> to vector<64x128xbf16>
    %c0_3 = arith.constant 0 : index
    %c0_4 = arith.constant 0 : index
    %c0_5 = arith.constant 0 : index
    %c0_6 = arith.constant 0 : index
    %4 = vector.load %arg2[%c0_3, %c0_4, %c0_5, %c0_6] : memref<3x3x128x128xbf16, #tpu.memory_space<vmem>>, vector<1x1x128x128xbf16>
    %5 = vector.shape_cast %4 : vector<1x1x128x128xbf16> to vector<128x128xbf16>
    %cst_7 = arith.constant dense<0.000000e+00> : vector<64x128xf32>
    %6 = tpu.matmul %3, %5, %cst_7 {dimension_numbers = #tpu.dot_dimension_numbers<[1], [0], [0], [1], [0, 0, 1, 1], [], []>} : vector<64x128xbf16>, vector<128x128xbf16>, vector<64x128xf32> -> vector<64x128xf32>
    %7 = arith.addf %0, %6 : vector<64x128xf32>
    %c0_8 = arith.constant 0 : index
    %c9 = arith.constant 9 : index
    %c0_9 = arith.constant 0 : index
    %c0_10 = arith.constant 0 : index
    %8 = vector.load %arg1[%c0_8, %c9, %c0_9, %c0_10] : memref<1x36x9x128xbf16, #tpu.memory_space<vmem>>, vector<1x8x8x128xbf16>
    %9 = vector.shape_cast %8 : vector<1x8x8x128xbf16> to vector<8x8x128xbf16>
    %10 = vector.shape_cast %9 : vector<8x8x128xbf16> to vector<64x128xbf16>
    %c0_11 = arith.constant 0 : index
    %c1 = arith.constant 1 : index
    %c0_12 = arith.constant 0 : index
    %c0_13 = arith.constant 0 : index
    %11 = vector.load %arg2[%c0_11, %c1, %c0_12, %c0_13] : memref<3x3x128x128xbf16, #tpu.memory_space<vmem>>, vector<1x1x128x128xbf16>
    %12 = vector.shape_cast %11 : vector<1x1x128x128xbf16> to vector<128x128xbf16>
    %cst_14 = arith.constant dense<0.000000e+00> : vector<64x128xf32>
    %13 = tpu.matmul %10, %12, %cst_14 {dimension_numbers = #tpu.dot_dimension_numbers<[1], [0], [0], [1], [0, 0, 1, 1], [], []>} : vector<64x128xbf16>, vector<128x128xbf16>, vector<64x128xf32> -> vector<64x128xf32>
    %14 = arith.addf %7, %13 : vector<64x128xf32>
    %c0_15 = arith.constant 0 : index
    %c0_16 = arith.constant 0 : index
    %c1_17 = arith.constant 1 : index
    %c0_18 = arith.constant 0 : index
    %15 = vector.load %arg1[%c0_15, %c0_16, %c1_17, %c0_18] : memref<1x36x9x128xbf16, #tpu.memory_space<vmem>>, vector<1x8x8x128xbf16>
    %16 = vector.shape_cast %15 : vector<1x8x8x128xbf16> to vector<8x8x128xbf16>
    %17 = vector.shape_cast %16 : vector<8x8x128xbf16> to vector<64x128xbf16>
    %c0_19 = arith.constant 0 : index
    %c2 = arith.constant 2 : index
    %c0_20 = arith.constant 0 : index
    %c0_21 = arith.constant 0 : index
    %18 = vector.load %arg2[%c0_19, %c2, %c0_20, %c0_21] : memref<3x3x128x128xbf16, #tpu.memory_space<vmem>>, vector<1x1x128x128xbf16>
    %19 = vector.shape_cast %18 : vector<1x1x128x128xbf16> to vector<128x128xbf16>
    %cst_22 = arith.constant dense<0.000000e+00> : vector<64x128xf32>
    %20 = tpu.matmul %17, %19, %cst_22 {dimension_numbers = #tpu.dot_dimension_numbers<[1], [0], [0], [1], [0, 0, 1, 1], [], []>} : vector<64x128xbf16>, vector<128x128xbf16>, vector<64x128xf32> -> vector<64x128xf32>
    %21 = arith.addf %14, %20 : vector<64x128xf32>
    %c0_23 = arith.constant 0 : index
    %c18 = arith.constant 18 : index
    %c0_24 = arith.constant 0 : index
    %c0_25 = arith.constant 0 : index
    %22 = vector.load %arg1[%c0_23, %c18, %c0_24, %c0_25] : memref<1x36x9x128xbf16, #tpu.memory_space<vmem>>, vector<1x8x8x128xbf16>
    %23 = vector.shape_cast %22 : vector<1x8x8x128xbf16> to vector<8x8x128xbf16>
    %24 = vector.shape_cast %23 : vector<8x8x128xbf16> to vector<64x128xbf16>
    %c1_26 = arith.constant 1 : index
    %c0_27 = arith.constant 0 : index
    %c0_28 = arith.constant 0 : index
    %c0_29 = arith.constant 0 : index
    %25 = vector.load %arg2[%c1_26, %c0_27, %c0_28, %c0_29] : memref<3x3x128x128xbf16, #tpu.memory_space<vmem>>, vector<1x1x128x128xbf16>
    %26 = vector.shape_cast %25 : vector<1x1x128x128xbf16> to vector<128x128xbf16>
    %cst_30 = arith.constant dense<0.000000e+00> : vector<64x128xf32>
    %27 = tpu.matmul %24, %26, %cst_30 {dimension_numbers = #tpu.dot_dimension_numbers<[1], [0], [0], [1], [0, 0, 1, 1], [], []>} : vector<64x128xbf16>, vector<128x128xbf16>, vector<64x128xf32> -> vector<64x128xf32>
    %28 = arith.addf %21, %27 : vector<64x128xf32>
    %c0_31 = arith.constant 0 : index
    %c27 = arith.constant 27 : index
    %c0_32 = arith.constant 0 : index
    %c0_33 = arith.constant 0 : index
    %29 = vector.load %arg1[%c0_31, %c27, %c0_32, %c0_33] : memref<1x36x9x128xbf16, #tpu.memory_space<vmem>>, vector<1x8x8x128xbf16>
    %30 = vector.shape_cast %29 : vector<1x8x8x128xbf16> to vector<8x8x128xbf16>
    %31 = vector.shape_cast %30 : vector<8x8x128xbf16> to vector<64x128xbf16>
    %c1_34 = arith.constant 1 : index
    %c1_35 = arith.constant 1 : index
    %c0_36 = arith.constant 0 : index
    %c0_37 = arith.constant 0 : index
    %32 = vector.load %arg2[%c1_34, %c1_35, %c0_36, %c0_37] : memref<3x3x128x128xbf16, #tpu.memory_space<vmem>>, vector<1x1x128x128xbf16>
    %33 = vector.shape_cast %32 : vector<1x1x128x128xbf16> to vector<128x128xbf16>
    %cst_38 = arith.constant dense<0.000000e+00> : vector<64x128xf32>
    %34 = tpu.matmul %31, %33, %cst_38 {dimension_numbers = #tpu.dot_dimension_numbers<[1], [0], [0], [1], [0, 0, 1, 1], [], []>} : vector<64x128xbf16>, vector<128x128xbf16>, vector<64x128xf32> -> vector<64x128xf32>
    %35 = arith.addf %28, %34 : vector<64x128xf32>
    %c0_39 = arith.constant 0 : index
    %c18_40 = arith.constant 18 : index
    %c1_41 = arith.constant 1 : index
    %c0_42 = arith.constant 0 : index
    %36 = vector.load %arg1[%c0_39, %c18_40, %c1_41, %c0_42] : memref<1x36x9x128xbf16, #tpu.memory_space<vmem>>, vector<1x8x8x128xbf16>
    %37 = vector.shape_cast %36 : vector<1x8x8x128xbf16> to vector<8x8x128xbf16>
    %38 = vector.shape_cast %37 : vector<8x8x128xbf16> to vector<64x128xbf16>
    %c1_43 = arith.constant 1 : index
    %c2_44 = arith.constant 2 : index
    %c0_45 = arith.constant 0 : index
    %c0_46 = arith.constant 0 : index
    %39 = vector.load %arg2[%c1_43, %c2_44, %c0_45, %c0_46] : memref<3x3x128x128xbf16, #tpu.memory_space<vmem>>, vector<1x1x128x128xbf16>
    %40 = vector.shape_cast %39 : vector<1x1x128x128xbf16> to vector<128x128xbf16>
    %cst_47 = arith.constant dense<0.000000e+00> : vector<64x128xf32>
    %41 = tpu.matmul %38, %40, %cst_47 {dimension_numbers = #tpu.dot_dimension_numbers<[1], [0], [0], [1], [0, 0, 1, 1], [], []>} : vector<64x128xbf16>, vector<128x128xbf16>, vector<64x128xf32> -> vector<64x128xf32>
    %42 = arith.addf %35, %41 : vector<64x128xf32>
    %c0_48 = arith.constant 0 : index
    %c1_49 = arith.constant 1 : index
    %c0_50 = arith.constant 0 : index
    %c0_51 = arith.constant 0 : index
    %43 = vector.load %arg1[%c0_48, %c1_49, %c0_50, %c0_51] : memref<1x36x9x128xbf16, #tpu.memory_space<vmem>>, vector<1x8x8x128xbf16>
    %44 = vector.shape_cast %43 : vector<1x8x8x128xbf16> to vector<8x8x128xbf16>
    %45 = vector.shape_cast %44 : vector<8x8x128xbf16> to vector<64x128xbf16>
    %c2_52 = arith.constant 2 : index
    %c0_53 = arith.constant 0 : index
    %c0_54 = arith.constant 0 : index
    %c0_55 = arith.constant 0 : index
    %46 = vector.load %arg2[%c2_52, %c0_53, %c0_54, %c0_55] : memref<3x3x128x128xbf16, #tpu.memory_space<vmem>>, vector<1x1x128x128xbf16>
    %47 = vector.shape_cast %46 : vector<1x1x128x128xbf16> to vector<128x128xbf16>
    %cst_56 = arith.constant dense<0.000000e+00> : vector<64x128xf32>
    %48 = tpu.matmul %45, %47, %cst_56 {dimension_numbers = #tpu.dot_dimension_numbers<[1], [0], [0], [1], [0, 0, 1, 1], [], []>} : vector<64x128xbf16>, vector<128x128xbf16>, vector<64x128xf32> -> vector<64x128xf32>
    %49 = arith.addf %42, %48 : vector<64x128xf32>
    %c0_57 = arith.constant 0 : index
    %c10 = arith.constant 10 : index
    %c0_58 = arith.constant 0 : index
    %c0_59 = arith.constant 0 : index
    %50 = vector.load %arg1[%c0_57, %c10, %c0_58, %c0_59] : memref<1x36x9x128xbf16, #tpu.memory_space<vmem>>, vector<1x8x8x128xbf16>
    %51 = vector.shape_cast %50 : vector<1x8x8x128xbf16> to vector<8x8x128xbf16>
    %52 = vector.shape_cast %51 : vector<8x8x128xbf16> to vector<64x128xbf16>
    %c2_60 = arith.constant 2 : index
    %c1_61 = arith.constant 1 : index
    %c0_62 = arith.constant 0 : index
    %c0_63 = arith.constant 0 : index
    %53 = vector.load %arg2[%c2_60, %c1_61, %c0_62, %c0_63] : memref<3x3x128x128xbf16, #tpu.memory_space<vmem>>, vector<1x1x128x128xbf16>
    %54 = vector.shape_cast %53 : vector<1x1x128x128xbf16> to vector<128x128xbf16>
    %cst_64 = arith.constant dense<0.000000e+00> : vector<64x128xf32>
    %55 = tpu.matmul %52, %54, %cst_64 {dimension_numbers = #tpu.dot_dimension_numbers<[1], [0], [0], [1], [0, 0, 1, 1], [], []>} : vector<64x128xbf16>, vector<128x128xbf16>, vector<64x128xf32> -> vector<64x128xf32>
    %56 = arith.addf %49, %55 : vector<64x128xf32>
    %c0_65 = arith.constant 0 : index
    %c1_66 = arith.constant 1 : index
    %c1_67 = arith.constant 1 : index
    %c0_68 = arith.constant 0 : index
    %57 = vector.load %arg1[%c0_65, %c1_66, %c1_67, %c0_68] : memref<1x36x9x128xbf16, #tpu.memory_space<vmem>>, vector<1x8x8x128xbf16>
    %58 = vector.shape_cast %57 : vector<1x8x8x128xbf16> to vector<8x8x128xbf16>
    %59 = vector.shape_cast %58 : vector<8x8x128xbf16> to vector<64x128xbf16>
    %c2_69 = arith.constant 2 : index
    %c2_70 = arith.constant 2 : index
    %c0_71 = arith.constant 0 : index
    %c0_72 = arith.constant 0 : index
    %60 = vector.load %arg2[%c2_69, %c2_70, %c0_71, %c0_72] : memref<3x3x128x128xbf16, #tpu.memory_space<vmem>>, vector<1x1x128x128xbf16>
    %61 = vector.shape_cast %60 : vector<1x1x128x128xbf16> to vector<128x128xbf16>
    %cst_73 = arith.constant dense<0.000000e+00> : vector<64x128xf32>
    %62 = tpu.matmul %59, %61, %cst_73 {dimension_numbers = #tpu.dot_dimension_numbers<[1], [0], [0], [1], [0, 0, 1, 1], [], []>} : vector<64x128xbf16>, vector<128x128xbf16>, vector<64x128xf32> -> vector<64x128xf32>
    %63 = arith.addf %56, %62 : vector<64x128xf32>
    %c0_74 = arith.constant 0 : index
    %c0_75 = arith.constant 0 : index
    %c0_76 = arith.constant 0 : index
    %64 = vector.load %arg3[%c0_74, %c0_75, %c0_76] : memref<1x64x128xf32, #tpu.memory_space<vmem>>, vector<1x64x128xf32>
    %65 = vector.shape_cast %64 : vector<1x64x128xf32> to vector<64x128xf32>
    %66 = vector.shape_cast %63 : vector<64x128xf32> to vector<1x64x128xf32>
    tpu.vector_store %arg3[%c0_74, %c0_75, %c0_76], %66 {strides = array<i32>} : memref<1x64x128xf32, #tpu.memory_space<vmem>>, vector<1x64x128xf32>,
    %cst_77 = arith.constant dense<0.000000e+00> : vector<128xf32>
    %67 = vector.multi_reduction <add>, %63, %cst_77 [0] : vector<64x128xf32> to vector<128xf32>
    %68 = vector.shape_cast %67 : vector<128xf32> to vector<1x128xf32>
    %69 = arith.mulf %63, %63 : vector<64x128xf32>
    %cst_78 = arith.constant dense<0.000000e+00> : vector<128xf32>
    %70 = vector.multi_reduction <add>, %69, %cst_78 [0] : vector<64x128xf32> to vector<128xf32>
    %71 = vector.shape_cast %70 : vector<128xf32> to vector<1x128xf32>
    %cst_79 = arith.constant 0.000000e+00 : f32
    %72 = vector.broadcast %cst_79 : f32 to vector<6x128xf32>
    %73 = tpu.concatenate %68, %71, %72 in 0 : vector<1x128xf32>, vector<1x128xf32>, vector<6x128xf32> -> vector<8x128xf32>
    %c0_80 = arith.constant 0 : index
    %c0_81 = arith.constant 0 : index
    %c0_82 = arith.constant 0 : index
    %74 = vector.load %arg4[%c0_80, %c0_81, %c0_82] : memref<1x8x128xf32, #tpu.memory_space<vmem>>, vector<1x8x128xf32>
    %75 = vector.shape_cast %74 : vector<1x8x128xf32> to vector<8x128xf32>
    %76 = vector.shape_cast %73 : vector<8x128xf32> to vector<1x8x128xf32>
    tpu.vector_store %arg4[%c0_80, %c0_81, %c0_82], %76 {strides = array<i32>} : memref<1x8x128xf32, #tpu.memory_space<vmem>>, vector<1x8x128xf32>,
    return
  }
  func.func @transform_0(%arg0: i32) -> (i32, i32, i32, i32) {
    %c0_i32 = arith.constant 0 : i32
    %c0_i32_0 = arith.constant 0 : i32
    %c0_i32_1 = arith.constant 0 : i32
    %c0_i32_2 = arith.constant 0 : i32
    return %arg0, %c0_i32, %c0_i32_0, %c0_i32_1 : i32, i32, i32, i32
  }
  func.func @transform_1(%arg0: i32) -> (i32, i32, i32, i32) {
    %c0_i32 = arith.constant 0 : i32
    %c0_i32_0 = arith.constant 0 : i32
    %c0_i32_1 = arith.constant 0 : i32
    %c0_i32_2 = arith.constant 0 : i32
    %c0_i32_3 = arith.constant 0 : i32
    return %c0_i32, %c0_i32_0, %c0_i32_1, %c0_i32_2 : i32, i32, i32, i32
  }
  func.func @transform_2(%arg0: i32) -> (i32, i32, i32) {
    %c0_i32 = arith.constant 0 : i32
    %c0_i32_0 = arith.constant 0 : i32
    %c0_i32_1 = arith.constant 0 : i32
    return %arg0, %c0_i32, %c0_i32_0 : i32, i32, i32
  }
  func.func @transform_3(%arg0: i32) -> (i32, i32, i32) {
    %c0_i32 = arith.constant 0 : i32
    %c0_i32_0 = arith.constant 0 : i32
    %c0_i32_1 = arith.constant 0 : i32
    return %arg0, %c0_i32, %c0_i32_0 : i32, i32, i32
  }
}

module attributes {stable_mosaic.version = 11 : i64} {
  func.func @_matmul_stats_kernel(%arg0: i32, %arg1: memref<128x128xf32, #tpu.memory_space<vmem>>, %arg2: memref<128x128xbf16, #tpu.memory_space<vmem>>, %arg3: memref<1x128xf32, #tpu.memory_space<vmem>>, %arg4: memref<1x128xf32, #tpu.memory_space<vmem>>, %arg5: memref<128x128xf32, #tpu.memory_space<vmem>>, %arg6: memref<1x8x128xf32, #tpu.memory_space<vmem>>) attributes {dimension_semantics = [#tpu.dimension_semantics<parallel>], iteration_bounds = array<i64: 1>, scalar_prefetch = 0 : i64, scratch_operands = 0 : i64, tpu.core_type = #tpu.core_type<tc>, window_params = [{transform_indices = @transform_0, window_bounds = array<i64: 128, 128>}, {pipeline_mode = #tpu.pipeline_mode<synchronous>, transform_indices = @transform_1, window_bounds = array<i64: 128, 128>}, {pipeline_mode = #tpu.pipeline_mode<synchronous>, transform_indices = @transform_2, window_bounds = array<i64: 1, 128>}, {pipeline_mode = #tpu.pipeline_mode<synchronous>, transform_indices = @transform_3, window_bounds = array<i64: 1, 128>}, {transform_indices = @transform_4, window_bounds = array<i64: 128, 128>}, {transform_indices = @transform_5, window_bounds = array<i64: 1, 8, 128>}]} {
    %c0 = arith.constant 0 : index
    %c0_0 = arith.constant 0 : index
    %0 = vector.load %arg1[%c0, %c0_0] : memref<128x128xf32, #tpu.memory_space<vmem>>, vector<128x128xf32>
    %c0_1 = arith.constant 0 : index
    %c0_2 = arith.constant 0 : index
    %1 = vector.load %arg3[%c0_1, %c0_2] : memref<1x128xf32, #tpu.memory_space<vmem>>, vector<1x128xf32>
    %2 = vector.broadcast %1 : vector<1x128xf32> to vector<128x128xf32>
    %3 = arith.mulf %0, %2 : vector<128x128xf32>
    %c0_3 = arith.constant 0 : index
    %c0_4 = arith.constant 0 : index
    %4 = vector.load %arg4[%c0_3, %c0_4] : memref<1x128xf32, #tpu.memory_space<vmem>>, vector<1x128xf32>
    %5 = vector.broadcast %4 : vector<1x128xf32> to vector<128x128xf32>
    %6 = arith.addf %3, %5 : vector<128x128xf32>
    %cst = arith.constant 0.000000e+00 : f32
    %7 = vector.broadcast %cst : f32 to vector<128x128xf32>
    %8 = arith.maximumf %6, %7 : vector<128x128xf32>
    %9 = arith.truncf %8 : vector<128x128xf32> to vector<128x128xbf16>
    %c0_5 = arith.constant 0 : index
    %c0_6 = arith.constant 0 : index
    %10 = vector.load %arg2[%c0_5, %c0_6] : memref<128x128xbf16, #tpu.memory_space<vmem>>, vector<128x128xbf16>
    %cst_7 = arith.constant dense<0.000000e+00> : vector<128x128xf32>
    %11 = tpu.matmul %9, %10, %cst_7 {dimension_numbers = #tpu.dot_dimension_numbers<[1], [0], [0], [1], [0, 0, 1, 1], [], []>} : vector<128x128xbf16>, vector<128x128xbf16>, vector<128x128xf32> -> vector<128x128xf32>
    %c0_8 = arith.constant 0 : index
    %c0_9 = arith.constant 0 : index
    %12 = vector.load %arg5[%c0_8, %c0_9] : memref<128x128xf32, #tpu.memory_space<vmem>>, vector<128x128xf32>
    tpu.vector_store %arg5[%c0_8, %c0_9], %11 {strides = array<i32>} : memref<128x128xf32, #tpu.memory_space<vmem>>, vector<128x128xf32>,
    %13 = tpu.iota {dimensions = array<i32: 0>} : vector<128x1xi32>
    %c128_i32 = arith.constant 128 : i32
    %14 = arith.muli %arg0, %c128_i32 : i32
    %15 = vector.broadcast %14 : i32 to vector<128x1xi32>
    %16 = arith.addi %13, %15 : vector<128x1xi32>
    %c128_i32_10 = arith.constant 128 : i32
    %17 = vector.broadcast %c128_i32_10 : i32 to vector<128x1xi32>
    %18 = arith.cmpi slt, %16, %17 : vector<128x1xi32>
    %cst_11 = arith.constant 0.000000e+00 : f32
    %19 = vector.shape_cast %18 : vector<128x1xi1> to vector<128x1xi1>
    %20 = vector.broadcast %19 : vector<128x1xi1> to vector<128x128xi1>
    %21 = vector.broadcast %cst_11 : f32 to vector<128x128xf32>
    %22 = arith.select %20, %11, %21 : vector<128x128xi1>, vector<128x128xf32>
    %cst_12 = arith.constant dense<0.000000e+00> : vector<128xf32>
    %23 = vector.multi_reduction <add>, %22, %cst_12 [0] : vector<128x128xf32> to vector<128xf32>
    %24 = vector.shape_cast %23 : vector<128xf32> to vector<1x128xf32>
    %25 = arith.mulf %22, %22 : vector<128x128xf32>
    %cst_13 = arith.constant dense<0.000000e+00> : vector<128xf32>
    %26 = vector.multi_reduction <add>, %25, %cst_13 [0] : vector<128x128xf32> to vector<128xf32>
    %27 = vector.shape_cast %26 : vector<128xf32> to vector<1x128xf32>
    %cst_14 = arith.constant 0.000000e+00 : f32
    %28 = vector.broadcast %cst_14 : f32 to vector<6x128xf32>
    %29 = tpu.concatenate %24, %27, %28 in 0 : vector<1x128xf32>, vector<1x128xf32>, vector<6x128xf32> -> vector<8x128xf32>
    %c0_15 = arith.constant 0 : index
    %c0_16 = arith.constant 0 : index
    %c0_17 = arith.constant 0 : index
    %30 = vector.load %arg6[%c0_15, %c0_16, %c0_17] : memref<1x8x128xf32, #tpu.memory_space<vmem>>, vector<1x8x128xf32>
    %31 = vector.shape_cast %30 : vector<1x8x128xf32> to vector<8x128xf32>
    %32 = vector.shape_cast %29 : vector<8x128xf32> to vector<1x8x128xf32>
    tpu.vector_store %arg6[%c0_15, %c0_16, %c0_17], %32 {strides = array<i32>} : memref<1x8x128xf32, #tpu.memory_space<vmem>>, vector<1x8x128xf32>,
    return
  }
  func.func @transform_0(%arg0: i32) -> (i32, i32) {
    %c0_i32 = arith.constant 0 : i32
    %c0_i32_0 = arith.constant 0 : i32
    return %arg0, %c0_i32 : i32, i32
  }
  func.func @transform_1(%arg0: i32) -> (i32, i32) {
    %c0_i32 = arith.constant 0 : i32
    %c0_i32_0 = arith.constant 0 : i32
    %c0_i32_1 = arith.constant 0 : i32
    return %c0_i32, %c0_i32_0 : i32, i32
  }
  func.func @transform_2(%arg0: i32) -> (i32, i32) {
    %c0_i32 = arith.constant 0 : i32
    %c0_i32_0 = arith.constant 0 : i32
    %c0_i32_1 = arith.constant 0 : i32
    return %c0_i32, %c0_i32_0 : i32, i32
  }
  func.func @transform_3(%arg0: i32) -> (i32, i32) {
    %c0_i32 = arith.constant 0 : i32
    %c0_i32_0 = arith.constant 0 : i32
    %c0_i32_1 = arith.constant 0 : i32
    return %c0_i32, %c0_i32_0 : i32, i32
  }
  func.func @transform_4(%arg0: i32) -> (i32, i32) {
    %c0_i32 = arith.constant 0 : i32
    %c0_i32_0 = arith.constant 0 : i32
    return %arg0, %c0_i32 : i32, i32
  }
  func.func @transform_5(%arg0: i32) -> (i32, i32, i32) {
    %c0_i32 = arith.constant 0 : i32
    %c0_i32_0 = arith.constant 0 : i32
    %c0_i32_1 = arith.constant 0 : i32
    return %arg0, %c0_i32, %c0_i32_0 : i32, i32, i32
  }
}

module attributes {stable_mosaic.version = 11 : i64} {
  func.func @_matmul_stats_kernel(%arg0: i32, %arg1: memref<128x128xbf16, #tpu.memory_space<vmem>>, %arg2: memref<128x128xbf16, #tpu.memory_space<vmem>>, %arg3: memref<1x128xf32, #tpu.memory_space<vmem>>, %arg4: memref<1x128xf32, #tpu.memory_space<vmem>>, %arg5: memref<128x128xf32, #tpu.memory_space<vmem>>, %arg6: memref<1x8x128xf32, #tpu.memory_space<vmem>>) attributes {dimension_semantics = [#tpu.dimension_semantics<parallel>], iteration_bounds = array<i64: 1>, scalar_prefetch = 0 : i64, scratch_operands = 0 : i64, tpu.core_type = #tpu.core_type<tc>, window_params = [{transform_indices = @transform_0, window_bounds = array<i64: 128, 128>}, {pipeline_mode = #tpu.pipeline_mode<synchronous>, transform_indices = @transform_1, window_bounds = array<i64: 128, 128>}, {pipeline_mode = #tpu.pipeline_mode<synchronous>, transform_indices = @transform_2, window_bounds = array<i64: 1, 128>}, {pipeline_mode = #tpu.pipeline_mode<synchronous>, transform_indices = @transform_3, window_bounds = array<i64: 1, 128>}, {transform_indices = @transform_4, window_bounds = array<i64: 128, 128>}, {transform_indices = @transform_5, window_bounds = array<i64: 1, 8, 128>}]} {
    %c0 = arith.constant 0 : index
    %c0_0 = arith.constant 0 : index
    %0 = vector.load %arg1[%c0, %c0_0] : memref<128x128xbf16, #tpu.memory_space<vmem>>, vector<128x128xbf16>
    %c0_1 = arith.constant 0 : index
    %c0_2 = arith.constant 0 : index
    %1 = vector.load %arg2[%c0_1, %c0_2] : memref<128x128xbf16, #tpu.memory_space<vmem>>, vector<128x128xbf16>
    %cst = arith.constant dense<0.000000e+00> : vector<128x128xf32>
    %2 = tpu.matmul %0, %1, %cst {dimension_numbers = #tpu.dot_dimension_numbers<[1], [0], [0], [1], [0, 0, 1, 1], [], []>} : vector<128x128xbf16>, vector<128x128xbf16>, vector<128x128xf32> -> vector<128x128xf32>
    %c0_3 = arith.constant 0 : index
    %c0_4 = arith.constant 0 : index
    %3 = vector.load %arg5[%c0_3, %c0_4] : memref<128x128xf32, #tpu.memory_space<vmem>>, vector<128x128xf32>
    tpu.vector_store %arg5[%c0_3, %c0_4], %2 {strides = array<i32>} : memref<128x128xf32, #tpu.memory_space<vmem>>, vector<128x128xf32>,
    %4 = tpu.iota {dimensions = array<i32: 0>} : vector<128x1xi32>
    %c128_i32 = arith.constant 128 : i32
    %5 = arith.muli %arg0, %c128_i32 : i32
    %6 = vector.broadcast %5 : i32 to vector<128x1xi32>
    %7 = arith.addi %4, %6 : vector<128x1xi32>
    %c128_i32_5 = arith.constant 128 : i32
    %8 = vector.broadcast %c128_i32_5 : i32 to vector<128x1xi32>
    %9 = arith.cmpi slt, %7, %8 : vector<128x1xi32>
    %cst_6 = arith.constant 0.000000e+00 : f32
    %10 = vector.shape_cast %9 : vector<128x1xi1> to vector<128x1xi1>
    %11 = vector.broadcast %10 : vector<128x1xi1> to vector<128x128xi1>
    %12 = vector.broadcast %cst_6 : f32 to vector<128x128xf32>
    %13 = arith.select %11, %2, %12 : vector<128x128xi1>, vector<128x128xf32>
    %cst_7 = arith.constant dense<0.000000e+00> : vector<128xf32>
    %14 = vector.multi_reduction <add>, %13, %cst_7 [0] : vector<128x128xf32> to vector<128xf32>
    %15 = vector.shape_cast %14 : vector<128xf32> to vector<1x128xf32>
    %16 = arith.mulf %13, %13 : vector<128x128xf32>
    %cst_8 = arith.constant dense<0.000000e+00> : vector<128xf32>
    %17 = vector.multi_reduction <add>, %16, %cst_8 [0] : vector<128x128xf32> to vector<128xf32>
    %18 = vector.shape_cast %17 : vector<128xf32> to vector<1x128xf32>
    %cst_9 = arith.constant 0.000000e+00 : f32
    %19 = vector.broadcast %cst_9 : f32 to vector<6x128xf32>
    %20 = tpu.concatenate %15, %18, %19 in 0 : vector<1x128xf32>, vector<1x128xf32>, vector<6x128xf32> -> vector<8x128xf32>
    %c0_10 = arith.constant 0 : index
    %c0_11 = arith.constant 0 : index
    %c0_12 = arith.constant 0 : index
    %21 = vector.load %arg6[%c0_10, %c0_11, %c0_12] : memref<1x8x128xf32, #tpu.memory_space<vmem>>, vector<1x8x128xf32>
    %22 = vector.shape_cast %21 : vector<1x8x128xf32> to vector<8x128xf32>
    %23 = vector.shape_cast %20 : vector<8x128xf32> to vector<1x8x128xf32>
    tpu.vector_store %arg6[%c0_10, %c0_11, %c0_12], %23 {strides = array<i32>} : memref<1x8x128xf32, #tpu.memory_space<vmem>>, vector<1x8x128xf32>,
    return
  }
  func.func @transform_0(%arg0: i32) -> (i32, i32) {
    %c0_i32 = arith.constant 0 : i32
    %c0_i32_0 = arith.constant 0 : i32
    return %arg0, %c0_i32 : i32, i32
  }
  func.func @transform_1(%arg0: i32) -> (i32, i32) {
    %c0_i32 = arith.constant 0 : i32
    %c0_i32_0 = arith.constant 0 : i32
    %c0_i32_1 = arith.constant 0 : i32
    return %c0_i32, %c0_i32_0 : i32, i32
  }
  func.func @transform_2(%arg0: i32) -> (i32, i32) {
    %c0_i32 = arith.constant 0 : i32
    %c0_i32_0 = arith.constant 0 : i32
    %c0_i32_1 = arith.constant 0 : i32
    return %c0_i32, %c0_i32_0 : i32, i32
  }
  func.func @transform_3(%arg0: i32) -> (i32, i32) {
    %c0_i32 = arith.constant 0 : i32
    %c0_i32_0 = arith.constant 0 : i32
    %c0_i32_1 = arith.constant 0 : i32
    return %c0_i32, %c0_i32_0 : i32, i32
  }
  func.func @transform_4(%arg0: i32) -> (i32, i32) {
    %c0_i32 = arith.constant 0 : i32
    %c0_i32_0 = arith.constant 0 : i32
    return %arg0, %c0_i32 : i32, i32
  }
  func.func @transform_5(%arg0: i32) -> (i32, i32, i32) {
    %c0_i32 = arith.constant 0 : i32
    %c0_i32_0 = arith.constant 0 : i32
    %c0_i32_1 = arith.constant 0 : i32
    return %arg0, %c0_i32, %c0_i32_0 : i32, i32, i32
  }
}

module attributes {stable_mosaic.version = 11 : i64} {
  func.func @_bn_add_relu_kernel(%arg0: i32, %arg1: memref<128x128xf32, #tpu.memory_space<vmem>>, %arg2: memref<128x128xf32, #tpu.memory_space<vmem>>, %arg3: memref<1x128xf32, #tpu.memory_space<vmem>>, %arg4: memref<1x128xf32, #tpu.memory_space<vmem>>, %arg5: memref<1x128xf32, #tpu.memory_space<vmem>>, %arg6: memref<1x128xf32, #tpu.memory_space<vmem>>, %arg7: memref<128x128xf32, #tpu.memory_space<vmem>>) attributes {dimension_semantics = [#tpu.dimension_semantics<parallel>], iteration_bounds = array<i64: 1>, scalar_prefetch = 0 : i64, scratch_operands = 0 : i64, tpu.core_type = #tpu.core_type<tc>, window_params = [{transform_indices = @transform_0, window_bounds = array<i64: 128, 128>}, {transform_indices = @transform_1, window_bounds = array<i64: 128, 128>}, {pipeline_mode = #tpu.pipeline_mode<synchronous>, transform_indices = @transform_2, window_bounds = array<i64: 1, 128>}, {pipeline_mode = #tpu.pipeline_mode<synchronous>, transform_indices = @transform_3, window_bounds = array<i64: 1, 128>}, {pipeline_mode = #tpu.pipeline_mode<synchronous>, transform_indices = @transform_4, window_bounds = array<i64: 1, 128>}, {pipeline_mode = #tpu.pipeline_mode<synchronous>, transform_indices = @transform_5, window_bounds = array<i64: 1, 128>}, {transform_indices = @transform_6, window_bounds = array<i64: 128, 128>}]} {
    %c0 = arith.constant 0 : index
    %c0_0 = arith.constant 0 : index
    %0 = vector.load %arg1[%c0, %c0_0] : memref<128x128xf32, #tpu.memory_space<vmem>>, vector<128x128xf32>
    %c0_1 = arith.constant 0 : index
    %c0_2 = arith.constant 0 : index
    %1 = vector.load %arg3[%c0_1, %c0_2] : memref<1x128xf32, #tpu.memory_space<vmem>>, vector<1x128xf32>
    %2 = vector.broadcast %1 : vector<1x128xf32> to vector<128x128xf32>
    %3 = arith.mulf %0, %2 : vector<128x128xf32>
    %c0_3 = arith.constant 0 : index
    %c0_4 = arith.constant 0 : index
    %4 = vector.load %arg4[%c0_3, %c0_4] : memref<1x128xf32, #tpu.memory_space<vmem>>, vector<1x128xf32>
    %5 = vector.broadcast %4 : vector<1x128xf32> to vector<128x128xf32>
    %6 = arith.addf %3, %5 : vector<128x128xf32>
    %c0_5 = arith.constant 0 : index
    %c0_6 = arith.constant 0 : index
    %7 = vector.load %arg2[%c0_5, %c0_6] : memref<128x128xf32, #tpu.memory_space<vmem>>, vector<128x128xf32>
    %c0_7 = arith.constant 0 : index
    %c0_8 = arith.constant 0 : index
    %8 = vector.load %arg5[%c0_7, %c0_8] : memref<1x128xf32, #tpu.memory_space<vmem>>, vector<1x128xf32>
    %9 = vector.broadcast %8 : vector<1x128xf32> to vector<128x128xf32>
    %10 = arith.mulf %7, %9 : vector<128x128xf32>
    %c0_9 = arith.constant 0 : index
    %c0_10 = arith.constant 0 : index
    %11 = vector.load %arg6[%c0_9, %c0_10] : memref<1x128xf32, #tpu.memory_space<vmem>>, vector<1x128xf32>
    %12 = vector.broadcast %11 : vector<1x128xf32> to vector<128x128xf32>
    %13 = arith.addf %10, %12 : vector<128x128xf32>
    %14 = arith.addf %6, %13 : vector<128x128xf32>
    %cst = arith.constant 0.000000e+00 : f32
    %15 = vector.broadcast %cst : f32 to vector<128x128xf32>
    %16 = arith.maximumf %14, %15 : vector<128x128xf32>
    %c0_11 = arith.constant 0 : index
    %c0_12 = arith.constant 0 : index
    %17 = vector.load %arg7[%c0_11, %c0_12] : memref<128x128xf32, #tpu.memory_space<vmem>>, vector<128x128xf32>
    tpu.vector_store %arg7[%c0_11, %c0_12], %16 {strides = array<i32>} : memref<128x128xf32, #tpu.memory_space<vmem>>, vector<128x128xf32>,
    return
  }
  func.func @transform_0(%arg0: i32) -> (i32, i32) {
    %c0_i32 = arith.constant 0 : i32
    %c0_i32_0 = arith.constant 0 : i32
    return %arg0, %c0_i32 : i32, i32
  }
  func.func @transform_1(%arg0: i32) -> (i32, i32) {
    %c0_i32 = arith.constant 0 : i32
    %c0_i32_0 = arith.constant 0 : i32
    return %arg0, %c0_i32 : i32, i32
  }
  func.func @transform_2(%arg0: i32) -> (i32, i32) {
    %c0_i32 = arith.constant 0 : i32
    %c0_i32_0 = arith.constant 0 : i32
    %c0_i32_1 = arith.constant 0 : i32
    return %c0_i32, %c0_i32_0 : i32, i32
  }
  func.func @transform_3(%arg0: i32) -> (i32, i32) {
    %c0_i32 = arith.constant 0 : i32
    %c0_i32_0 = arith.constant 0 : i32
    %c0_i32_1 = arith.constant 0 : i32
    return %c0_i32, %c0_i32_0 : i32, i32
  }
  func.func @transform_4(%arg0: i32) -> (i32, i32) {
    %c0_i32 = arith.constant 0 : i32
    %c0_i32_0 = arith.constant 0 : i32
    %c0_i32_1 = arith.constant 0 : i32
    return %c0_i32, %c0_i32_0 : i32, i32
  }
  func.func @transform_5(%arg0: i32) -> (i32, i32) {
    %c0_i32 = arith.constant 0 : i32
    %c0_i32_0 = arith.constant 0 : i32
    %c0_i32_1 = arith.constant 0 : i32
    return %c0_i32, %c0_i32_0 : i32, i32
  }
  func.func @transform_6(%arg0: i32) -> (i32, i32) {
    %c0_i32 = arith.constant 0 : i32
    %c0_i32_0 = arith.constant 0 : i32
    return %arg0, %c0_i32 : i32, i32
  }
}

</mosaic_0001>

<bundles_post_ra>
// kernel: a_call__.5
= control target key start
LH: loop header
LB: loop body
LE: loop exit
PB: predicated region body
PF: predicated region fallthrough
CT: control target
= control target key end

     0   :  { %vm1282_vm0 = vcmask 1040384   ;;  %vm1284_vm1 = vcmask 1041408   ;;  %s2048_s1 = inlined_call_operand.vmem [shape: bf16[128,128], index: 1, kind: input, shape index: {}]   ;;  %s2049_s2 = inlined_call_operand.vmem [shape: f32[1,128], index: 2, kind: input, shape index: {}]   ;;  %s2050_s3 = inlined_call_operand.vmem [shape: f32[1,128], index: 3, kind: input, shape index: {}]   ;;  %s2051_s0 = inlined_call_operand.vmem [shape: bf16[512,128], index: 0, kind: input, shape index: {}]   ;;  %s2052_s4 = inlined_call_operand.vmem [shape: f32[512,128], index: 4, kind: output, shape index: {0}]   ;;  %s2053_s5 = inlined_call_operand.vmem [shape: f32[1,8,128], index: 5, kind: output, shape index: {1}]  }
   0x1   :  { %v1471_v0 = vld [vmem:[%s2048_s1] sm:$0xff]   ;;  %v1472_v1 = vld [vmem:[%s2048_s1 + $0x8] sm:$0xff]   ;;  %v1473_v2 = vld [vmem:[%s2048_s1 + $0x10] sm:$0xff]  }
   0x2   :  { %1375 = vmatprep.subr.bf16.mxu0 %v1471_v0  ;;  %1455 = vmatprep.subr.bf16.mxu1 %v1471_v0  ;;  %v1474_v3 = vld [vmem:[%s2048_s1 + $0x18] sm:$0xff]   ;;  %v1479_v4 = vld [vmem:[%s2051_s0] sm:$0xff]   ;;  %v1476_v6 = vld [vmem:[%s2048_s1 + $0x28] sm:$0xff]  }
   0x3   :  { %1376 = vmatpush3.bf16.msra.mxu0 %v1471_v0  ;;  %1463 = vmatpush3.bf16.msra.mxu1 %v1471_v0  ;;  %v1475_v5 = vld [vmem:[%s2048_s1 + $0x20] sm:$0xff]   ;;  %v1477_v7 = vld [vmem:[%s2048_s1 + $0x30] sm:$0xff]   ;;  %v1478_v8 = vld [vmem:[%s2048_s1 + $0x38] sm:$0xff]  }
   0x4   :  { %1377 = vmatprep.subr.bf16.mxu0 %v1472_v1  ;;  %1456 = vmatprep.subr.bf16.mxu1 %v1472_v1  ;;  %v1495_v9 = vld [vmem:[%s2051_s0 + $0x80] sm:$0xff]   ;;  %v1480_v10 = vld [vmem:[%s2051_s0 + $0x8] sm:$0xff]   ;;  %v1481_v11 = vld [vmem:[%s2051_s0 + $0x10] sm:$0xff]  }
   0x5   :  { %1391 = vmatprep.mubr.bf16.mxu0 %v1479_v4  ;;  %1423 = vmatprep.mubr.bf16.mxu1 %v1495_v9  ;;  %v1496_v12 = vld [vmem:[%s2051_s0 + $0x88] sm:$0xff]   ;;  %v1497_v13 = vld [vmem:[%s2051_s0 + $0x90] sm:$0xff]   ;;  %v1482_v14 = vld [vmem:[%s2051_s0 + $0x18] sm:$0xff]  }
   0x6   :  { %v1483_v15 = vld [vmem:[%s2051_s0 + $0x20] sm:$0xff]   ;;  %v1498_v16 = vld [vmem:[%s2051_s0 + $0x98] sm:$0xff]   ;;  %v1484_v18 = vld [vmem:[%s2051_s0 + $0x28] sm:$0xff]  }
   0x7   :  { %1378 = vmatpush3.bf16.msra.mxu0 %v1472_v1  ;;  %1464 = vmatpush3.bf16.msra.mxu1 %v1472_v1  ;;  %v1499_v17 = vld [vmem:[%s2051_s0 + $0xa0] sm:$0xff]   ;;  %v1500_v19 = vld [vmem:[%s2051_s0 + $0xa8] sm:$0xff]   ;;  %v1485_v20 = vld [vmem:[%s2051_s0 + $0x30] sm:$0xff]  }
   0x8   :  { %1379 = vmatprep.subr.bf16.mxu0 %v1473_v2  ;;  %1457 = vmatprep.subr.bf16.mxu1 %v1473_v2  ;;  %v1501_v21 = vld [vmem:[%s2051_s0 + $0xb0] sm:$0xff]   ;;  %v1486_v22 = vld [vmem:[%s2051_s0 + $0x38] sm:$0xff]   ;;  %v1487_v24 = vld [vmem:[%s2051_s0 + $0x40] sm:$0xff]  }
   0x9   :  { %v1502_v23 = vld [vmem:[%s2051_s0 + $0xb8] sm:$0xff]   ;;  %v1503_v25 = vld [vmem:[%s2051_s0 + $0xc0] sm:$0xff]   ;;  %v1488_v26 = vld [vmem:[%s2051_s0 + $0x48] sm:$0xff]  }
   0xa   :  { %v1504_v27 = vld [vmem:[%s2051_s0 + $0xc8] sm:$0xff]   ;;  %v1489_v28 = vld [vmem:[%s2051_s0 + $0x50] sm:$0xff]   ;;  %v1490_v30 = vld [vmem:[%s2051_s0 + $0x58] sm:$0xff]  }
   0xb   :  { %1380 = vmatpush3.bf16.msra.mxu0 %v1473_v2  ;;  %1465 = vmatpush3.bf16.msra.mxu1 %v1473_v2  ;;  %v1505_v29 = vld [vmem:[%s2051_s0 + $0xd0] sm:$0xff]   ;;  %v1506_v31 = vld [vmem:[%s2051_s0 + $0xd8] sm:$0xff]   ;;  %v1491_v32 = vld [vmem:[%s2051_s0 + $0x60] sm:$0xff]  }
   0xc   :  { %1381 = vmatprep.subr.bf16.mxu0 %v1474_v3  ;;  %1458 = vmatprep.subr.bf16.mxu1 %v1474_v3  ;;  %v1507_v33 = vld [vmem:[%s2051_s0 + $0xe0] sm:$0xff]   ;;  %v1492_v34 = vld [vmem:[%s2051_s0 + $0x68] sm:$0xff]   ;;  %v1493_v36 = vld [vmem:[%s2051_s0 + $0x70] sm:$0xff]  }
   0xd   :  { %v1508_v35 = vld [vmem:[%s2051_s0 + $0xe8] sm:$0xff]   ;;  %v1509_v37 = vld [vmem:[%s2051_s0 + $0xf0] sm:$0xff]   ;;  %v1494_v38 = vld [vmem:[%s2051_s0 + $0x78] sm:$0xff]  }
   0xe   :  { %v1510_v39 = vld [vmem:[%s2051_s0 + $0xf8] sm:$0xff]  }
   0xf   :  { %1382 = vmatpush3.bf16.msra.mxu0 %v1474_v3  ;;  %1466 = vmatpush3.bf16.msra.mxu1 %v1474_v3 }
  0x10   :  { %1383 = vmatprep.subr.bf16.mxu0 %v1475_v5  ;;  %1459 = vmatprep.subr.bf16.mxu1 %v1475_v5 }
  0x13   :  { %1384 = vmatpush3.bf16.msra.mxu0 %v1475_v5  ;;  %1467 = vmatpush3.bf16.msra.mxu1 %v1475_v5 }
  0x14   :  { %1385 = vmatprep.subr.bf16.mxu0 %v1476_v6  ;;  %1460 = vmatprep.subr.bf16.mxu1 %v1476_v6 }
  0x17   :  { %1386 = vmatpush3.bf16.msra.mxu0 %v1476_v6  ;;  %1468 = vmatpush3.bf16.msra.mxu1 %v1476_v6 }
  0x18   :  { %1387 = vmatprep.subr.bf16.mxu0 %v1477_v7  ;;  %1461 = vmatprep.subr.bf16.mxu1 %v1477_v7 }
  0x1b   :  { %1388 = vmatpush3.bf16.msra.mxu0 %v1477_v7  ;;  %1469 = vmatpush3.bf16.msra.mxu1 %v1477_v7 }
  0x1c   :  { %1389 = vmatprep.subr.bf16.mxu0 %v1478_v8  ;;  %1462 = vmatprep.subr.bf16.mxu1 %v1478_v8 }
  0x1f   :  { %1390 = vmatpush3.bf16.msra.mxu0 %v1478_v8  ;;  %1470 = vmatpush3.bf16.msra.mxu1 %v1478_v8 }
  0x22   :  { %1392 = vmatmul.mubr.bf16.vlgmr.msra.gmra.mrb[0].mxu0 %v1480_v10  ;;  %1424 = vmatmul.mubr.bf16.vlgmr.msra.gmra.mrb[0].mxu1 %v1496_v12 }
  0x23   :  { %1395 = vmatprep.mubr.bf16.mxu0 %v1481_v11  ;;  %1427 = vmatprep.mubr.bf16.mxu1 %v1497_v13 }
  0x2a   :  { %1396 = vmatmul.mubr.bf16.gmra.mrb[4].mxu0 %v1482_v14  ;;  %1428 = vmatmul.mubr.bf16.gmra.mrb[4].mxu1 %v1498_v16 }
  0x2b   :  { %1399 = vmatprep.mubr.bf16.mxu0 %v1483_v15  ;;  %1431 = vmatprep.mubr.bf16.mxu1 %v1499_v17 }
  0x32   :  { %1400 = vmatmul.mubr.bf16.gmra.mrb[8].mxu0 %v1484_v18  ;;  %1432 = vmatmul.mubr.bf16.gmra.mrb[8].mxu1 %v1500_v19 }
  0x33   :  { %1403 = vmatprep.mubr.bf16.mxu0 %v1485_v20  ;;  %1435 = vmatprep.mubr.bf16.mxu1 %v1501_v21 }
  0x3a   :  { %1404 = vmatmul.mubr.bf16.gmra.mrb[12].mxu0 %v1486_v22  ;;  %1436 = vmatmul.mubr.bf16.gmra.mrb[12].mxu1 %v1502_v23 }
  0x3b   :  { %1407 = vmatprep.mubr.bf16.mxu0 %v1487_v24  ;;  %1439 = vmatprep.mubr.bf16.mxu1 %v1503_v25 }
  0x42   :  { %1408 = vmatmul.mubr.bf16.gmra.mrb[16].mxu0 %v1488_v26  ;;  %1440 = vmatmul.mubr.bf16.gmra.mrb[16].mxu1 %v1504_v27 }
  0x43   :  { %1411 = vmatprep.mubr.bf16.mxu0 %v1489_v28  ;;  %1443 = vmatprep.mubr.bf16.mxu1 %v1505_v29 }
  0x4a   :  { %1412 = vmatmul.mubr.bf16.gmra.mrb[20].mxu0 %v1490_v30  ;;  %1444 = vmatmul.mubr.bf16.gmra.mrb[20].mxu1 %v1506_v31 }
  0x4b   :  { %1415 = vmatprep.mubr.bf16.mxu0 %v1491_v32  ;;  %1447 = vmatprep.mubr.bf16.mxu1 %v1507_v33 }
  0x52   :  { %1416 = vmatmul.mubr.bf16.gmra.mrb[24].mxu0 %v1492_v34  ;;  %1448 = vmatmul.mubr.bf16.gmra.mrb[24].mxu1 %v1508_v35 }
  0x53   :  { %1419 = vmatprep.mubr.bf16.mxu0 %v1493_v36  ;;  %1451 = vmatprep.mubr.bf16.mxu1 %v1509_v37 }
  0x5a   :  { %1420 = vmatmul.mubr.bf16.gmra.mrb[28].mxu0 %v1494_v38  ;;  %1452 = vmatmul.mubr.bf16.gmra.mrb[28].mxu1 %v1510_v39 }
  0xf5   :  { %v1393_v40 = vpop.f32.mrb[0].mxu0  ;;  %v1661_v41 = vpop.f32.mrb[0].mxu1 }
  0xf6   :  { %631 = vst [vmem:[%s2052_s4 + $0x10] sm:$0xff] %v1393_v40  ;;  %v374_v42 = vpop.f32.mrb[1].mxu0  ;;  %663 = vst [vmem:[%s2052_s4 + $0x110] sm:$0xff] %v1661_v41  ;;  %v1670_v43 = vpop.f32.mrb[1].mxu1  ;;  %v1151_v51 = vmul.f32 %v1393_v40, %v1393_v40 }
  0xf7   :  { %629 = vst [vmem:[%s2052_s4] sm:$0xff] %v374_v42  ;;  %v1394_v44 = vpop.f32.mrb[2].mxu0  ;;  %661 = vst [vmem:[%s2052_s4 + $0x100] sm:$0xff] %v1670_v43  ;;  %v1679_v45 = vpop.f32.mrb[2].mxu1  ;;  %v1149_v48 = vmul.f32 %v374_v42, %v374_v42 }
  0xf8   :  { %632 = vst [vmem:[%s2052_s4 + $0x18] sm:$0xff] %v1394_v44  ;;  %v377_v46 = vpop.f32.mrb[3].mxu0  ;;  %664 = vst [vmem:[%s2052_s4 + $0x118] sm:$0xff] %v1679_v45  ;;  %v1688_v47 = vpop.f32.mrb[3].mxu1  ;;  %v1152_v54 = vmul.f32 %v1394_v44, %v1394_v44 }
  0xf9   :  { %630 = vst [vmem:[%s2052_s4 + $0x8] sm:$0xff] %v377_v46  ;;  %v1080_v49 = vadd.f32 %v377_v46, %v374_v42  ;;  %v1150_v50 = vmul.f32 %v377_v46, %v377_v46  ;;  %662 = vst [vmem:[%s2052_s4 + $0x108] sm:$0xff] %v1688_v47 }
  0xfb   :  { %v1081_v52 = vadd.f32 %v1393_v40, %v1080_v49  ;;  %v1213_v53 = vadd.f32 %v1150_v50, %v1149_v48 }
  0xfd   :  { %v1214_v55 = vadd.f32 %v1213_v53, %v1151_v51  ;;  %v1397_v56 = vpop.f32.mrb[4].mxu0  ;;  %v1082_v57 = vadd.f32 %v1394_v44, %v1081_v52  ;;  %v1697_v58 = vpop.f32.mrb[4].mxu1 }
  0xfe   :  { %635 = vst [vmem:[%s2052_s4 + $0x30] sm:$0xff] %v1397_v56  ;;  %v390_v59 = vpop.f32.mrb[5].mxu0  ;;  %667 = vst [vmem:[%s2052_s4 + $0x130] sm:$0xff] %v1697_v58  ;;  %v1706_v60 = vpop.f32.mrb[5].mxu1  ;;  %v1155_v7 = vmul.f32 %v1397_v56, %v1397_v56 }
  0xff   :  { %633 = vst [vmem:[%s2052_s4 + $0x20] sm:$0xff] %v390_v59  ;;  %v1083_v61 = vadd.f32 %v1082_v57, %v390_v59  ;;  %v1153_v62 = vmul.f32 %v390_v59, %v390_v59  ;;  %v1215_v63 = vadd.f32 %v1214_v55, %v1152_v54  ;;  %v1398_v0 = vpop.f32.mrb[6].mxu0  ;;  %665 = vst [vmem:[%s2052_s4 + $0x120] sm:$0xff] %v1706_v60  ;;  %v1715_v1 = vpop.f32.mrb[6].mxu1 }
 0x100   :  { %636 = vst [vmem:[%s2052_s4 + $0x38] sm:$0xff] %v1398_v0  ;;  %v393_v2 = vpop.f32.mrb[7].mxu0  ;;  %668 = vst [vmem:[%s2052_s4 + $0x138] sm:$0xff] %v1715_v1  ;;  %v1724_v3 = vpop.f32.mrb[7].mxu1  ;;  %v1156_v10 = vmul.f32 %v1398_v0, %v1398_v0 }
 0x101   :  { %v1216_v4 = vadd.f32 %v1215_v63, %v1153_v62  ;;  %634 = vst [vmem:[%s2052_s4 + $0x28] sm:$0xff] %v393_v2  ;;  %v1084_v5 = vadd.f32 %v1083_v61, %v393_v2  ;;  %v1154_v6 = vmul.f32 %v393_v2, %v393_v2  ;;  %666 = vst [vmem:[%s2052_s4 + $0x128] sm:$0xff] %v1724_v3 }
 0x103   :  { %v1085_v8 = vadd.f32 %v1397_v56, %v1084_v5  ;;  %v1217_v9 = vadd.f32 %v1216_v4, %v1154_v6 }
 0x105   :  { %v1218_v11 = vadd.f32 %v1217_v9, %v1155_v7  ;;  %v1401_v12 = vpop.f32.mrb[8].mxu0  ;;  %v1086_v13 = vadd.f32 %v1398_v0, %v1085_v8  ;;  %v1733_v14 = vpop.f32.mrb[8].mxu1 }
 0x106   :  { %639 = vst [vmem:[%s2052_s4 + $0x50] sm:$0xff] %v1401_v12  ;;  %v406_v15 = vpop.f32.mrb[9].mxu0  ;;  %671 = vst [vmem:[%s2052_s4 + $0x150] sm:$0xff] %v1733_v14  ;;  %v1742_v16 = vpop.f32.mrb[9].mxu1  ;;  %v1159_v27 = vmul.f32 %v1401_v12, %v1401_v12 }
 0x107   :  { %637 = vst [vmem:[%s2052_s4 + $0x40] sm:$0xff] %v406_v15  ;;  %v1087_v17 = vadd.f32 %v1086_v13, %v406_v15  ;;  %v1157_v18 = vmul.f32 %v406_v15, %v406_v15  ;;  %v1219_v19 = vadd.f32 %v1218_v11, %v1156_v10  ;;  %v1402_v20 = vpop.f32.mrb[10].mxu0  ;;  %669 = vst [vmem:[%s2052_s4 + $0x140] sm:$0xff] %v1742_v16  ;;  %v1751_v21 = vpop.f32.mrb[10].mxu1 }
 0x108   :  { %640 = vst [vmem:[%s2052_s4 + $0x58] sm:$0xff] %v1402_v20  ;;  %v409_v22 = vpop.f32.mrb[11].mxu0  ;;  %672 = vst [vmem:[%s2052_s4 + $0x158] sm:$0xff] %v1751_v21  ;;  %v1760_v23 = vpop.f32.mrb[11].mxu1  ;;  %v1160_v30 = vmul.f32 %v1402_v20, %v1402_v20 }
 0x109   :  { %v1220_v24 = vadd.f32 %v1219_v19, %v1157_v18  ;;  %638 = vst [vmem:[%s2052_s4 + $0x48] sm:$0xff] %v409_v22  ;;  %v1088_v25 = vadd.f32 %v1087_v17, %v409_v22  ;;  %v1158_v26 = vmul.f32 %v409_v22, %v409_v22  ;;  %670 = vst [vmem:[%s2052_s4 + $0x148] sm:$0xff] %v1760_v23 }
 0x10b   :  { %v1089_v28 = vadd.f32 %v1401_v12, %v1088_v25  ;;  %v1221_v29 = vadd.f32 %v1220_v24, %v1158_v26 }
 0x10d   :  { %v1222_v31 = vadd.f32 %v1221_v29, %v1159_v27  ;;  %v1405_v32 = vpop.f32.mrb[12].mxu0  ;;  %v1090_v33 = vadd.f32 %v1402_v20, %v1089_v28  ;;  %v1769_v34 = vpop.f32.mrb[12].mxu1 }
 0x10e   :  { %643 = vst [vmem:[%s2052_s4 + $0x70] sm:$0xff] %v1405_v32  ;;  %v422_v35 = vpop.f32.mrb[13].mxu0  ;;  %675 = vst [vmem:[%s2052_s4 + $0x170] sm:$0xff] %v1769_v34  ;;  %v1778_v36 = vpop.f32.mrb[13].mxu1  ;;  %v1163_v51 = vmul.f32 %v1405_v32, %v1405_v32 }
 0x10f   :  { %641 = vst [vmem:[%s2052_s4 + $0x60] sm:$0xff] %v422_v35  ;;  %v1091_v37 = vadd.f32 %v1090_v33, %v422_v35  ;;  %v1161_v38 = vmul.f32 %v422_v35, %v422_v35  ;;  %v1223_v39 = vadd.f32 %v1222_v31, %v1160_v30  ;;  %v1406_v40 = vpop.f32.mrb[14].mxu0  ;;  %673 = vst [vmem:[%s2052_s4 + $0x160] sm:$0xff] %v1778_v36  ;;  %v1787_v42 = vpop.f32.mrb[14].mxu1 }
 0x110   :  { %644 = vst [vmem:[%s2052_s4 + $0x78] sm:$0xff] %v1406_v40  ;;  %v425_v44 = vpop.f32.mrb[15].mxu0  ;;  %676 = vst [vmem:[%s2052_s4 + $0x178] sm:$0xff] %v1787_v42  ;;  %v1796_v46 = vpop.f32.mrb[15].mxu1  ;;  %v1164_v54 = vmul.f32 %v1406_v40, %v1406_v40 }
 0x111   :  { %v1224_v48 = vadd.f32 %v1223_v39, %v1161_v38  ;;  %642 = vst [vmem:[%s2052_s4 + $0x68] sm:$0xff] %v425_v44  ;;  %v1092_v49 = vadd.f32 %v1091_v37, %v425_v44  ;;  %v1162_v50 = vmul.f32 %v425_v44, %v425_v44  ;;  %674 = vst [vmem:[%s2052_s4 + $0x168] sm:$0xff] %v1796_v46 }
 0x113   :  { %v1093_v52 = vadd.f32 %v1405_v32, %v1092_v49  ;;  %v1225_v53 = vadd.f32 %v1224_v48, %v1162_v50 }
 0x115   :  { %v1226_v55 = vadd.f32 %v1225_v53, %v1163_v51  ;;  %v1409_v56 = vpop.f32.mrb[16].mxu0  ;;  %v1094_v57 = vadd.f32 %v1406_v40, %v1093_v52  ;;  %v1805_v59 = vpop.f32.mrb[16].mxu1 }
 0x116   :  { %647 = vst [vmem:[%s2052_s4 + $0x90] sm:$0xff] %v1409_v56  ;;  %v438_v61 = vpop.f32.mrb[17].mxu0  ;;  %679 = vst [vmem:[%s2052_s4 + $0x190] sm:$0xff] %v1805_v59  ;;  %v1814_v62 = vpop.f32.mrb[17].mxu1  ;;  %v1167_v11 = vmul.f32 %v1409_v56, %v1409_v56 }
 0x117   :  { %645 = vst [vmem:[%s2052_s4 + $0x80] sm:$0xff] %v438_v61  ;;  %v1095_v63 = vadd.f32 %v1094_v57, %v438_v61  ;;  %v1165_v0 = vmul.f32 %v438_v61, %v438_v61  ;;  %v1227_v2 = vadd.f32 %v1226_v55, %v1164_v54  ;;  %v1410_v4 = vpop.f32.mrb[18].mxu0  ;;  %677 = vst [vmem:[%s2052_s4 + $0x180] sm:$0xff] %v1814_v62  ;;  %v1823_v5 = vpop.f32.mrb[18].mxu1 }
 0x118   :  { %648 = vst [vmem:[%s2052_s4 + $0x98] sm:$0xff] %v1410_v4  ;;  %v441_v6 = vpop.f32.mrb[19].mxu0  ;;  %680 = vst [vmem:[%s2052_s4 + $0x198] sm:$0xff] %v1823_v5  ;;  %v1832_v7 = vpop.f32.mrb[19].mxu1  ;;  %v1168_v15 = vmul.f32 %v1410_v4, %v1410_v4 }
 0x119   :  { %v1228_v8 = vadd.f32 %v1227_v2, %v1165_v0  ;;  %646 = vst [vmem:[%s2052_s4 + $0x88] sm:$0xff] %v441_v6  ;;  %v1096_v9 = vadd.f32 %v1095_v63, %v441_v6  ;;  %v1166_v10 = vmul.f32 %v441_v6, %v441_v6  ;;  %678 = vst [vmem:[%s2052_s4 + $0x188] sm:$0xff] %v1832_v7 }
 0x11b   :  { %v1097_v12 = vadd.f32 %v1409_v56, %v1096_v9  ;;  %v1229_v13 = vadd.f32 %v1228_v8, %v1166_v10 }
 0x11d   :  { %v1230_v17 = vadd.f32 %v1229_v13, %v1167_v11  ;;  %v1413_v18 = vpop.f32.mrb[20].mxu0  ;;  %v1098_v19 = vadd.f32 %v1410_v4, %v1097_v12  ;;  %v1841_v20 = vpop.f32.mrb[20].mxu1 }
 0x11e   :  { %651 = vst [vmem:[%s2052_s4 + $0xb0] sm:$0xff] %v1413_v18  ;;  %v454_v22 = vpop.f32.mrb[21].mxu0  ;;  %683 = vst [vmem:[%s2052_s4 + $0x1b0] sm:$0xff] %v1841_v20  ;;  %v1850_v24 = vpop.f32.mrb[21].mxu1  ;;  %v1171_v37 = vmul.f32 %v1413_v18, %v1413_v18 }
 0x11f   :  { %649 = vst [vmem:[%s2052_s4 + $0xa0] sm:$0xff] %v454_v22  ;;  %v1099_v25 = vadd.f32 %v1098_v19, %v454_v22  ;;  %v1169_v26 = vmul.f32 %v454_v22, %v454_v22  ;;  %v1231_v27 = vadd.f32 %v1230_v17, %v1168_v15  ;;  %v1414_v28 = vpop.f32.mrb[22].mxu0  ;;  %681 = vst [vmem:[%s2052_s4 + $0x1a0] sm:$0xff] %v1850_v24  ;;  %v1859_v29 = vpop.f32.mrb[22].mxu1 }
 0x120   :  { %652 = vst [vmem:[%s2052_s4 + $0xb8] sm:$0xff] %v1414_v28  ;;  %v457_v30 = vpop.f32.mrb[23].mxu0  ;;  %684 = vst [vmem:[%s2052_s4 + $0x1b8] sm:$0xff] %v1859_v29  ;;  %v1868_v31 = vpop.f32.mrb[23].mxu1  ;;  %v1172_v40 = vmul.f32 %v1414_v28, %v1414_v28 }
 0x121   :  { %v1232_v32 = vadd.f32 %v1231_v27, %v1169_v26  ;;  %650 = vst [vmem:[%s2052_s4 + $0xa8] sm:$0xff] %v457_v30  ;;  %v1100_v33 = vadd.f32 %v1099_v25, %v457_v30  ;;  %v1170_v35 = vmul.f32 %v457_v30, %v457_v30  ;;  %682 = vst [vmem:[%s2052_s4 + $0x1a8] sm:$0xff] %v1868_v31 }
 0x123   :  { %v1101_v38 = vadd.f32 %v1413_v18, %v1100_v33  ;;  %v1233_v39 = vadd.f32 %v1232_v32, %v1170_v35 }
 0x125   :  { %v1234_v44 = vadd.f32 %v1233_v39, %v1171_v37  ;;  %v1417_v48 = vpop.f32.mrb[24].mxu0  ;;  %v1102_v49 = vadd.f32 %v1414_v28, %v1101_v38  ;;  %v1877_v50 = vpop.f32.mrb[24].mxu1 }
 0x126   :  { %655 = vst [vmem:[%s2052_s4 + $0xd0] sm:$0xff] %v1417_v48  ;;  %v470_v51 = vpop.f32.mrb[25].mxu0  ;;  %687 = vst [vmem:[%s2052_s4 + $0x1d0] sm:$0xff] %v1877_v50  ;;  %v1886_v52 = vpop.f32.mrb[25].mxu1  ;;  %v1175_v6 = vmul.f32 %v1417_v48, %v1417_v48 }
 0x127   :  { %653 = vst [vmem:[%s2052_s4 + $0xc0] sm:$0xff] %v470_v51  ;;  %v1103_v53 = vadd.f32 %v1102_v49, %v470_v51  ;;  %v1173_v54 = vmul.f32 %v470_v51, %v470_v51  ;;  %v1235_v55 = vadd.f32 %v1234_v44, %v1172_v40  ;;  %v1418_v56 = vpop.f32.mrb[26].mxu0  ;;  %685 = vst [vmem:[%s2052_s4 + $0x1c0] sm:$0xff] %v1886_v52  ;;  %v1895_v57 = vpop.f32.mrb[26].mxu1 }
 0x128   :  { %656 = vst [vmem:[%s2052_s4 + $0xd8] sm:$0xff] %v1418_v56  ;;  %v473_v61 = vpop.f32.mrb[27].mxu0  ;;  %688 = vst [vmem:[%s2052_s4 + $0x1d8] sm:$0xff] %v1895_v57  ;;  %v1904_v63 = vpop.f32.mrb[27].mxu1  ;;  %v1176_v10 = vmul.f32 %v1418_v56, %v1418_v56  ;;  %v1181_v49 = vmul.f32 %v1670_v43, %v1670_v43 }
 0x129   :  { %v1236_v0 = vadd.f32 %v1235_v55, %v1173_v54  ;;  %654 = vst [vmem:[%s2052_s4 + $0xc8] sm:$0xff] %v473_v61  ;;  %v1104_v2 = vadd.f32 %v1103_v53, %v473_v61  ;;  %v1174_v4 = vmul.f32 %v473_v61, %v473_v61  ;;  %686 = vst [vmem:[%s2052_s4 + $0x1c8] sm:$0xff] %v1904_v63 }
 0x12a   :  { %v1183_v61 = vmul.f32 %v1661_v41, %v1661_v41 }
 0x12b   :  { %v1105_v8 = vadd.f32 %v1417_v48, %v1104_v2  ;;  %v1237_v9 = vadd.f32 %v1236_v0, %v1174_v4  ;;  %v1184_v4 = vmul.f32 %v1679_v45, %v1679_v45 }
 0x12d   :  { %v1238_v11 = vadd.f32 %v1237_v9, %v1175_v6  ;;  %v1421_v12 = vpop.f32.mrb[28].mxu0  ;;  %v1106_v13 = vadd.f32 %v1418_v56, %v1105_v8  ;;  %v1913_v15 = vpop.f32.mrb[28].mxu1  ;;  %v1182_v56 = vmul.f32 %v1688_v47, %v1688_v47 }
 0x12e   :  { %659 = vst [vmem:[%s2052_s4 + $0xf0] sm:$0xff] %v1421_v12  ;;  %v486_v17 = vpop.f32.mrb[29].mxu0  ;;  %691 = vst [vmem:[%s2052_s4 + $0x1f0] sm:$0xff] %v1913_v15  ;;  %v1922_v18 = vpop.f32.mrb[29].mxu1  ;;  %v1179_v37 = vmul.f32 %v1421_v12, %v1421_v12 }
 0x12f   :  { %657 = vst [vmem:[%s2052_s4 + $0xe0] sm:$0xff] %v486_v17  ;;  %v1107_v19 = vadd.f32 %v1106_v13, %v486_v17  ;;  %v1177_v22 = vmul.f32 %v486_v17, %v486_v17  ;;  %v1239_v25 = vadd.f32 %v1238_v11, %v1176_v10  ;;  %v1422_v26 = vpop.f32.mrb[30].mxu0  ;;  %689 = vst [vmem:[%s2052_s4 + $0x1e0] sm:$0xff] %v1922_v18  ;;  %v1931_v27 = vpop.f32.mrb[30].mxu1 }
 0x130   :  { %660 = vst [vmem:[%s2052_s4 + $0xf8] sm:$0xff] %v1422_v26  ;;  %v489_v28 = vpop.f32.mrb[31].mxu0  ;;  %692 = vst [vmem:[%s2052_s4 + $0x1f8] sm:$0xff] %v1931_v27  ;;  %v1940_v30 = vpop.f32.mrb[31].mxu1  ;;  %v1180_v40 = vmul.f32 %v1422_v26, %v1422_v26 }
 0x131   :  { %v1240_v32 = vadd.f32 %v1239_v25, %v1177_v22  ;;  %658 = vst [vmem:[%s2052_s4 + $0xe8] sm:$0xff] %v489_v28  ;;  %v1108_v33 = vadd.f32 %v1107_v19, %v489_v28  ;;  %v1178_v35 = vmul.f32 %v489_v28, %v489_v28  ;;  %690 = vst [vmem:[%s2052_s4 + $0x1e8] sm:$0xff] %v1940_v30 }
 0x133   :  { %v1109_v38 = vadd.f32 %v1421_v12, %v1108_v33  ;;  %v1241_v39 = vadd.f32 %v1240_v32, %v1178_v35  ;;  %v1186_v12 = vmul.f32 %v1724_v3, %v1724_v3  ;;  %v1190_v32 = vmul.f32 %v1760_v23, %v1760_v23 }
 0x135   :  { %v1242_v44 = vadd.f32 %v1241_v39, %v1179_v37  ;;  %v1110_v48 = vadd.f32 %v1422_v26, %v1109_v38 }
 0x137   :  { %v1111_v51 = vadd.f32 %v1110_v48, %v1670_v43  ;;  %v1243_v53 = vadd.f32 %v1242_v44, %v1180_v40  ;;  %v1185_v43 = vmul.f32 %v1706_v60, %v1706_v60  ;;  %v1194_v48 = vmul.f32 %v1796_v46, %v1796_v46 }
 0x139   :  { %v1244_v54 = vadd.f32 %v1243_v53, %v1181_v49  ;;  %v1112_v55 = vadd.f32 %v1111_v51, %v1688_v47 }
 0x13b   :  { %v1113_v0 = vadd.f32 %v1661_v41, %v1112_v55  ;;  %v1245_v2 = vadd.f32 %v1244_v54, %v1182_v56  ;;  %v1187_v41 = vmul.f32 %v1697_v58, %v1697_v58 }
 0x13d   :  { %v1246_v6 = vadd.f32 %v1245_v2, %v1183_v61  ;;  %v1114_v8 = vadd.f32 %v1679_v45, %v1113_v0  ;;  %v1188_v45 = vmul.f32 %v1715_v1, %v1715_v1  ;;  %v1198_v0 = vmul.f32 %v1832_v7, %v1832_v7 }
 0x13f   :  { %v1115_v9 = vadd.f32 %v1114_v8, %v1706_v60  ;;  %v1247_v10 = vadd.f32 %v1246_v6, %v1184_v4  ;;  %v1189_v60 = vmul.f32 %v1742_v16, %v1742_v16 }
 0x141   :  { %v1248_v11 = vadd.f32 %v1247_v10, %v1185_v43  ;;  %v1116_v47 = vadd.f32 %v1115_v9, %v1724_v3 }
 0x143   :  { %v1117_v13 = vadd.f32 %v1697_v58, %v1116_v47  ;;  %v1249_v17 = vadd.f32 %v1248_v11, %v1186_v12  ;;  %v1191_v58 = vmul.f32 %v1733_v14, %v1733_v14  ;;  %v1202_v11 = vmul.f32 %v1868_v31, %v1868_v31 }
 0x145   :  { %v1250_v19 = vadd.f32 %v1249_v17, %v1187_v41  ;;  %v1118_v22 = vadd.f32 %v1715_v1, %v1117_v13  ;;  %v1192_v1 = vmul.f32 %v1751_v21, %v1751_v21 }
 0x147   :  { %v1119_v25 = vadd.f32 %v1118_v22, %v1742_v16  ;;  %v1251_v26 = vadd.f32 %v1250_v19, %v1188_v45  ;;  %v1193_v16 = vmul.f32 %v1778_v36, %v1778_v36  ;;  %v1206_v22 = vmul.f32 %v1904_v63, %v1904_v63 }
 0x149   :  { %v1252_v28 = vadd.f32 %v1251_v26, %v1189_v60  ;;  %v1120_v3 = vadd.f32 %v1119_v25, %v1760_v23 }
 0x14b   :  { %v1121_v33 = vadd.f32 %v1733_v14, %v1120_v3  ;;  %v1253_v35 = vadd.f32 %v1252_v28, %v1190_v32  ;;  %v1195_v14 = vmul.f32 %v1769_v34, %v1769_v34 }
 0x14d   :  { %v1254_v37 = vadd.f32 %v1253_v35, %v1191_v58  ;;  %v1122_v38 = vadd.f32 %v1751_v21, %v1121_v33  ;;  %v1196_v21 = vmul.f32 %v1787_v42, %v1787_v42  ;;  %v1210_v33 = vmul.f32 %v1940_v30, %v1940_v30 }
 0x14f   :  { %v1123_v39 = vadd.f32 %v1122_v38, %v1778_v36  ;;  %v1255_v40 = vadd.f32 %v1254_v37, %v1192_v1  ;;  %v1197_v36 = vmul.f32 %v1814_v62, %v1814_v62 }
 0x151   :  { %v1256_v44 = vadd.f32 %v1255_v40, %v1193_v16  ;;  %v1124_v23 = vadd.f32 %v1123_v39, %v1796_v46 }
 0x153   :  { %v1125_v49 = vadd.f32 %v1769_v34, %v1124_v23  ;;  %v1257_v51 = vadd.f32 %v1256_v44, %v1194_v48  ;;  %v1199_v34 = vmul.f32 %v1805_v59, %v1805_v59 }
 0x155   :  { %v1258_v53 = vadd.f32 %v1257_v51, %v1195_v14  ;;  %v1126_v54 = vadd.f32 %v1787_v42, %v1125_v49  ;;  %v1200_v42 = vmul.f32 %v1823_v5, %v1823_v5 }
 0x157   :  { %v1127_v55 = vadd.f32 %v1126_v54, %v1814_v62  ;;  %v1259_v56 = vadd.f32 %v1258_v53, %v1196_v21  ;;  %v1201_v62 = vmul.f32 %v1850_v24, %v1850_v24 }
 0x159   :  { %v1260_v61 = vadd.f32 %v1259_v56, %v1197_v36  ;;  %v1128_v46 = vadd.f32 %v1127_v55, %v1832_v7 }
 0x15b   :  { %v1129_v2 = vadd.f32 %v1805_v59, %v1128_v46  ;;  %v1261_v4 = vadd.f32 %v1260_v61, %v1198_v0  ;;  %v1203_v59 = vmul.f32 %v1841_v20, %v1841_v20 }
 0x15d   :  { %v1262_v6 = vadd.f32 %v1261_v4, %v1199_v34  ;;  %v1130_v8 = vadd.f32 %v1823_v5, %v1129_v2  ;;  %v1204_v5 = vmul.f32 %v1859_v29, %v1859_v29 }
 0x15f   :  { %v1131_v43 = vadd.f32 %v1130_v8, %v1850_v24  ;;  %v1263_v9 = vadd.f32 %v1262_v6, %v1200_v42  ;;  %v1205_v24 = vmul.f32 %v1886_v52, %v1886_v52 }
 0x161   :  { %v1264_v10 = vadd.f32 %v1263_v9, %v1201_v62  ;;  %v1132_v7 = vadd.f32 %v1131_v43, %v1868_v31 }
 0x163   :  { %v1133_v47 = vadd.f32 %v1841_v20, %v1132_v7  ;;  %v1265_v12 = vadd.f32 %v1264_v10, %v1202_v11  ;;  %v1207_v20 = vmul.f32 %v1877_v50, %v1877_v50 }
 0x165   :  { %v1266_v41 = vadd.f32 %v1265_v12, %v1203_v59  ;;  %v1134_v13 = vadd.f32 %v1859_v29, %v1133_v47  ;;  %v1208_v29 = vmul.f32 %v1895_v57, %v1895_v57 }
 0x167   :  { %v1135_v17 = vadd.f32 %v1134_v13, %v1886_v52  ;;  %v1267_v45 = vadd.f32 %v1266_v41, %v1204_v5  ;;  %v1209_v52 = vmul.f32 %v1922_v18, %v1922_v18 }
 0x169   :  { %v1268_v19 = vadd.f32 %v1267_v45, %v1205_v24  ;;  %v1136_v31 = vadd.f32 %v1135_v17, %v1904_v63 }
 0x16b   :  { %v1137_v60 = vadd.f32 %v1877_v50, %v1136_v31  ;;  %v1269_v25 = vadd.f32 %v1268_v19, %v1206_v22  ;;  %v1211_v50 = vmul.f32 %v1913_v15, %v1913_v15 }
 0x16d   :  { %v1270_v26 = vadd.f32 %v1269_v25, %v1207_v20  ;;  %v1138_v28 = vadd.f32 %v1895_v57, %v1137_v60  ;;  %v1212_v57 = vmul.f32 %v1931_v27, %v1931_v27 }
 0x16f   :  { %v1139_v3 = vadd.f32 %v1138_v28, %v1922_v18  ;;  %v1271_v32 = vadd.f32 %v1270_v26, %v1208_v29 }
 0x171   :  { %v1272_v58 = vadd.f32 %v1271_v32, %v1209_v52  ;;  %v1140_v63 = vadd.f32 %v1139_v3, %v1940_v30 }
 0x173   :  { %v1141_v35 = vadd.f32 %v1913_v15, %v1140_v63  ;;  %v1273_v1 = vadd.f32 %v1272_v58, %v1210_v33 }
 0x175   :  { %v1142_v37 = vadd.f32 %v1931_v27, %v1141_v35  ;;  %v1274_v38 = vadd.f32 %v1273_v1, %v1211_v50 }
 0x177   :  { %v1143_v18 = vrot.slane %v1142_v37, 4  ;;  %v1275_v16 = vadd.f32 %v1274_v38, %v1212_v57 }
 0x179   :  { %v1144_v39 = vadd.f32 %v1143_v18, %v1142_v37  ;;  %v1276_v40 = vrot.slane %v1275_v16, 4 }
 0x17b   :  { %v1145_v44 = vrot.slane %v1144_v39, 2  ;;  %v1277_v23 = vadd.f32 %v1276_v40, %v1275_v16 }
 0x17d   :  { %v1146_v48 = vadd.f32 %v1145_v44, %v1144_v39  ;;  %v1278_v30 = vrot.slane %v1277_v23, 2 }
 0x17f   :  { %v1147_v14 = vrot.slane %v1146_v48, 1  ;;  %v1279_v49 = vadd.f32 %v1278_v30, %v1277_v23 }
 0x181   :  { %v1280_v51 = vrot.slane %v1279_v49, 1  ;;  %v1148_v15 = vadd.f32 %v1147_v14, %v1146_v48 }
 0x183   :  { %v1281_v21 = vadd.f32 %v1280_v51, %v1279_v49 }
 0x185   :  { %v1283_v53 = vsel %vm1282_vm0, %v1148_v15, %v1281_v21 }
 0x186   :  { %v1285_v54 = vsel %vm1284_vm1, %v1283_v53, 0.0 }
 0x187   :  { %1286 = vst [vmem:[%s2053_s5] sm:$0xff] %v1285_v54 }

// kernel: a_call__.7
= control target key start
LH: loop header
LB: loop body
LE: loop exit
PB: predicated region body
PF: predicated region fallthrough
CT: control target
= control target key end

     0   :  { %vm440_vm0 = vcmask 1040384   ;;  %vm442_vm1 = vcmask 1041408   ;;  %s730_s1 = inlined_call_operand.vmem [shape: bf16[128,128], index: 1, kind: input, shape index: {}]   ;;  %s731_s0 = inlined_call_operand.vmem [shape: f32[128,128], index: 0, kind: input, shape index: {}]   ;;  %s732_s2 = inlined_call_operand.vmem [shape: f32[1,128], index: 2, kind: input, shape index: {}]   ;;  %s733_s3 = inlined_call_operand.vmem [shape: f32[1,128], index: 3, kind: input, shape index: {}]   ;;  %s734_s4 = inlined_call_operand.vmem [shape: f32[128,128], index: 4, kind: output, shape index: {0}]   ;;  %s735_s5 = inlined_call_operand.vmem [shape: f32[1,8,128], index: 5, kind: output, shape index: {1}]  }
   0x1   :  { %v527_v0 = vld [vmem:[%s730_s1] sm:$0xff]   ;;  %v528_v1 = vld [vmem:[%s730_s1 + $0x8] sm:$0xff]   ;;  %v529_v2 = vld [vmem:[%s730_s1 + $0x10] sm:$0xff]  }
   0x2   :  { %479 = vmatprep.subr.bf16.mxu0 %v527_v0  ;;  %511 = vmatprep.subr.bf16.mxu1 %v527_v0  ;;  %v530_v3 = vld [vmem:[%s730_s1 + $0x18] sm:$0xff]   ;;  %v20_v4 = vld [vmem:[%s731_s0] sm:$0xff]  ;;  %v21_v5 = vld [vmem:[%s731_s0 + $0x8] sm:$0xff] }
   0x3   :  { %480 = vmatpush3.bf16.msra.mxu0 %v527_v0  ;;  %519 = vmatpush3.bf16.msra.mxu1 %v527_v0  ;;  %v586_v6 = vld [vmem:[%s732_s2] ss:$0 sm:$0xff]  ;;  %v29_v16 = vld [vmem:[%s731_s0 + $0x48] sm:$0xff]  ;;  %v22_v18 = vld [vmem:[%s731_s0 + $0x10] sm:$0xff] }
   0x4   :  { %481 = vmatprep.subr.bf16.mxu0 %v528_v1  ;;  %512 = vmatprep.subr.bf16.mxu1 %v528_v1  ;;  %v43_v7 = vmul.f32 %v586_v6, %v20_v4  ;;  %v44_v8 = vmul.f32 %v586_v6, %v21_v5  ;;  %v593_v9 = vld [vmem:[%s733_s3] ss:$0 sm:$0xff]  ;;  %v532_v17 = vld [vmem:[%s730_s1 + $0x28] sm:$0xff]   ;;  %v23_v19 = vld [vmem:[%s731_s0 + $0x18] sm:$0xff]  ;;  %v52_v26 = vmul.f32 %v586_v6, %v29_v16 }
   0x5   :  { %v531_v12 = vld [vmem:[%s730_s1 + $0x20] sm:$0xff]   ;;  %v30_v23 = vld [vmem:[%s731_s0 + $0x50] sm:$0xff]  ;;  %v31_v24 = vld [vmem:[%s731_s0 + $0x58] sm:$0xff]  ;;  %v45_v29 = vmul.f32 %v586_v6, %v22_v18  ;;  %v46_v30 = vmul.f32 %v586_v6, %v23_v19 }
   0x6   :  { %v66_v10 = vadd.f32 %v593_v9, %v43_v7  ;;  %v67_v11 = vadd.f32 %v593_v9, %v44_v8  ;;  %v28_v13 = vld [vmem:[%s731_s0 + $0x40] sm:$0xff]  ;;  %v25_v25 = vld [vmem:[%s731_s0 + $0x28] sm:$0xff]  ;;  %v75_v33 = vadd.f32 %v593_v9, %v52_v26  ;;  %v53_v34 = vmul.f32 %v586_v6, %v30_v23  ;;  %v533_v40 = vld [vmem:[%s730_s1 + $0x30] sm:$0xff]  }
   0x7   :  { %482 = vmatpush3.bf16.msra.mxu0 %v528_v1  ;;  %520 = vmatpush3.bf16.msra.mxu1 %v528_v1  ;;  %v24_v21 = vld [vmem:[%s731_s0 + $0x20] sm:$0xff]  ;;  %v51_v22 = vmul.f32 %v586_v6, %v28_v13  ;;  %v33_v28 = vld [vmem:[%s731_s0 + $0x68] sm:$0xff]  ;;  %v54_v35 = vmul.f32 %v586_v6, %v31_v24  ;;  %v48_v36 = vmul.f32 %v586_v6, %v25_v25  ;;  %v26_v45 = vld [vmem:[%s731_s0 + $0x30] sm:$0xff] }
   0x8   :  { %483 = vmatprep.subr.bf16.mxu0 %v529_v2  ;;  %513 = vmatprep.subr.bf16.mxu1 %v529_v2  ;;  %v82_v14 = vmax.f32 %v66_v10, 0.0  ;;  %v83_v15 = vmax.f32 %v67_v11, 0.0  ;;  %v32_v27 = vld [vmem:[%s731_s0 + $0x60] sm:$0xff]  ;;  %v47_v32 = vmul.f32 %v586_v6, %v24_v21  ;;  %v56_v39 = vmul.f32 %v586_v6, %v33_v28  ;;  %v27_v46 = vld [vmem:[%s731_s0 + $0x38] sm:$0xff]  ;;  %v34_v53 = vld [vmem:[%s731_s0 + $0x70] sm:$0xff] }
   0x9   :  { %v74_v31 = vadd.f32 %v593_v9, %v51_v22  ;;  %v55_v38 = vmul.f32 %v586_v6, %v32_v27  ;;  %v91_v41 = vmax.f32 %v75_v33, 0.0  ;;  %v68_v42 = vadd.f32 %v593_v9, %v45_v29  ;;  %v35_v54 = vld [vmem:[%s731_s0 + $0x78] sm:$0xff] }
   0xa   :  { %v98_v20 = vpack.c.bf16 %v83_v15, %v82_v14  ;;  %v69_v43 = vadd.f32 %v593_v9, %v46_v30  ;;  %v70_v44 = vadd.f32 %v593_v9, %v47_v32  ;;  %v76_v48 = vadd.f32 %v593_v9, %v53_v34  ;;  %v534_v55 = vld [vmem:[%s730_s1 + $0x38] sm:$0xff]  }
   0xb   :  { %484 = vmatpush3.bf16.msra.mxu0 %v529_v2  ;;  %521 = vmatpush3.bf16.msra.mxu1 %v529_v2  ;;  %v90_v37 = vmax.f32 %v74_v31, 0.0  ;;  %v77_v49 = vadd.f32 %v593_v9, %v54_v35  ;;  %v71_v50 = vadd.f32 %v593_v9, %v48_v36  ;;  %v78_v51 = vadd.f32 %v593_v9, %v55_v38 }
   0xc   :  { %485 = vmatprep.subr.bf16.mxu0 %v530_v3  ;;  %514 = vmatprep.subr.bf16.mxu1 %v530_v3  ;;  %v79_v52 = vadd.f32 %v593_v9, %v56_v39  ;;  %v84_v56 = vmax.f32 %v68_v42, 0.0  ;;  %v85_v57 = vmax.f32 %v69_v43, 0.0  ;;  %v49_v58 = vmul.f32 %v586_v6, %v26_v45 }
   0xd   :  { %495 = vmatprep.mubr.bf16.mxu0 %v98_v20  ;;  %v102_v47 = vpack.c.bf16 %v91_v41, %v90_v37  ;;  %v50_v59 = vmul.f32 %v586_v6, %v27_v46  ;;  %v92_v60 = vmax.f32 %v76_v48, 0.0  ;;  %v93_v61 = vmax.f32 %v77_v49, 0.0 }
   0xe   :  { %v57_v62 = vmul.f32 %v586_v6, %v34_v53  ;;  %v58_v63 = vmul.f32 %v586_v6, %v35_v54  ;;  %v86_v0 = vmax.f32 %v70_v44, 0.0  ;;  %v87_v1 = vmax.f32 %v71_v50, 0.0 }
   0xf   :  { %486 = vmatpush3.bf16.msra.mxu0 %v530_v3  ;;  %522 = vmatpush3.bf16.msra.mxu1 %v530_v3  ;;  %v94_v2 = vmax.f32 %v78_v51, 0.0  ;;  %v95_v3 = vmax.f32 %v79_v52, 0.0  ;;  %v99_v4 = vpack.c.bf16 %v85_v57, %v84_v56  ;;  %v72_v5 = vadd.f32 %v593_v9, %v49_v58 }
  0x10   :  { %487 = vmatprep.subr.bf16.mxu0 %v531_v12  ;;  %515 = vmatprep.subr.bf16.mxu1 %v531_v12  ;;  %v73_v7 = vadd.f32 %v593_v9, %v50_v59  ;;  %v103_v8 = vpack.c.bf16 %v93_v61, %v92_v60  ;;  %v80_v10 = vadd.f32 %v593_v9, %v57_v62 }
  0x11   :  { %503 = vmatprep.mubr.bf16.mxu1 %v102_v47  ;;  %v81_v11 = vadd.f32 %v593_v9, %v58_v63  ;;  %v100_v6 = vpack.c.bf16 %v87_v1, %v86_v0  ;;  %v88_v13 = vmax.f32 %v72_v5, 0.0 }
  0x12   :  { %v89_v14 = vmax.f32 %v73_v7, 0.0  ;;  %v96_v15 = vmax.f32 %v80_v10, 0.0 }
  0x13   :  { %488 = vmatpush3.bf16.msra.mxu0 %v531_v12  ;;  %523 = vmatpush3.bf16.msra.mxu1 %v531_v12  ;;  %v104_v12 = vpack.c.bf16 %v95_v3, %v94_v2  ;;  %v97_v16 = vmax.f32 %v81_v11, 0.0 }
  0x14   :  { %489 = vmatprep.subr.bf16.mxu0 %v532_v17  ;;  %516 = vmatprep.subr.bf16.mxu1 %v532_v17 }
  0x15   :  { %v105_v18 = vpack.c.bf16 %v97_v16, %v96_v15 }
  0x17   :  { %490 = vmatpush3.bf16.msra.mxu0 %v532_v17  ;;  %524 = vmatpush3.bf16.msra.mxu1 %v532_v17  ;;  %v101_v17 = vpack.c.bf16 %v89_v14, %v88_v13 }
  0x18   :  { %491 = vmatprep.subr.bf16.mxu0 %v533_v40  ;;  %517 = vmatprep.subr.bf16.mxu1 %v533_v40 }
  0x1b   :  { %492 = vmatpush3.bf16.msra.mxu0 %v533_v40  ;;  %525 = vmatpush3.bf16.msra.mxu1 %v533_v40 }
  0x1c   :  { %493 = vmatprep.subr.bf16.mxu0 %v534_v55  ;;  %518 = vmatprep.subr.bf16.mxu1 %v534_v55 }
  0x1f   :  { %494 = vmatpush3.bf16.msra.mxu0 %v534_v55  ;;  %526 = vmatpush3.bf16.msra.mxu1 %v534_v55 }
  0x22   :  { %496 = vmatmul.mubr.bf16.vlgmr.msra.gmra.mrb[0].mxu0 %v99_v4  ;;  %504 = vmatmul.mubr.bf16.vlgmr.msra.gmra.mrb[0].mxu1 %v103_v8 }
  0x23   :  { %499 = vmatprep.mubr.bf16.mxu0 %v100_v6  ;;  %507 = vmatprep.mubr.bf16.mxu1 %v104_v12 }
  0x2a   :  { %500 = vmatmul.mubr.bf16.gmra.mrb[4].mxu0 %v101_v17  ;;  %508 = vmatmul.mubr.bf16.gmra.mrb[4].mxu1 %v105_v18 }
  0xf5   :  { %v497_v19 = vpop.f32.mrb[0].mxu0  ;;  %v505_v20 = vpop.f32.mrb[0].mxu1 }
  0xf6   :  { %269 = vst [vmem:[%s734_s4 + $0x10] sm:$0xff] %v497_v19  ;;  %v204_v9 = vpop.f32.mrb[1].mxu0  ;;  %277 = vst [vmem:[%s734_s4 + $0x50] sm:$0xff] %v505_v20  ;;  %v236_v21 = vpop.f32.mrb[1].mxu1  ;;  %v405_v29 = vmul.f32 %v497_v19, %v497_v19  ;;  %v413_v61 = vmul.f32 %v505_v20, %v505_v20 }
  0xf7   :  { %267 = vst [vmem:[%s734_s4] sm:$0xff] %v204_v9  ;;  %v498_v22 = vpop.f32.mrb[2].mxu0  ;;  %275 = vst [vmem:[%s734_s4 + $0x40] sm:$0xff] %v236_v21  ;;  %v506_v23 = vpop.f32.mrb[2].mxu1  ;;  %v403_v26 = vmul.f32 %v204_v9, %v204_v9  ;;  %v411_v55 = vmul.f32 %v236_v21, %v236_v21 }
  0xf8   :  { %270 = vst [vmem:[%s734_s4 + $0x18] sm:$0xff] %v498_v22  ;;  %v207_v24 = vpop.f32.mrb[3].mxu0  ;;  %278 = vst [vmem:[%s734_s4 + $0x58] sm:$0xff] %v506_v23  ;;  %v239_v25 = vpop.f32.mrb[3].mxu1  ;;  %v406_v32 = vmul.f32 %v498_v22, %v498_v22  ;;  %v414_v0 = vmul.f32 %v506_v23, %v506_v23 }
  0xf9   :  { %268 = vst [vmem:[%s734_s4 + $0x8] sm:$0xff] %v207_v24  ;;  %v382_v27 = vadd.f32 %v207_v24, %v204_v9  ;;  %v404_v28 = vmul.f32 %v207_v24, %v207_v24  ;;  %276 = vst [vmem:[%s734_s4 + $0x48] sm:$0xff] %v239_v25  ;;  %v412_v60 = vmul.f32 %v239_v25, %v239_v25 }
  0xfb   :  { %v383_v30 = vadd.f32 %v497_v19, %v382_v27  ;;  %v419_v31 = vadd.f32 %v404_v28, %v403_v26 }
  0xfd   :  { %v420_v33 = vadd.f32 %v419_v31, %v405_v29  ;;  %v501_v34 = vpop.f32.mrb[4].mxu0  ;;  %v384_v35 = vadd.f32 %v498_v22, %v383_v30  ;;  %v509_v36 = vpop.f32.mrb[4].mxu1 }
  0xfe   :  { %273 = vst [vmem:[%s734_s4 + $0x30] sm:$0xff] %v501_v34  ;;  %v220_v37 = vpop.f32.mrb[5].mxu0  ;;  %281 = vst [vmem:[%s734_s4 + $0x70] sm:$0xff] %v509_v36  ;;  %v252_v38 = vpop.f32.mrb[5].mxu1  ;;  %v409_v49 = vmul.f32 %v501_v34, %v501_v34  ;;  %v417_v11 = vmul.f32 %v509_v36, %v509_v36 }
  0xff   :  { %271 = vst [vmem:[%s734_s4 + $0x20] sm:$0xff] %v220_v37  ;;  %v385_v39 = vadd.f32 %v384_v35, %v220_v37  ;;  %v407_v40 = vmul.f32 %v220_v37, %v220_v37  ;;  %v421_v41 = vadd.f32 %v420_v33, %v406_v32  ;;  %v502_v42 = vpop.f32.mrb[6].mxu0  ;;  %279 = vst [vmem:[%s734_s4 + $0x60] sm:$0xff] %v252_v38  ;;  %v510_v43 = vpop.f32.mrb[6].mxu1 }
 0x100   :  { %274 = vst [vmem:[%s734_s4 + $0x38] sm:$0xff] %v502_v42  ;;  %v223_v44 = vpop.f32.mrb[7].mxu0  ;;  %282 = vst [vmem:[%s734_s4 + $0x78] sm:$0xff] %v510_v43  ;;  %v255_v45 = vpop.f32.mrb[7].mxu1  ;;  %v410_v52 = vmul.f32 %v502_v42, %v502_v42  ;;  %v415_v3 = vmul.f32 %v252_v38, %v252_v38  ;;  %v418_v13 = vmul.f32 %v510_v43, %v510_v43 }
 0x101   :  { %v422_v46 = vadd.f32 %v421_v41, %v407_v40  ;;  %272 = vst [vmem:[%s734_s4 + $0x28] sm:$0xff] %v223_v44  ;;  %v386_v47 = vadd.f32 %v385_v39, %v223_v44  ;;  %v408_v48 = vmul.f32 %v223_v44, %v223_v44  ;;  %280 = vst [vmem:[%s734_s4 + $0x68] sm:$0xff] %v255_v45 }
 0x102   :  { %v416_v10 = vmul.f32 %v255_v45, %v255_v45 }
 0x103   :  { %v387_v50 = vadd.f32 %v501_v34, %v386_v47  ;;  %v423_v51 = vadd.f32 %v422_v46, %v408_v48 }
 0x105   :  { %v424_v53 = vadd.f32 %v423_v51, %v409_v49  ;;  %v388_v54 = vadd.f32 %v502_v42, %v387_v50 }
 0x107   :  { %v389_v56 = vadd.f32 %v388_v54, %v236_v21  ;;  %v425_v57 = vadd.f32 %v424_v53, %v410_v52 }
 0x109   :  { %v426_v58 = vadd.f32 %v425_v57, %v411_v55  ;;  %v390_v59 = vadd.f32 %v389_v56, %v239_v25 }
 0x10b   :  { %v391_v62 = vadd.f32 %v505_v20, %v390_v59  ;;  %v427_v63 = vadd.f32 %v426_v58, %v412_v60 }
 0x10d   :  { %v428_v1 = vadd.f32 %v427_v63, %v413_v61  ;;  %v392_v2 = vadd.f32 %v506_v23, %v391_v62 }
 0x10f   :  { %v393_v4 = vadd.f32 %v392_v2, %v252_v38  ;;  %v429_v5 = vadd.f32 %v428_v1, %v414_v0 }
 0x111   :  { %v430_v7 = vadd.f32 %v429_v5, %v415_v3  ;;  %v394_v8 = vadd.f32 %v393_v4, %v255_v45 }
 0x113   :  { %v395_v6 = vadd.f32 %v509_v36, %v394_v8  ;;  %v431_v12 = vadd.f32 %v430_v7, %v416_v10 }
 0x115   :  { %v396_v14 = vadd.f32 %v510_v43, %v395_v6  ;;  %v432_v15 = vadd.f32 %v431_v12, %v417_v11 }
 0x117   :  { %v397_v16 = vrot.slane %v396_v14, 4  ;;  %v433_v17 = vadd.f32 %v432_v15, %v418_v13 }
 0x119   :  { %v398_v18 = vadd.f32 %v397_v16, %v396_v14  ;;  %v434_v19 = vrot.slane %v433_v17, 4 }
 0x11b   :  { %v399_v20 = vrot.slane %v398_v18, 2  ;;  %v435_v9 = vadd.f32 %v434_v19, %v433_v17 }
 0x11d   :  { %v400_v21 = vadd.f32 %v399_v20, %v398_v18  ;;  %v436_v22 = vrot.slane %v435_v9, 2 }
 0x11f   :  { %v401_v23 = vrot.slane %v400_v21, 1  ;;  %v437_v24 = vadd.f32 %v436_v22, %v435_v9 }
 0x121   :  { %v438_v25 = vrot.slane %v437_v24, 1  ;;  %v402_v26 = vadd.f32 %v401_v23, %v400_v21 }
 0x123   :  { %v439_v27 = vadd.f32 %v438_v25, %v437_v24 }
 0x125   :  { %v441_v28 = vsel %vm440_vm0, %v402_v26, %v439_v27 }
 0x126   :  { %v443_v29 = vsel %vm442_vm1, %v441_v28, 0.0 }
 0x127   :  { %444 = vst [vmem:[%s735_s5] sm:$0xff] %v443_v29 }

// kernel: a_call__.6
= control target key start
LH: loop header
LB: loop body
LE: loop exit
PB: predicated region body
PF: predicated region fallthrough
CT: control target
= control target key end

     0   :  { %s3030_s12 = smov 0   ;;  %s3399_s0 = inlined_call_operand.vmem [shape: bf16[2,36,9,128], index: 0, kind: input, shape index: {}]   ;;  %s3400_s1 = inlined_call_operand.vmem [shape: bf16[3,3,128,128], index: 1, kind: input, shape index: {}]   ;;  %s3401_s2 = inlined_call_operand.vmem [shape: f32[2,64,128], index: 2, kind: output, shape index: {0}]   ;;  %s3402_s3 = inlined_call_operand.vmem [shape: f32[2,8,128], index: 3, kind: output, shape index: {1}]  }
   0x1 LB: > { %s2173_s13 = sadd.s32 4294967295, %s3008_s12   ;;  %p2177_p0 = scmp.ge.s32.totalorder %s3008_s12, 1  ;;  %s3008_s12 = sphi %s3030_s12, %s14_s12  }
   0x2   : > { %p140_p1 = scmp.lt.s32.totalorder %s3008_s12, 3 }
   0x4   : > { %p141_p2 = pnand %p2177_p0, %p140_p1 }
   0x5   : > { %v2906_v0 = vld [vmem:[%s3400_s1 + $0x40] sm:$0xff] (!%p141_p2)   ;;  %p168_p3 = scmp.lt.s32.totalorder (!%p141_p2), %s2173_s13, 1  ;;  %v2908_v2 = vld [vmem:[%s3400_s1 + $0x48] sm:$0xff] (!%p141_p2)   ;;  %v2910_v4 = vld [vmem:[%s3400_s1 + $0x50] sm:$0xff] (!%p141_p2)   ;;  %vm523_vm0 = vsmask.f32 (!%p141_p2), 3328 }
   0x6   : > { %144 = sbr.rel (%p141_p2) target bundleno = 415 (0x19f), region = 28  ;;  %v2907_v1 = vld [vmem:[%s3400_s1 + $0x100] sm:$0xff] (!%p141_p2)   ;;  %2601 = vmatprep.subr.bf16.mxu1 (!%p141_p2), %v2906_v0  ;;  %v2909_v3 = vld [vmem:[%s3400_s1 + $0x108] sm:$0xff] (!%p141_p2)   ;;  %v2911_v5 = vld [vmem:[%s3400_s1 + $0x110] sm:$0xff] (!%p141_p2)   ;;  %vm524_vm1 = vsmask.f32 (!%p141_p2), 7440 }
   0x7   : > { %2697 = vmatprep.subr.bf16.mxu0 (!%p141_p2), %v2907_v1  ;;  %2602 = vmatpush3.bf16.msra.mxu1 (!%p141_p2), %v2906_v0  ;;  %v2912_v6 = vld [vmem:[%s3400_s1 + $0x58] sm:$0xff] (!%p141_p2)   ;;  %v2914_v8 = vld [vmem:[%s3400_s1 + $0x60] sm:$0xff] (!%p141_p2)   ;;  %v2916_v10 = vld [vmem:[%s3400_s1 + $0x68] sm:$0xff] (!%p141_p2)   ;;  %vm2082_vm3 = vcmask (!%p141_p2), 1040384   ;;  %vm2084_vm4 = vcmask (!%p141_p2), 1041408  }
   0x8   : > { %2698 = vmatpush3.bf16.msra.mxu0 (!%p141_p2), %v2907_v1  ;;  %2603 = vmatprep.subr.bf16.mxu1 (!%p141_p2), %v2908_v2  ;;  %v2913_v7 = vld [vmem:[%s3400_s1 + $0x118] sm:$0xff] (!%p141_p2)   ;;  %v2915_v9 = vld [vmem:[%s3400_s1 + $0x120] sm:$0xff] (!%p141_p2)   ;;  %v2917_v12 = vld [vmem:[%s3400_s1 + $0x128] sm:$0xff] (!%p141_p2)  }
   0x9   : > { %2699 = vmatprep.subr.bf16.mxu0 (!%p141_p2), %v2909_v3  ;;  %v2918_v14 = vld [vmem:[%s3400_s1 + $0x70] sm:$0xff] (!%p141_p2)   ;;  %v2920_v16 = vld [vmem:[%s3400_s1 + $0x78] sm:$0xff] (!%p141_p2)   ;;  %v2923_v18 = vld [vmem:[%s3400_s1] sm:$0xff] (!%p141_p2)  }
   0xa   : > { %v2919_v15 = vld [vmem:[%s3400_s1 + $0x130] sm:$0xff] (!%p141_p2)   ;;  %v2921_v17 = vld [vmem:[%s3400_s1 + $0x138] sm:$0xff] (!%p141_p2)   ;;  %v2925_v19 = vld [vmem:[%s3400_s1 + $0x140] sm:$0xff] (!%p141_p2)  }
   0xb   : > { %2604 = vmatpush3.bf16.msra.mxu1 (!%p141_p2), %v2908_v2  ;;  %v2928_v22 = vld [vmem:[%s3400_s1 + $0x8] sm:$0xff] (!%p141_p2)   ;;  %v2930_v26 = vld [vmem:[%s3400_s1 + $0x10] sm:$0xff] (!%p141_p2)   ;;  %v2932_v28 = vld [vmem:[%s3400_s1 + $0x18] sm:$0xff] (!%p141_p2)  }
   0xc   : > { %2700 = vmatpush3.bf16.msra.mxu0 (!%p141_p2), %v2909_v3  ;;  %2605 = vmatprep.subr.bf16.mxu1 (!%p141_p2), %v2910_v4  ;;  %v2929_v23 = vld [vmem:[%s3400_s1 + $0x148] sm:$0xff] (!%p141_p2)   ;;  %v2931_v27 = vld [vmem:[%s3400_s1 + $0x150] sm:$0xff] (!%p141_p2)   ;;  %v2933_v31 = vld [vmem:[%s3400_s1 + $0x158] sm:$0xff] (!%p141_p2)  }
   0xd   : > { %s3406_s13 = smov (!%p168_p3, %s2173_s13), 1  ;;  %2701 = vmatprep.subr.bf16.mxu0 %v2911_v5  ;;  %v2934_v38 = vld [vmem:[%s3400_s1 + $0x20] sm:$0xff]   ;;  %v2936_v47 = vld [vmem:[%s3400_s1 + $0x28] sm:$0xff]   ;;  %vm3145_vm2 = vmor %vm523_vm0, %vm524_vm1 }
   0xe   : > { %s2897_s30 = smul.u32 288, %s3406_s13  ;;  %v2935_v43 = vld [vmem:[%s3400_s1 + $0x160] sm:$0xff]   ;;  %v2937_v50 = vld [vmem:[%s3400_s1 + $0x168] sm:$0xff]   ;;  %v2939_v2 = vld [vmem:[%s3400_s1 + $0x30] sm:$0xff]   ;;  %s2492_s16 = sshll.u32 %s3406_s13, 6 }
   0xf   : > { %2606 = vmatpush3.bf16.msra.mxu1 %v2910_v4  ;;  %s177_s19 = scalar_lea.vmem %s3401_s2, %s2492_s16  ;;  %s2181_s20 = sshll.u32 %s3406_s13, 3 }
  0x10   : > { %2702 = vmatpush3.bf16.msra.mxu0 %v2911_v5  ;;  %2607 = vmatprep.subr.bf16.mxu1 %v2912_v6  ;;  %s3074_s10 = scalar_lea.vmem %s3399_s0, %s2897_s30  ;;  %s181_s23 = scalar_lea.vmem %s3402_s3, %s2181_s20 }
  0x11   : > { %2703 = vmatprep.subr.bf16.mxu0 %v2913_v7  ;;  %v2922_v11 = vld [vmem:[%s3074_s10 + $0x48] ss:$8 sps:$4 sm:$0xff]   ;;  %v2924_v13 = vld [vmem:[%s3074_s10 + $0xd8] ss:$8 sps:$4 sm:$0xff]   ;;  %v2331_v34 = vld [vmem:[%s3074_s10 + $0x94] sm:$0x1] }
  0x12   : > { %2617 = vmatprep.mubr.bf16.mxu1 %v2922_v11  ;;  %2713 = vmatprep.mubr.bf16.mxu0 %v2924_v13  ;;  %v2926_v20 = vld [vmem:[%s3074_s10 + $0x58] ss:$8 sps:$4 sm:$0xff]   ;;  %v2927_v21 = vld [vmem:[%s3074_s10 + $0xe8] ss:$8 sps:$4 sm:$0xff]   ;;  %v2333_v39 = vld [vmem:[%s3074_s10 + $0x9c] sm:$0x1] }
  0x13   : > { %2608 = vmatpush3.bf16.msra.mxu1 %v2912_v6  ;;  %v2938_v24 = vld [vmem:[%s3074_s10 + $0x68] ss:$8 sps:$4 sm:$0xff]   ;;  %v2940_v25 = vld [vmem:[%s3074_s10 + $0xf8] ss:$8 sps:$4 sm:$0xff]   ;;  %v1160_v40 = vshll.u32 %v2331_v34, 16  ;;  %v1174_v46 = vshll.u32 %v2333_v39, 16 }
  0x14   : > { %2704 = vmatpush3.bf16.msra.mxu0 %v2913_v7  ;;  %2609 = vmatprep.subr.bf16.mxu1 %v2914_v8  ;;  %v2942_v29 = vld [vmem:[%s3074_s10 + $0x78] ss:$8 sps:$4 sm:$0xff]   ;;  %v2943_v30 = vld [vmem:[%s3074_s10 + $0x108] ss:$8 sps:$4 sm:$0xff]   ;;  %v2335_v57 = vld [vmem:[%s3074_s10 + $0xa4] sm:$0x1] }
  0x15   : > { %2705 = vmatprep.subr.bf16.mxu0 %v2915_v9  ;;  %v2946_v32 = vld [vmem:[%s3074_s10] ss:$8 sps:$4 sm:$0xff]   ;;  %v2330_v33 = vld [vmem:[%s3074_s10 + $0x90] sm:$0xf]  ;;  %v2332_v35 = vld [vmem:[%s3074_s10 + $0x98] sm:$0xf] }
  0x16   : > { %v1151_v36 = vshrl.u32 %v2330_v33, 16  ;;  %v1154_v37 = vshll.u32 %v2330_v33, 16  ;;  %v1165_v41 = vshrl.u32 %v2332_v35, 16  ;;  %v1168_v42 = vshll.u32 %v2332_v35, 16  ;;  %v2334_v56 = vld [vmem:[%s3074_s10 + $0xa0] sm:$0xf] }
  0x17   : > { %2610 = vmatpush3.bf16.msra.mxu1 %v2914_v8  ;;  %v1162_v52 = vrot.slane %v1160_v40, 5  ;;  %v1176_v55 = vrot.slane %v1174_v46, 5  ;;  %v2336_v59 = vld [vmem:[%s3074_s10 + $0xa8] sm:$0xf]  ;;  %v2337_v60 = vld [vmem:[%s3074_s10 + $0xac] sm:$0x1] }
  0x18   : > { %2706 = vmatpush3.bf16.msra.mxu0 %v2915_v9  ;;  %2611 = vmatprep.subr.bf16.mxu1 %v2916_v10  ;;  %v1153_v44 = vrot.slane %v1151_v36, 4  ;;  %v1156_v45 = vrot.slane %v1154_v37, 5  ;;  %v1167_v48 = vrot.slane %v1165_v41, 4  ;;  %v1170_v49 = vrot.slane %v1168_v42, 5  ;;  %v2941_v6 = vld [vmem:[%s3400_s1 + $0x170] sm:$0xff]  }
  0x19   : > { %2707 = vmatprep.subr.bf16.mxu0 %v2917_v12  ;;  %v1179_v61 = vshrl.u32 %v2334_v56, 16  ;;  %v1182_v63 = vshll.u32 %v2334_v56, 16  ;;  %v1188_v0 = vshll.u32 %v2335_v57, 16  ;;  %v1193_v1 = vshrl.u32 %v2336_v59, 16  ;;  %v2960_v37 = vld [vmem:[%s3074_s10 + $0x20] ss:$8 sps:$4 sm:$0xff]  }
  0x1a   : > { %v1157_v51 = vor.u32 %v1156_v45, %v1153_v44  ;;  %v1171_v54 = vor.u32 %v1170_v49, %v1167_v48  ;;  %v1196_v5 = vshll.u32 %v2336_v59, 16  ;;  %v2963_v48 = vld [vmem:[%s3074_s10 + $0x30] ss:$8 sps:$4 sm:$0xff]   ;;  %v2342_v49 = vld [vmem:[%s3074_s10 + $0xc0] sm:$0xf] }
  0x1b   : > { %2612 = vmatpush3.bf16.msra.mxu1 %v2916_v10  ;;  %v1181_v4 = vrot.slane %v1179_v61, 4  ;;  %v1184_v8 = vrot.slane %v1182_v63, 5  ;;  %v1195_v9 = vrot.slane %v1193_v1, 4  ;;  %v1202_v10 = vshll.u32 %v2337_v60, 16  ;;  %v2954_v59 = vld [vmem:[%s3400_s1 + $0x98] sm:$0xff]  }
  0x1c   : > { %2708 = vmatpush3.bf16.msra.mxu0 %v2917_v12  ;;  %2613 = vmatprep.subr.bf16.mxu1 %v2918_v14  ;;  %v1158_v58 = vrot.slane %v1157_v51, 4  ;;  %v1172_v62 = vrot.slane %v1171_v54, 4  ;;  %v1190_v12 = vrot.slane %v1188_v0, 5  ;;  %v1198_v13 = vrot.slane %v1196_v5, 5  ;;  %v2344_v51 = vld [vmem:[%s3074_s10 + $0xc8] sm:$0xf] }
  0x1d   : > { %2709 = vmatprep.subr.bf16.mxu0 %v2919_v15  ;;  %v1235_v56 = vshrl.u32 %v2342_v49, 16  ;;  %v1238_v57 = vshll.u32 %v2342_v49, 16  ;;  %v1249_v61 = vshrl.u32 %v2344_v51, 16 }
  0x1e   : > { %v1163_v3 = vsel %vm3145_vm2, %v1158_v58, %v1162_v52  ;;  %v1177_v7 = vsel %vm3145_vm2, %v1172_v62, %v1176_v55  ;;  %v2953_v52 = vld [vmem:[%s3400_s1 + $0x190] sm:$0xff]   ;;  %v2345_v55 = vld [vmem:[%s3074_s10 + $0xcc] sm:$0x1]  ;;  %v1252_v62 = vshll.u32 %v2344_v51, 16 }
  0x1f   : > { %2614 = vmatpush3.bf16.msra.mxu1 %v2918_v14  ;;  %v2362_v11 = vcombine.low %v1163_v3, %v1177_v7  ;;  %v2944_v14 = vld [vmem:[%s3400_s1 + $0x38] sm:$0xff]   ;;  %v1258_v63 = vshll.u32 %v2345_v55, 16  ;;  %v1237_v1 = vrot.slane %v1235_v56, 4 }
  0x20   : > { %2710 = vmatpush3.bf16.msra.mxu0 %v2919_v15  ;;  %2615 = vmatprep.subr.bf16.mxu1 %v2920_v16  ;;  %v1185_v15 = vor.u32 %v1184_v8, %v1181_v4  ;;  %v2955_v4 = vld [vmem:[%s3400_s1 + $0x198] sm:$0xff]   ;;  %v1254_v7 = vrot.slane %v1252_v62, 5 }
  0x21   : > { %2711 = vmatprep.subr.bf16.mxu0 %v2921_v17  ;;  %v1260_v8 = vrot.slane %v1258_v63, 5 }
  0x23   : > { %2616 = vmatpush3.bf16.msra.mxu1 %v2920_v16  ;;  %v1199_v16 = vor.u32 %v1198_v13, %v1195_v9  ;;  %v2956_v13 = vld [vmem:[%s3400_s1 + $0xa0] sm:$0xff]  }
  0x24   : > { %2712 = vmatpush3.bf16.msra.mxu0 %v2921_v17  ;;  %2625 = vmatprep.subr.bf16.mxu1 %v2923_v18  ;;  %v1186_v17 = vrot.slane %v1185_v15, 4 }
  0x25   : > { %2721 = vmatprep.subr.bf16.mxu0 %v2925_v19 }
  0x26   : > { %2618 = vmatmul.mubr.bf16.vlgmr.msra.gmra.mrb[0].mxu1 %v2926_v20  ;;  %v1200_v20 = vrot.slane %v1199_v16, 4  ;;  %v509_v16 = vld [vmem:[%s3074_s10 + $0x8] sm:$0xf] }
  0x27   : > { %2626 = vmatpush3.bf16.msra.mxu1 %v2923_v18  ;;  %2714 = vmatmul.mubr.bf16.vlgmr.msra.gmra.mrb[0].mxu0 %v2927_v21  ;;  %v1204_v18 = vrot.slane %v1202_v10, 5  ;;  %v2947_v21 = vld [vmem:[%s3400_s1 + $0x80] sm:$0xff]  }
  0x28   : > { %2722 = vmatpush3.bf16.msra.mxu0 %v2925_v19  ;;  %2627 = vmatprep.subr.bf16.mxu1 %v2928_v22  ;;  %v2945_v19 = vld [vmem:[%s3400_s1 + $0x178] sm:$0xff]  }
  0x29   : > { %2723 = vmatprep.subr.bf16.mxu0 %v2929_v23  ;;  %2621 = vmatprep.mubr.bf16.mxu1 %v2938_v24  ;;  %v2948_v24 = vld [vmem:[%s3400_s1 + $0x180] sm:$0xff]  }
  0x2a   : > { %2717 = vmatprep.mubr.bf16.mxu0 %v2940_v25  ;;  %v2949_v25 = vld [vmem:[%s3074_s10 + $0x10] ss:$8 sps:$4 sm:$0xff]  }
  0x2b   : > { %2628 = vmatpush3.bf16.msra.mxu1 %v2928_v22  ;;  %v1191_v22 = vsel %vm3145_vm2, %v1186_v17, %v1190_v12  ;;  %v508_v12 = vld [vmem:[%s3074_s10 + $0x4] sm:$0x1]  ;;  %v510_v17 = vld [vmem:[%s3074_s10 + $0xc] sm:$0x1] }
  0x2c   : > { %2724 = vmatpush3.bf16.msra.mxu0 %v2929_v23  ;;  %2629 = vmatprep.subr.bf16.mxu1 %v2930_v26  ;;  %v1205_v23 = vsel %vm3145_vm2, %v1200_v20, %v1204_v18 }
  0x2d   : > { %2725 = vmatprep.subr.bf16.mxu0 %v2931_v27 }
  0x2e   : > { %2622 = vmatmul.mubr.bf16.gmra.mrb[4].mxu1 %v2942_v29  ;;  %v2951_v29 = vld [vmem:[%s3400_s1 + $0x188] sm:$0xff]  }
  0x2f   : > { %2630 = vmatpush3.bf16.msra.mxu1 %v2930_v26  ;;  %2718 = vmatmul.mubr.bf16.gmra.mrb[4].mxu0 %v2943_v30  ;;  %v2950_v26 = vld [vmem:[%s3400_s1 + $0x88] sm:$0xff]   ;;  %v2339_v30 = vld [vmem:[%s3074_s10 + $0xb4] sm:$0x1] }
  0x30   : > { %2726 = vmatpush3.bf16.msra.mxu0 %v2931_v27  ;;  %2631 = vmatprep.subr.bf16.mxu1 %v2932_v28  ;;  %v2338_v27 = vld [vmem:[%s3074_s10 + $0xb0] sm:$0xf]  ;;  %v1216_v35 = vshll.u32 %v2339_v30, 16 }
  0x31   : > { %2727 = vmatprep.subr.bf16.mxu0 %v2933_v31  ;;  %2641 = vmatprep.mubr.bf16.mxu1 %v2946_v32  ;;  %v2341_v32 = vld [vmem:[%s3074_s10 + $0xbc] sm:$0x1]  ;;  %v1207_v33 = vshrl.u32 %v2338_v27, 16  ;;  %v1210_v34 = vshll.u32 %v2338_v27, 16  ;;  %v550_v27 = vshll.u32 %v510_v17, 16 }
  0x32   : > { %2737 = vmatprep.mubr.bf16.mxu0 %v2362_v11  ;;  %v1230_v39 = vshll.u32 %v2341_v32, 16  ;;  %v1218_v44 = vrot.slane %v1216_v35, 5  ;;  %v507_v11 = vld [vmem:[%s3074_s10] sm:$0xf]  ;;  %v2958_v32 = vld [vmem:[%s3400_s1 + $0xa8] sm:$0xff]  }
  0x33   : > { %2632 = vmatpush3.bf16.msra.mxu1 %v2932_v28  ;;  %v2363_v28 = vcombine.low %v1191_v22, %v1205_v23  ;;  %v1209_v40 = vrot.slane %v1207_v33, 4  ;;  %v1212_v41 = vrot.slane %v1210_v34, 5  ;;  %v527_v18 = vshrl.u32 %v507_v11, 16  ;;  %v518_v17 = vld [vmem:[%s3074_s10 + $0x2c] sm:$0x1] }
  0x34   : > { %2728 = vmatpush3.bf16.msra.mxu0 %v2933_v31  ;;  %2633 = vmatprep.subr.bf16.mxu1 %v2934_v38  ;;  %v2340_v31 = vld [vmem:[%s3074_s10 + $0xb8] sm:$0xf]  ;;  %v1232_v46 = vrot.slane %v1230_v39, 5  ;;  %v541_v22 = vshrl.u32 %v509_v16, 16  ;;  %v544_v23 = vshll.u32 %v509_v16, 16 }
  0x35   : > { %2729 = vmatprep.subr.bf16.mxu0 %v2935_v43  ;;  %v1221_v36 = vshrl.u32 %v2340_v31, 16  ;;  %v517_v16 = vld [vmem:[%s3074_s10 + $0x28] sm:$0xf] }
  0x36   : > { %v543_v30 = vrot.slane %v541_v22, 4  ;;  %v597_v22 = vshrl.u32 %v517_v16, 16 }
  0x37   : > { %2634 = vmatpush3.bf16.msra.mxu1 %v2934_v38  ;;  %v1224_v38 = vshll.u32 %v2340_v31, 16  ;;  %v1223_v42 = vrot.slane %v1221_v36, 4  ;;  %v546_v31 = vrot.slane %v544_v23, 5  ;;  %v552_v36 = vrot.slane %v550_v27, 5 }
  0x38   : > { %2730 = vmatpush3.bf16.msra.mxu0 %v2935_v43  ;;  %2635 = vmatprep.subr.bf16.mxu1 %v2936_v47  ;;  %v2952_v43 = vld [vmem:[%s3400_s1 + $0x90] sm:$0xff]   ;;  %v600_v23 = vshll.u32 %v517_v16, 16  ;;  %v2447_v16 = vld [vmem:[%s3074_s10 + $0xc] sm:$0x1] }
  0x39   : > { %2731 = vmatprep.subr.bf16.mxu0 %v2937_v50  ;;  %v1226_v45 = vrot.slane %v1224_v38, 5  ;;  %v2959_v38 = vld [vmem:[%s3400_s1 + $0x1a8] sm:$0xff]  }
  0x3b   : > { %2636 = vmatpush3.bf16.msra.mxu1 %v2936_v47  ;;  %v1213_v47 = vor.u32 %v1212_v41, %v1209_v40  ;;  %v1227_v54 = vor.u32 %v1226_v45, %v1223_v42  ;;  %v547_v40 = vor.u32 %v546_v31, %v543_v30  ;;  %v511_v41 = vld [vmem:[%s3074_s10 + $0x10] sm:$0xf]  ;;  %v602_v31 = vrot.slane %v600_v23, 5 }
  0x3c   : > { %2732 = vmatpush3.bf16.msra.mxu0 %v2937_v50  ;;  %2637 = vmatprep.subr.bf16.mxu1 %v2939_v2  ;;  %v2343_v50 = vld [vmem:[%s3074_s10 + $0xc4] sm:$0x1]  ;;  %v555_v45 = vshrl.u32 %v511_v41, 16  ;;  %v519_v30 = vld [vmem:[%s3074_s10 + $0x30] sm:$0xf] }
  0x3d   : > { %2733 = vmatprep.subr.bf16.mxu0 %v2941_v6  ;;  %v1244_v58 = vshll.u32 %v2343_v50, 16  ;;  %v1214_v60 = vrot.slane %v1213_v47, 4  ;;  %v1228_v0 = vrot.slane %v1227_v54, 4  ;;  %v514_v47 = vld [vmem:[%s3074_s10 + $0x1c] sm:$0x1] }
  0x3f   : > { %2638 = vmatpush3.bf16.msra.mxu1 %v2939_v2  ;;  %v1240_v2 = vrot.slane %v1238_v57, 5  ;;  %v1246_v3 = vrot.slane %v1244_v58, 5  ;;  %v1219_v5 = vsel %vm3145_vm2, %v1214_v60, %v1218_v44  ;;  %v1233_v9 = vsel %vm3145_vm2, %v1228_v0, %v1232_v46  ;;  %v513_v44 = vld [vmem:[%s3074_s10 + $0x18] sm:$0xf]  ;;  %v2962_v60 = vld [vmem:[%s3400_s1 + $0x1b0] sm:$0xff]  }
  0x40   : > { %2734 = vmatpush3.bf16.msra.mxu0 %v2941_v6  ;;  %2639 = vmatprep.subr.bf16.mxu1 %v2944_v14  ;;  %v1251_v6 = vrot.slane %v1249_v61, 4  ;;  %v548_v46 = vrot.slane %v547_v40, 4  ;;  %v569_v50 = vshrl.u32 %v513_v44, 16  ;;  %v572_v54 = vshll.u32 %v513_v44, 16 }
  0x41   : > { %2735 = vmatprep.subr.bf16.mxu0 %v2945_v19  ;;  %v1241_v10 = vor.u32 %v1240_v2, %v1237_v1  ;;  %v578_v58 = vshll.u32 %v514_v47, 16 }
  0x42   : > { %v1255_v15 = vor.u32 %v1254_v7, %v1251_v6  ;;  %v553_v55 = vsel %vm3145_vm2, %v548_v46, %v552_v36  ;;  %v571_v57 = vrot.slane %v569_v50, 4  ;;  %v574_v63 = vrot.slane %v572_v54, 5  ;;  %v2965_v6 = vld [vmem:[%s3400_s1 + $0x1b8] sm:$0xff]   ;;  %v2966_v7 = vld [vmem:[%s3400_s1 + $0xc0] sm:$0xff]  }
  0x43   : > { %2640 = vmatpush3.bf16.msra.mxu1 %v2944_v14  ;;  %v2364_v14 = vcombine.low %v1219_v5, %v1233_v9  ;;  %v1242_v20 = vrot.slane %v1241_v10, 4  ;;  %v2968_v10 = vld [vmem:[%s3400_s1 + $0x1c0] sm:$0xff]   ;;  %v2974_v50 = vld [vmem:[%s3400_s1 + $0xd8] sm:$0xff]  }
  0x44   : > { %2736 = vmatpush3.bf16.msra.mxu0 %v2945_v19  ;;  %2649 = vmatprep.subr.bf16.mxu1 %v2947_v21  ;;  %v530_v19 = vshll.u32 %v507_v11, 16  ;;  %v575_v1 = vor.u32 %v574_v63, %v571_v57  ;;  %v2969_v11 = vld [vmem:[%s3074_s10 + $0x18] ss:$8 sps:$4 sm:$0xff]  }
  0x45   : > { %2745 = vmatprep.subr.bf16.mxu0 %v2948_v24 }
  0x46   : > { %2642 = vmatmul.mubr.bf16.vlgmr.msra.gmra.mrb[0].mxu1 %v2949_v25  ;;  %v529_v25 = vrot.slane %v527_v18, 4  ;;  %v576_v5 = vrot.slane %v575_v1, 4  ;;  %v2971_v18 = vld [vmem:[%s3400_s1 + $0x1c8] sm:$0xff]   ;;  %v2976_v1 = vld [vmem:[%s3400_s1 + $0xe0] sm:$0xff]  }
  0x47   : > { %2650 = vmatpush3.bf16.msra.mxu1 %v2947_v21  ;;  %2738 = vmatmul.mubr.bf16.vlgmr.msra.gmra.mrb[0].mxu0 %v2363_v28  ;;  %v536_v21 = vshll.u32 %v508_v12, 16  ;;  %v2957_v28 = vld [vmem:[%s3400_s1 + $0x1a0] sm:$0xff]  }
  0x48   : > { %2746 = vmatpush3.bf16.msra.mxu0 %v2948_v24  ;;  %2651 = vmatprep.subr.bf16.mxu1 %v2950_v26  ;;  %v1256_v24 = vrot.slane %v1255_v15, 4  ;;  %v515_v12 = vld [vmem:[%s3074_s10 + $0x20] sm:$0xf]  ;;  %v516_v15 = vld [vmem:[%s3074_s10 + $0x24] sm:$0x1] }
  0x49   : > { %2747 = vmatprep.subr.bf16.mxu0 %v2951_v29  ;;  %2645 = vmatprep.mubr.bf16.mxu1 %v2960_v37  ;;  %v538_v35 = vrot.slane %v536_v21, 5  ;;  %v2967_v37 = vld [vmem:[%s3074_s10 + $0x8] ss:$8 sps:$4 sm:$0xff]   ;;  %v592_v21 = vshll.u32 %v516_v15, 16 }
  0x4a   : > { %2741 = vmatprep.mubr.bf16.mxu0 %v2364_v14  ;;  %v1261_v33 = vsel %vm3145_vm2, %v1256_v24, %v1260_v8  ;;  %v2970_v14 = vld [vmem:[%s3400_s1 + $0xc8] sm:$0xff]   ;;  %v606_v24 = vshll.u32 %v518_v17, 16  ;;  %v2448_v17 = vld [vmem:[%s3074_s10 + $0x10] sm:$0xf] }
  0x4b   : > { %2652 = vmatpush3.bf16.msra.mxu1 %v2950_v26  ;;  %v532_v26 = vrot.slane %v530_v19, 5  ;;  %v583_v19 = vshrl.u32 %v515_v12, 16  ;;  %v2446_v15 = vld [vmem:[%s3074_s10 + $0x8] sm:$0xf]  ;;  %v1792_v23 = vshll.u32 %v2448_v17, 16 }
  0x4c   : > { %2748 = vmatpush3.bf16.msra.mxu0 %v2951_v29  ;;  %2653 = vmatprep.subr.bf16.mxu1 %v2952_v43  ;;  %v1247_v29 = vsel %vm3145_vm2, %v1242_v20, %v1246_v3  ;;  %v580_v3 = vrot.slane %v578_v58, 5  ;;  %v586_v20 = vshll.u32 %v515_v12, 16  ;;  %v2982_v58 = vld [vmem:[%s3074_s10 + $0x38] ss:$8 sps:$4 sm:$0xff]  }
  0x4d   : > { %2749 = vmatprep.subr.bf16.mxu0 %v2953_v52  ;;  %v533_v34 = vor.u32 %v532_v26, %v529_v25  ;;  %v2365_v39 = vcombine.low %v1247_v29, %v1261_v33  ;;  %v2980_v25 = vld [vmem:[%s3074_s10 + $0x28] ss:$8 sps:$4 sm:$0xff]   ;;  %v585_v26 = vrot.slane %v583_v19, 4  ;;  %v599_v29 = vrot.slane %v597_v22, 4  ;;  %v520_v33 = vld [vmem:[%s3074_s10 + $0x34] sm:$0x1] }
  0x4e   : > { %2646 = vmatmul.mubr.bf16.gmra.mrb[4].mxu1 %v2963_v48  ;;  %v558_v48 = vshll.u32 %v511_v41, 16  ;;  %v581_v9 = vsel %vm3145_vm2, %v576_v5, %v580_v3  ;;  %v588_v27 = vrot.slane %v586_v20, 5  ;;  %v620_v40 = vshll.u32 %v520_v33, 16  ;;  %v2973_v41 = vld [vmem:[%s3400_s1 + $0x1d0] sm:$0xff]   ;;  %v2977_v5 = vld [vmem:[%s3400_s1 + $0x1e0] sm:$0xff]   ;;  %v2984_v12 = vld [vmem:[%s3400_s1 + $0xf8] sm:$0xff]  }
  0x4f   : > { %2654 = vmatpush3.bf16.msra.mxu1 %v2952_v43  ;;  %v534_v42 = vrot.slane %v533_v34, 4  ;;  %v512_v43 = vld [vmem:[%s3074_s10 + $0x14] sm:$0x1]  ;;  %2742 = vmatmul.mubr.bf16.gmra.mrb[4].mxu0 %v2365_v39  ;;  %v521_v34 = vld [vmem:[%s3074_s10 + $0x38] sm:$0xf]  ;;  %v614_v39 = vshll.u32 %v519_v30, 16 }
  0x50   : > { %2750 = vmatpush3.bf16.msra.mxu0 %v2953_v52  ;;  %2655 = vmatprep.subr.bf16.mxu1 %v2954_v59  ;;  %v564_v49 = vshll.u32 %v512_v43, 16  ;;  %v557_v52 = vrot.slane %v555_v45, 4  ;;  %v560_v56 = vrot.slane %v558_v48, 5  ;;  %v589_v36 = vor.u32 %v588_v27, %v585_v26  ;;  %v2457_v33 = vld [vmem:[%s3074_s10 + $0x34] sm:$0x1] }
  0x51   : > { %2751 = vmatprep.subr.bf16.mxu0 %v2955_v4  ;;  %v539_v51 = vsel %vm3145_vm2, %v534_v42, %v538_v35  ;;  %2761 = vmatprep.mubr.bf16.mxu0 %v2967_v37  ;;  %v2972_v35 = vld [vmem:[%s3400_s1 + $0xd0] sm:$0xff]   ;;  %v522_v37 = vld [vmem:[%s3074_s10 + $0x3c] sm:$0x1]  ;;  %v603_v42 = vor.u32 %v602_v31, %v599_v29  ;;  %v625_v43 = vshrl.u32 %v521_v34, 16  ;;  %v628_v44 = vshll.u32 %v521_v34, 16 }
  0x52   : > { %v2246_v61 = vcombine.low %v539_v51, %v553_v55  ;;  %v566_v62 = vrot.slane %v564_v49, 5  ;;  %v561_v0 = vor.u32 %v560_v56, %v557_v52  ;;  %v634_v45 = vshll.u32 %v522_v37, 16  ;;  %v2456_v29 = vld [vmem:[%s3074_s10 + $0x30] sm:$0xf]  ;;  %v2989_v34 = vld [vmem:[%s3074_s10 + $0x60] ss:$8 sps:$4 sm:$0xff]  }
  0x53   : > { %2656 = vmatpush3.bf16.msra.mxu1 %v2954_v59  ;;  %v2961_v59 = vld [vmem:[%s3400_s1 + $0xb0] sm:$0xff]   ;;  %v590_v46 = vrot.slane %v589_v36, 4  ;;  %v616_v48 = vrot.slane %v614_v39, 5  ;;  %v622_v49 = vrot.slane %v620_v40, 5  ;;  %v604_v51 = vrot.slane %v603_v42, 4  ;;  %v2991_v39 = vld [vmem:[%s3400_s1 + $0x208] sm:$0xff]  }
  0x54   : > { %2752 = vmatpush3.bf16.msra.mxu0 %v2955_v4  ;;  %2657 = vmatprep.subr.bf16.mxu1 %v2956_v13  ;;  %v562_v2 = vrot.slane %v561_v0, 4  ;;  %v2964_v4 = vld [vmem:[%s3400_s1 + $0xb8] sm:$0xff]   ;;  %v627_v52 = vrot.slane %v625_v43, 4  ;;  %v630_v54 = vrot.slane %v628_v44, 5  ;;  %v636_v55 = vrot.slane %v634_v45, 5 }
  0x55   : > { %2753 = vmatprep.subr.bf16.mxu0 %v2957_v28  ;;  %2665 = vmatprep.mubr.bf16.mxu1 %v2246_v61  ;;  %v2975_v61 = vld [vmem:[%s3400_s1 + $0x1d8] sm:$0xff]   ;;  %v1775_v19 = vshrl.u32 %v2446_v15, 16  ;;  %v1778_v20 = vshll.u32 %v2446_v15, 16  ;;  %v1789_v22 = vshrl.u32 %v2448_v17, 16  ;;  %v1848_v42 = vshll.u32 %v2456_v29, 16  ;;  %v2998_v15 = vld [vmem:[%s3400_s1 + $0x220] sm:$0xff]  }
  0x56   : > { %v567_v8 = vsel %vm3145_vm2, %v562_v2, %v566_v62  ;;  %v1854_v43 = vshll.u32 %v2457_v33, 16  ;;  %v2992_v44 = vld [vmem:[%s3074_s10 + $0xb0] ss:$8 sps:$4 sm:$0xff]  }
  0x57   : > { %2658 = vmatpush3.bf16.msra.mxu1 %v2956_v13  ;;  %v2247_v13 = vcombine.low %v567_v8, %v581_v9  ;;  %v2978_v8 = vld [vmem:[%s3400_s1 + $0xe8] sm:$0xff]   ;;  %v1777_v26 = vrot.slane %v1775_v19, 4  ;;  %v1780_v27 = vrot.slane %v1778_v20, 5  ;;  %v1791_v31 = vrot.slane %v1789_v22, 4 }
  0x58   : > { %2754 = vmatpush3.bf16.msra.mxu0 %v2957_v28  ;;  %2659 = vmatprep.subr.bf16.mxu1 %v2958_v32  ;;  %v594_v28 = vrot.slane %v592_v21, 5  ;;  %v2979_v9 = vld [vmem:[%s3400_s1 + $0x1e8] sm:$0xff]   ;;  %v1784_v21 = vshll.u32 %v2447_v16, 16 }
  0x59   : > { %2755 = vmatprep.subr.bf16.mxu0 %v2959_v38  ;;  %v2999_v20 = vld [vmem:[%s3400_s1 + $0x228] sm:$0xff]  }
  0x5a   : > { %v595_v56 = vsel %vm3145_vm2, %v590_v46, %v594_v28  ;;  %v2455_v28 = vld [vmem:[%s3074_s10 + $0x2c] sm:$0x1]  ;;  %v1786_v45 = vrot.slane %v1784_v21, 5  ;;  %v2459_v21 = vld [vmem:[%s3074_s10 + $0x3c] sm:$0x1] }
  0x5b   : > { %2660 = vmatpush3.bf16.msra.mxu1 %v2958_v32  ;;  %v608_v32 = vrot.slane %v606_v24, 5 }
  0x5c   : > { %2756 = vmatpush3.bf16.msra.mxu0 %v2959_v38  ;;  %2661 = vmatprep.subr.bf16.mxu1 %v2961_v59  ;;  %v611_v38 = vshrl.u32 %v519_v30, 16  ;;  %v2988_v30 = vld [vmem:[%s3074_s10 + $0xa0] ss:$8 sps:$4 sm:$0xff]  }
  0x5d   : > { %2757 = vmatprep.subr.bf16.mxu0 %v2962_v60 }
  0x5e   : > { %v613_v47 = vrot.slane %v611_v38, 4  ;;  %v1840_v38 = vshll.u32 %v2455_v28, 16 }
  0x5f   : > { %2662 = vmatpush3.bf16.msra.mxu1 %v2961_v59  ;;  %v609_v59 = vsel %vm3145_vm2, %v604_v51, %v608_v32  ;;  %v1794_v32 = vrot.slane %v1792_v23, 5 }
  0x60   : > { %2758 = vmatpush3.bf16.msra.mxu0 %v2962_v60  ;;  %2663 = vmatprep.subr.bf16.mxu1 %v2964_v4  ;;  %v617_v57 = vor.u32 %v616_v48, %v613_v47  ;;  %v631_v60 = vor.u32 %v630_v54, %v627_v52  ;;  %v2248_v62 = vcombine.low %v595_v56, %v609_v59  ;;  %v1850_v54 = vrot.slane %v1848_v42, 5 }
  0x61   : > { %2759 = vmatprep.subr.bf16.mxu0 %v2965_v6  ;;  %v1795_v40 = vor.u32 %v1794_v32, %v1791_v31  ;;  %v1842_v56 = vrot.slane %v1840_v38, 5  ;;  %v1856_v59 = vrot.slane %v1854_v43, 5  ;;  %v2451_v31 = vld [vmem:[%s3074_s10 + $0x1c] sm:$0x1]  ;;  %v2453_v32 = vld [vmem:[%s3074_s10 + $0x24] sm:$0x1] }
  0x62   : > { %v618_v63 = vrot.slane %v617_v57, 4  ;;  %v632_v0 = vrot.slane %v631_v60, 4  ;;  %v2996_v57 = vld [vmem:[%s3400_s1 + $0x210] sm:$0xff]  }
  0x63   : > { %2664 = vmatpush3.bf16.msra.mxu1 %v2964_v4  ;;  %v2987_v4 = vld [vmem:[%s3074_s10 + $0x50] ss:$8 sps:$4 sm:$0xff]   ;;  %v1796_v51 = vrot.slane %v1795_v40, 4 }
  0x64   : > { %2760 = vmatpush3.bf16.msra.mxu0 %v2965_v6  ;;  %2673 = vmatprep.subr.bf16.mxu1 %v2966_v7  ;;  %v623_v2 = vsel %vm3145_vm2, %v618_v63, %v622_v49  ;;  %v637_v3 = vsel %vm3145_vm2, %v632_v0, %v636_v55  ;;  %v2993_v49 = vld [vmem:[%s3074_s10 + $0x70] ss:$8 sps:$4 sm:$0xff]  }
  0x65   : > { %2769 = vmatprep.subr.bf16.mxu0 %v2968_v10  ;;  %v2249_v6 = vcombine.low %v623_v2, %v637_v3  ;;  %v2997_v3 = vld [vmem:[%s3400_s1 + $0x218] sm:$0xff]  }
  0x66   : > { %2666 = vmatmul.mubr.bf16.vlgmr.msra.gmra.mrb[0].mxu1 %v2247_v13  ;;  %v2985_v13 = vld [vmem:[%s3400_s1 + $0x1f8] sm:$0xff]  }
  0x67   : > { %2674 = vmatpush3.bf16.msra.mxu1 %v2966_v7  ;;  %2762 = vmatmul.mubr.bf16.vlgmr.msra.gmra.mrb[0].mxu0 %v2969_v11  ;;  %v2986_v7 = vld [vmem:[%s3074_s10 + $0x90] ss:$8 sps:$4 sm:$0xff]  }
  0x68   : > { %2770 = vmatpush3.bf16.msra.mxu0 %v2968_v10  ;;  %2675 = vmatprep.subr.bf16.mxu1 %v2970_v14  ;;  %v2981_v10 = vld [vmem:[%s3400_s1 + $0xf0] sm:$0xff]  }
  0x69   : > { %2771 = vmatprep.subr.bf16.mxu0 %v2971_v18  ;;  %2765 = vmatprep.mubr.bf16.mxu0 %v2980_v25  ;;  %v2983_v11 = vld [vmem:[%s3400_s1 + $0x1f0] sm:$0xff]   ;;  %v2454_v25 = vld [vmem:[%s3074_s10 + $0x28] sm:$0xf] }
  0x6a   : > { %2669 = vmatprep.mubr.bf16.mxu1 %v2248_v62  ;;  %v1831_v36 = vshrl.u32 %v2454_v25, 16  ;;  %v1834_v37 = vshll.u32 %v2454_v25, 16 }
  0x6b   : > { %2676 = vmatpush3.bf16.msra.mxu1 %v2970_v14  ;;  %v2990_v14 = vld [vmem:[%s3400_s1 + $0x200] sm:$0xff]  }
  0x6c   : > { %2772 = vmatpush3.bf16.msra.mxu0 %v2971_v18  ;;  %2677 = vmatprep.subr.bf16.mxu1 %v2972_v35  ;;  %v2449_v18 = vld [vmem:[%s3074_s10 + $0x14] sm:$0x1]  ;;  %v1833_v47 = vrot.slane %v1831_v36, 4  ;;  %v1836_v48 = vrot.slane %v1834_v37, 5 }
  0x6d   : > { %2773 = vmatprep.subr.bf16.mxu0 %v2973_v41  ;;  %v1798_v24 = vshll.u32 %v2449_v18, 16  ;;  %v3000_v37 = vld [vmem:[%s3400_s1 + $0x230] sm:$0xff]  }
  0x6e   : > { %2670 = vmatmul.mubr.bf16.gmra.mrb[4].mxu1 %v2249_v6  ;;  %v1837_v55 = vor.u32 %v1836_v48, %v1833_v47  ;;  %v2460_v6 = vld [vmem:[%s3074_s10 + $0x40] sm:$0xf] }
  0x6f   : > { %2678 = vmatpush3.bf16.msra.mxu1 %v2972_v35  ;;  %2766 = vmatmul.mubr.bf16.gmra.mrb[4].mxu0 %v2982_v58  ;;  %v1781_v35 = vor.u32 %v1780_v27, %v1777_v26  ;;  %v1800_v46 = vrot.slane %v1798_v24, 5 }
  0x70   : > { %2774 = vmatpush3.bf16.msra.mxu0 %v2973_v41  ;;  %2679 = vmatprep.subr.bf16.mxu1 %v2974_v50  ;;  %v1845_v41 = vshrl.u32 %v2456_v29, 16  ;;  %v1838_v60 = vrot.slane %v1837_v55, 4 }
  0x71   : > { %2775 = vmatprep.subr.bf16.mxu0 %v2975_v61  ;;  %2785 = vmatprep.mubr.bf16.mxu0 %v2987_v4  ;;  %v1801_v63 = vsel %vm3145_vm2, %v1796_v51, %v1800_v46  ;;  %v3001_v46 = vld [vmem:[%s3400_s1 + $0x238] sm:$0xff]  }
  0x72   : > { %2689 = vmatprep.mubr.bf16.mxu1 %v2986_v7  ;;  %v1847_v52 = vrot.slane %v1845_v41, 4  ;;  %v1843_v2 = vsel %vm3145_vm2, %v1838_v60, %v1842_v56  ;;  %v1826_v41 = vshll.u32 %v2453_v32, 16 }
  0x73   : > { %2680 = vmatpush3.bf16.msra.mxu1 %v2974_v50  ;;  %v1782_v50 = vrot.slane %v1781_v35, 4 }
  0x74   : > { %2776 = vmatpush3.bf16.msra.mxu0 %v2975_v61  ;;  %2681 = vmatprep.subr.bf16.mxu1 %v2976_v1  ;;  %v1851_v58 = vor.u32 %v1850_v54, %v1847_v52  ;;  %v2994_v61 = vld [vmem:[%s3074_s10 + $0xc0] ss:$8 sps:$4 sm:$0xff]  }
  0x75   : > { %2777 = vmatprep.subr.bf16.mxu0 %v2977_v5  ;;  %v1787_v62 = vsel %vm3145_vm2, %v1782_v50, %v1786_v45  ;;  %v1828_v50 = vrot.slane %v1826_v41, 5 }
  0x76   : > { %v1852_v0 = vrot.slane %v1851_v58, 4  ;;  %v2478_v7 = vcombine.low %v1787_v62, %v1801_v63 }
  0x77   : > { %2682 = vmatpush3.bf16.msra.mxu1 %v2976_v1  ;;  %v2995_v1 = vld [vmem:[%s3074_s10 + $0x80] ss:$8 sps:$4 sm:$0xff]  }
  0x78   : > { %2778 = vmatpush3.bf16.msra.mxu0 %v2977_v5  ;;  %2683 = vmatprep.subr.bf16.mxu1 %v2978_v8  ;;  %v1857_v4 = vsel %vm3145_vm2, %v1852_v0, %v1856_v59  ;;  %v2458_v5 = vld [vmem:[%s3074_s10 + $0x38] sm:$0xf] }
  0x79   : > { %2779 = vmatprep.subr.bf16.mxu0 %v2979_v9 }
  0x7b   : > { %2684 = vmatpush3.bf16.msra.mxu1 %v2978_v8  ;;  %v2450_v8 = vld [vmem:[%s3074_s10 + $0x18] sm:$0xf] }
  0x7c   : > { %2780 = vmatpush3.bf16.msra.mxu0 %v2979_v9  ;;  %2685 = vmatprep.subr.bf16.mxu1 %v2981_v10  ;;  %v2452_v9 = vld [vmem:[%s3074_s10 + $0x20] sm:$0xf]  ;;  %v1803_v16 = vshrl.u32 %v2450_v8, 16  ;;  %v1806_v17 = vshll.u32 %v2450_v8, 16 }
  0x7d   : > { %2781 = vmatprep.subr.bf16.mxu0 %v2983_v11  ;;  %v1817_v18 = vshrl.u32 %v2452_v9, 16  ;;  %v1820_v19 = vshll.u32 %v2452_v9, 16 }
  0x7e   : > { %v1805_v26 = vrot.slane %v1803_v16, 4  ;;  %v1808_v27 = vrot.slane %v1806_v17, 5 }
  0x7f   : > { %2686 = vmatpush3.bf16.msra.mxu1 %v2981_v10  ;;  %v2480_v10 = vcombine.low %v1843_v2, %v1857_v4  ;;  %v1819_v28 = vrot.slane %v1817_v18, 4  ;;  %v1822_v29 = vrot.slane %v1820_v19, 5 }
  0x80   : > { %2782 = vmatpush3.bf16.msra.mxu0 %v2983_v11  ;;  %2687 = vmatprep.subr.bf16.mxu1 %v2984_v12  ;;  %v1859_v11 = vshrl.u32 %v2458_v5, 16  ;;  %v1809_v38 = vor.u32 %v1808_v27, %v1805_v26 }
  0x81   : > { %2783 = vmatprep.subr.bf16.mxu0 %v2985_v13  ;;  %v1823_v40 = vor.u32 %v1822_v29, %v1819_v28 }
  0x82   : > { %v1861_v22 = vrot.slane %v1859_v11, 4  ;;  %v1810_v47 = vrot.slane %v1809_v38, 4 }
  0x83   : > { %2688 = vmatpush3.bf16.msra.mxu1 %v2984_v12  ;;  %v1862_v12 = vshll.u32 %v2458_v5, 16 }
  0x84   : > { %2784 = vmatpush3.bf16.msra.mxu0 %v2985_v13  ;;  %2817 = vmatprep.subr.bf16.mxu1 %v2990_v14  ;;  %v1873_v13 = vshrl.u32 %v2460_v6, 16 }
  0x85   : > { %2793 = vmatprep.subr.bf16.mxu0 %v2990_v14  ;;  %v1864_v23 = vrot.slane %v1862_v12, 5 }
  0x86   : > { %2690 = vmatmul.mubr.bf16.vlgmr.msra.gmra.mrb[0].mxu1 %v2988_v30  ;;  %v1875_v24 = vrot.slane %v1873_v13, 4  ;;  %v2461_v30 = vld [vmem:[%s3074_s10 + $0x44] sm:$0x1] }
  0x87   : > { %2786 = vmatmul.mubr.bf16.vlgmr.msra.gmra.mrb[0].mxu0 %v2989_v34  ;;  %2825 = vmatpush3.bf16.msra.mxu1 %v2990_v14  ;;  %v1865_v33 = vor.u32 %v1864_v23, %v1861_v22  ;;  %v1868_v34 = vshll.u32 %v2459_v21, 16  ;;  %v1882_v36 = vshll.u32 %v2461_v30, 16 }
  0x88   : > { %2794 = vmatpush3.bf16.msra.mxu0 %v2990_v14  ;;  %2818 = vmatprep.subr.bf16.mxu1 %v2991_v39  ;;  %v1876_v14 = vshll.u32 %v2460_v6, 16 }
  0x89   : > { %2795 = vmatprep.subr.bf16.mxu0 %v2991_v39  ;;  %2693 = vmatprep.mubr.bf16.mxu1 %v2992_v44  ;;  %v1866_v42 = vrot.slane %v1865_v33, 4  ;;  %v1870_v43 = vrot.slane %v1868_v34, 5  ;;  %v1884_v45 = vrot.slane %v1882_v36, 5 }
  0x8a   : > { %2789 = vmatprep.mubr.bf16.mxu0 %v2993_v49  ;;  %v1878_v25 = vrot.slane %v1876_v14, 5  ;;  %v1824_v49 = vrot.slane %v1823_v40, 4 }
  0x8b   : > { %2826 = vmatpush3.bf16.msra.mxu1 %v2991_v39  ;;  %v1871_v51 = vsel %vm3145_vm2, %v1866_v42, %v1870_v43 }
  0x8c   : > { %2796 = vmatpush3.bf16.msra.mxu0 %v2991_v39  ;;  %2819 = vmatprep.subr.bf16.mxu1 %v2996_v57  ;;  %v1879_v35 = vor.u32 %v1878_v25, %v1875_v24  ;;  %v1812_v39 = vshll.u32 %v2451_v31, 16  ;;  %v1829_v55 = vsel %vm3145_vm2, %v1824_v49, %v1828_v50 }
  0x8d   : > { %2797 = vmatprep.subr.bf16.mxu0 %v2996_v57 }
  0x8e   : > { %2694 = vmatmul.mubr.bf16.gmra.mrb[4].mxu1 %v2994_v61  ;;  %v1880_v44 = vrot.slane %v1879_v35, 4  ;;  %v1814_v48 = vrot.slane %v1812_v39, 5 }
  0x8f   : > { %2790 = vmatmul.mubr.bf16.gmra.mrb[4].mxu0 %v2995_v1  ;;  %2827 = vmatpush3.bf16.msra.mxu1 %v2996_v57 }
  0x90   : > { %2798 = vmatpush3.bf16.msra.mxu0 %v2996_v57  ;;  %2820 = vmatprep.subr.bf16.mxu1 %v2997_v3  ;;  %v1885_v52 = vsel %vm3145_vm2, %v1880_v44, %v1884_v45  ;;  %v1815_v54 = vsel %vm3145_vm2, %v1810_v47, %v1814_v48 }
  0x91   : > { %2799 = vmatprep.subr.bf16.mxu0 %v2997_v3  ;;  %2809 = vmatprep.mubr.bf16.mxu0 %v2478_v7  ;;  %v2481_v56 = vcombine.low %v1871_v51, %v1885_v52  ;;  %v2479_v57 = vcombine.low %v1815_v54, %v1829_v55 }
  0x92   : > { %2813 = vmatprep.mubr.bf16.mxu1 %v2480_v10 }
  0x93   : > { %2828 = vmatpush3.bf16.msra.mxu1 %v2997_v3 }
  0x94   : > { %2800 = vmatpush3.bf16.msra.mxu0 %v2997_v3  ;;  %2821 = vmatprep.subr.bf16.mxu1 %v2998_v15 }
  0x95   : > { %2801 = vmatprep.subr.bf16.mxu0 %v2998_v15 }
  0x97   : > { %2829 = vmatpush3.bf16.msra.mxu1 %v2998_v15 }
  0x98   : > { %2802 = vmatpush3.bf16.msra.mxu0 %v2998_v15  ;;  %2822 = vmatprep.subr.bf16.mxu1 %v2999_v20 }
  0x99   : > { %2803 = vmatprep.subr.bf16.mxu0 %v2999_v20 }
  0x9b   : > { %2830 = vmatpush3.bf16.msra.mxu1 %v2999_v20 }
  0x9c   : > { %2804 = vmatpush3.bf16.msra.mxu0 %v2999_v20  ;;  %2823 = vmatprep.subr.bf16.mxu1 %v3000_v37 }
  0x9d   : > { %2805 = vmatprep.subr.bf16.mxu0 %v3000_v37 }
  0x9f   : > { %2831 = vmatpush3.bf16.msra.mxu1 %v3000_v37 }
  0xa0   : > { %2806 = vmatpush3.bf16.msra.mxu0 %v3000_v37  ;;  %2824 = vmatprep.subr.bf16.mxu1 %v3001_v46 }
  0xa1   : > { %2807 = vmatprep.subr.bf16.mxu0 %v3001_v46 }
  0xa3   : > { %2832 = vmatpush3.bf16.msra.mxu1 %v3001_v46 }
  0xa4   : > { %2808 = vmatpush3.bf16.msra.mxu0 %v3001_v46 }
  0xa6   : > { %2814 = vmatmul.mubr.bf16.vlgmr.msra.gmra.mrb[8].mxu1 %v2481_v56 }
  0xa7   : > { %2810 = vmatmul.mubr.bf16.vlgmr.msra.gmra.mrb[0].mxu0 %v2479_v57 }
 0x159   : > { %v2691_v58 = vpop.f32.mrb[0].mxu1 }
 0x15a   : > { %v924_v59 = vpop.f32.mrb[1].mxu1 }
 0x15b   : > { %v2692_v60 = vpop.f32.mrb[2].mxu1 }
 0x15c   : > { %v927_v61 = vpop.f32.mrb[3].mxu1 }
 0x161   : > { %v2695_v62 = vpop.f32.mrb[4].mxu1 }
 0x162   : > { %v2791_v63 = vpop.f32.mrb[4].mxu0  ;;  %v940_v0 = vpop.f32.mrb[5].mxu1 }
 0x163   : > { %v2837_v1 = vadd.f32 %v2791_v63, %v2695_v62  ;;  %v1735_v2 = vpop.f32.mrb[5].mxu0  ;;  %v2696_v3 = vpop.f32.mrb[6].mxu1 }
 0x164   : > { %v2839_v53 = vadd.f32 %v1735_v2, %v940_v0  ;;  %v2792_v4 = vpop.f32.mrb[6].mxu0  ;;  %v943_v5 = vpop.f32.mrb[7].mxu1 }
 0x165   : > { %v2841_v6 = vadd.f32 %v2792_v4, %v2696_v3  ;;  %v1738_v7 = vpop.f32.mrb[7].mxu0 }
 0x166   : > { %v2843_v8 = vadd.f32 %v1738_v7, %v943_v5 }
 0x179   : > { %v2815_v9 = vpop.f32.mrb[8].mxu1 }
 0x17a   : > { %v2811_v10 = vpop.f32.mrb[0].mxu0  ;;  %v2838_v11 = vadd.f32 %v2837_v1, %v2815_v9  ;;  %v2017_v12 = vpop.f32.mrb[9].mxu1 }
 0x17b   : > { %v2833_v13 = vadd.f32 %v2811_v10, %v2691_v58  ;;  %v2001_v14 = vpop.f32.mrb[1].mxu0  ;;  %v2840_v15 = vadd.f32 %v2839_v53, %v2017_v12  ;;  %v2816_v16 = vpop.f32.mrb[10].mxu1 }
 0x17c   : > { %2046 = vst [vmem:[%s177_s19 + $0x30] sm:$0xff] %v2838_v11  ;;  %v2834_v17 = vadd.f32 %v2001_v14, %v924_v59  ;;  %v2812_v18 = vpop.f32.mrb[2].mxu0  ;;  %v2842_v19 = vadd.f32 %v2841_v6, %v2816_v16  ;;  %v2020_v20 = vpop.f32.mrb[11].mxu1  ;;  %v2067_v40 = vmul.f32 %v2838_v11, %v2838_v11 }
 0x17d   : > { %2042 = vst [vmem:[%s177_s19 + $0x10] sm:$0xff] %v2833_v13  ;;  %2044 = vst [vmem:[%s177_s19 + $0x20] sm:$0xff] %v2840_v15  ;;  %v2835_v21 = vadd.f32 %v2812_v18, %v2692_v60  ;;  %v2004_v22 = vpop.f32.mrb[3].mxu0  ;;  %v2844_v23 = vadd.f32 %v2843_v8, %v2020_v20  ;;  %v2063_v28 = vmul.f32 %v2833_v13, %v2833_v13 }
 0x17e   : > { %2040 = vst [vmem:[%s177_s19] sm:$0xff] %v2834_v17  ;;  %2047 = vst [vmem:[%s177_s19 + $0x38] sm:$0xff] %v2842_v19  ;;  %v2836_v24 = vadd.f32 %v2004_v22, %v927_v61  ;;  %v2061_v25 = vmul.f32 %v2834_v17, %v2834_v17  ;;  %v2065_v34 = vmul.f32 %v2840_v15, %v2840_v15 }
 0x17f   : > { %2043 = vst [vmem:[%s177_s19 + $0x18] sm:$0xff] %v2835_v21  ;;  %2045 = vst [vmem:[%s177_s19 + $0x28] sm:$0xff] %v2844_v23  ;;  %v2064_v31 = vmul.f32 %v2835_v21, %v2835_v21  ;;  %v2066_v38 = vmul.f32 %v2844_v23, %v2844_v23  ;;  %v2068_v43 = vmul.f32 %v2842_v19, %v2842_v19 }
 0x180   : > { %2041 = vst [vmem:[%s177_s19 + $0x8] sm:$0xff] %v2836_v24  ;;  %v2048_v26 = vadd.f32 %v2836_v24, %v2834_v17  ;;  %v2062_v27 = vmul.f32 %v2836_v24, %v2836_v24 }
 0x182   : > { %v2049_v29 = vadd.f32 %v2833_v13, %v2048_v26  ;;  %v2069_v30 = vadd.f32 %v2062_v27, %v2061_v25 }
 0x184   : > { %v2070_v32 = vadd.f32 %v2069_v30, %v2063_v28  ;;  %v2050_v33 = vadd.f32 %v2835_v21, %v2049_v29 }
 0x186   : > { %v2051_v35 = vadd.f32 %v2840_v15, %v2050_v33  ;;  %v2071_v36 = vadd.f32 %v2070_v32, %v2064_v31 }
 0x188   : > { %v2052_v37 = vadd.f32 %v2844_v23, %v2051_v35  ;;  %v2072_v39 = vadd.f32 %v2071_v36, %v2065_v34 }
 0x18a   : > { %v2053_v41 = vadd.f32 %v2838_v11, %v2052_v37  ;;  %v2073_v42 = vadd.f32 %v2072_v39, %v2066_v38 }
 0x18c   : > { %v2054_v44 = vadd.f32 %v2842_v19, %v2053_v41  ;;  %v2074_v45 = vadd.f32 %v2073_v42, %v2067_v40 }
 0x18e   : > { %v2055_v46 = vrot.slane %v2054_v44, 4  ;;  %v2075_v47 = vadd.f32 %v2074_v45, %v2068_v43 }
 0x190   : > { %v2056_v48 = vadd.f32 %v2055_v46, %v2054_v44  ;;  %v2076_v49 = vrot.slane %v2075_v47, 4 }
 0x192   : > { %v2057_v50 = vrot.slane %v2056_v48, 2  ;;  %v2077_v51 = vadd.f32 %v2076_v49, %v2075_v47 }
 0x194   : > { %v2058_v52 = vadd.f32 %v2057_v50, %v2056_v48  ;;  %v2078_v54 = vrot.slane %v2077_v51, 2 }
 0x196   : > { %v2059_v55 = vrot.slane %v2058_v52, 1  ;;  %v2079_v56 = vadd.f32 %v2078_v54, %v2077_v51 }
 0x198   : > { %v2080_v57 = vrot.slane %v2079_v56, 1  ;;  %v2060_v58 = vadd.f32 %v2059_v55, %v2058_v52 }
 0x19a   : > { %v2081_v59 = vadd.f32 %v2080_v57, %v2079_v56 }
 0x19c   : > { %v2083_v60 = vsel %vm2082_vm3, %v2060_v58, %v2081_v59 }
 0x19d   : > { %v2085_v61 = vsel %vm2084_vm4, %v2083_v60, 0.0 }
 0x19e   : > { %2086 = vst [vmem:[%s181_s23] sm:$0xff] %v2085_v61 }
 0x19f PF: > { %s14_s12 = sadd.s32 1, %s3008_s12  }
 0x1a0   : > { %p11_p4 = scmp.ge.s32.totalorder %s14_s12, 4  }
 0x1a2   :  { %13 = sbr.rel (!%p11_p4) target bundleno = 1 (0x1), region = 83 }

// kernel: a_call__.8
= control target key start
LH: loop header
LB: loop body
LE: loop exit
PB: predicated region body
PF: predicated region fallthrough
CT: control target
= control target key end

     0   :  { %vm418_vm0 = vcmask 1040384   ;;  %vm420_vm1 = vcmask 1041408   ;;  %s656_s1 = inlined_call_operand.vmem [shape: bf16[128,128], index: 1, kind: input, shape index: {}]   ;;  %s657_s2 = inlined_call_operand.vmem [shape: f32[1,128], index: 2, kind: input, shape index: {}]   ;;  %s658_s3 = inlined_call_operand.vmem [shape: f32[1,128], index: 3, kind: input, shape index: {}]   ;;  %s659_s0 = inlined_call_operand.vmem [shape: bf16[128,128], index: 0, kind: input, shape index: {}]   ;;  %s660_s4 = inlined_call_operand.vmem [shape: f32[128,128], index: 4, kind: output, shape index: {0}]   ;;  %s661_s5 = inlined_call_operand.vmem [shape: f32[1,8,128], index: 5, kind: output, shape index: {1}]  }
   0x1   :  { %v511_v0 = vld [vmem:[%s656_s1] sm:$0xff]   ;;  %v512_v1 = vld [vmem:[%s656_s1 + $0x8] sm:$0xff]   ;;  %v513_v2 = vld [vmem:[%s656_s1 + $0x10] sm:$0xff]  }
   0x2   :  { %463 = vmatprep.subr.bf16.mxu0 %v511_v0  ;;  %495 = vmatprep.subr.bf16.mxu1 %v511_v0  ;;  %v514_v3 = vld [vmem:[%s656_s1 + $0x18] sm:$0xff]   ;;  %v519_v4 = vld [vmem:[%s659_s0] sm:$0xff]   ;;  %v516_v7 = vld [vmem:[%s656_s1 + $0x28] sm:$0xff]  }
   0x3   :  { %464 = vmatpush3.bf16.msra.mxu0 %v511_v0  ;;  %503 = vmatpush3.bf16.msra.mxu1 %v511_v0  ;;  %v515_v5 = vld [vmem:[%s656_s1 + $0x20] sm:$0xff]   ;;  %v517_v8 = vld [vmem:[%s656_s1 + $0x30] sm:$0xff]   ;;  %v518_v9 = vld [vmem:[%s656_s1 + $0x38] sm:$0xff]  }
   0x4   :  { %465 = vmatprep.subr.bf16.mxu0 %v512_v1  ;;  %496 = vmatprep.subr.bf16.mxu1 %v512_v1  ;;  %v523_v6 = vld [vmem:[%s659_s0 + $0x20] sm:$0xff]   ;;  %v520_v10 = vld [vmem:[%s659_s0 + $0x8] sm:$0xff]   ;;  %v521_v12 = vld [vmem:[%s659_s0 + $0x10] sm:$0xff]  }
   0x5   :  { %479 = vmatprep.mubr.bf16.mxu0 %v519_v4  ;;  %487 = vmatprep.mubr.bf16.mxu1 %v523_v6  ;;  %v524_v11 = vld [vmem:[%s659_s0 + $0x28] sm:$0xff]   ;;  %v525_v13 = vld [vmem:[%s659_s0 + $0x30] sm:$0xff]   ;;  %v522_v14 = vld [vmem:[%s659_s0 + $0x18] sm:$0xff]  }
   0x6   :  { %v526_v15 = vld [vmem:[%s659_s0 + $0x38] sm:$0xff]  }
   0x7   :  { %466 = vmatpush3.bf16.msra.mxu0 %v512_v1  ;;  %504 = vmatpush3.bf16.msra.mxu1 %v512_v1 }
   0x8   :  { %467 = vmatprep.subr.bf16.mxu0 %v513_v2  ;;  %497 = vmatprep.subr.bf16.mxu1 %v513_v2 }
   0xb   :  { %468 = vmatpush3.bf16.msra.mxu0 %v513_v2  ;;  %505 = vmatpush3.bf16.msra.mxu1 %v513_v2 }
   0xc   :  { %469 = vmatprep.subr.bf16.mxu0 %v514_v3  ;;  %498 = vmatprep.subr.bf16.mxu1 %v514_v3 }
   0xf   :  { %470 = vmatpush3.bf16.msra.mxu0 %v514_v3  ;;  %506 = vmatpush3.bf16.msra.mxu1 %v514_v3 }
  0x10   :  { %471 = vmatprep.subr.bf16.mxu0 %v515_v5  ;;  %499 = vmatprep.subr.bf16.mxu1 %v515_v5 }
  0x13   :  { %472 = vmatpush3.bf16.msra.mxu0 %v515_v5  ;;  %507 = vmatpush3.bf16.msra.mxu1 %v515_v5 }
  0x14   :  { %473 = vmatprep.subr.bf16.mxu0 %v516_v7  ;;  %500 = vmatprep.subr.bf16.mxu1 %v516_v7 }
  0x17   :  { %474 = vmatpush3.bf16.msra.mxu0 %v516_v7  ;;  %508 = vmatpush3.bf16.msra.mxu1 %v516_v7 }
  0x18   :  { %475 = vmatprep.subr.bf16.mxu0 %v517_v8  ;;  %501 = vmatprep.subr.bf16.mxu1 %v517_v8 }
  0x1b   :  { %476 = vmatpush3.bf16.msra.mxu0 %v517_v8  ;;  %509 = vmatpush3.bf16.msra.mxu1 %v517_v8 }
  0x1c   :  { %477 = vmatprep.subr.bf16.mxu0 %v518_v9  ;;  %502 = vmatprep.subr.bf16.mxu1 %v518_v9 }
  0x1f   :  { %478 = vmatpush3.bf16.msra.mxu0 %v518_v9  ;;  %510 = vmatpush3.bf16.msra.mxu1 %v518_v9 }
  0x22   :  { %480 = vmatmul.mubr.bf16.vlgmr.msra.gmra.mrb[0].mxu0 %v520_v10  ;;  %488 = vmatmul.mubr.bf16.vlgmr.msra.gmra.mrb[0].mxu1 %v524_v11 }
  0x23   :  { %483 = vmatprep.mubr.bf16.mxu0 %v521_v12  ;;  %491 = vmatprep.mubr.bf16.mxu1 %v525_v13 }
  0x2a   :  { %484 = vmatmul.mubr.bf16.gmra.mrb[4].mxu0 %v522_v14  ;;  %492 = vmatmul.mubr.bf16.gmra.mrb[4].mxu1 %v526_v15 }
  0xf5   :  { %v481_v16 = vpop.f32.mrb[0].mxu0  ;;  %v489_v17 = vpop.f32.mrb[0].mxu1 }
  0xf6   :  { %247 = vst [vmem:[%s660_s4 + $0x10] sm:$0xff] %v481_v16  ;;  %v182_v18 = vpop.f32.mrb[1].mxu0  ;;  %255 = vst [vmem:[%s660_s4 + $0x50] sm:$0xff] %v489_v17  ;;  %v214_v19 = vpop.f32.mrb[1].mxu1  ;;  %v383_v27 = vmul.f32 %v481_v16, %v481_v16  ;;  %v391_v59 = vmul.f32 %v489_v17, %v489_v17 }
  0xf7   :  { %245 = vst [vmem:[%s660_s4] sm:$0xff] %v182_v18  ;;  %v482_v20 = vpop.f32.mrb[2].mxu0  ;;  %253 = vst [vmem:[%s660_s4 + $0x40] sm:$0xff] %v214_v19  ;;  %v490_v21 = vpop.f32.mrb[2].mxu1  ;;  %v381_v24 = vmul.f32 %v182_v18, %v182_v18  ;;  %v389_v53 = vmul.f32 %v214_v19, %v214_v19 }
  0xf8   :  { %248 = vst [vmem:[%s660_s4 + $0x18] sm:$0xff] %v482_v20  ;;  %v185_v22 = vpop.f32.mrb[3].mxu0  ;;  %256 = vst [vmem:[%s660_s4 + $0x58] sm:$0xff] %v490_v21  ;;  %v217_v23 = vpop.f32.mrb[3].mxu1  ;;  %v384_v30 = vmul.f32 %v482_v20, %v482_v20  ;;  %v392_v62 = vmul.f32 %v490_v21, %v490_v21 }
  0xf9   :  { %246 = vst [vmem:[%s660_s4 + $0x8] sm:$0xff] %v185_v22  ;;  %v360_v25 = vadd.f32 %v185_v22, %v182_v18  ;;  %v382_v26 = vmul.f32 %v185_v22, %v185_v22  ;;  %254 = vst [vmem:[%s660_s4 + $0x48] sm:$0xff] %v217_v23  ;;  %v390_v58 = vmul.f32 %v217_v23, %v217_v23 }
  0xfb   :  { %v361_v28 = vadd.f32 %v481_v16, %v360_v25  ;;  %v397_v29 = vadd.f32 %v382_v26, %v381_v24 }
  0xfd   :  { %v398_v31 = vadd.f32 %v397_v29, %v383_v27  ;;  %v485_v32 = vpop.f32.mrb[4].mxu0  ;;  %v362_v33 = vadd.f32 %v482_v20, %v361_v28  ;;  %v493_v34 = vpop.f32.mrb[4].mxu1 }
  0xfe   :  { %251 = vst [vmem:[%s660_s4 + $0x30] sm:$0xff] %v485_v32  ;;  %v198_v35 = vpop.f32.mrb[5].mxu0  ;;  %259 = vst [vmem:[%s660_s4 + $0x70] sm:$0xff] %v493_v34  ;;  %v230_v36 = vpop.f32.mrb[5].mxu1  ;;  %v387_v47 = vmul.f32 %v485_v32, %v485_v32  ;;  %v395_v7 = vmul.f32 %v493_v34, %v493_v34 }
  0xff   :  { %249 = vst [vmem:[%s660_s4 + $0x20] sm:$0xff] %v198_v35  ;;  %v363_v37 = vadd.f32 %v362_v33, %v198_v35  ;;  %v385_v38 = vmul.f32 %v198_v35, %v198_v35  ;;  %v399_v39 = vadd.f32 %v398_v31, %v384_v30  ;;  %v486_v40 = vpop.f32.mrb[6].mxu0  ;;  %257 = vst [vmem:[%s660_s4 + $0x60] sm:$0xff] %v230_v36  ;;  %v494_v41 = vpop.f32.mrb[6].mxu1 }
 0x100   :  { %252 = vst [vmem:[%s660_s4 + $0x38] sm:$0xff] %v486_v40  ;;  %v201_v42 = vpop.f32.mrb[7].mxu0  ;;  %260 = vst [vmem:[%s660_s4 + $0x78] sm:$0xff] %v494_v41  ;;  %v233_v43 = vpop.f32.mrb[7].mxu1  ;;  %v388_v50 = vmul.f32 %v486_v40, %v486_v40  ;;  %v393_v1 = vmul.f32 %v230_v36, %v230_v36  ;;  %v396_v10 = vmul.f32 %v494_v41, %v494_v41 }
 0x101   :  { %v400_v44 = vadd.f32 %v399_v39, %v385_v38  ;;  %250 = vst [vmem:[%s660_s4 + $0x28] sm:$0xff] %v201_v42  ;;  %v364_v45 = vadd.f32 %v363_v37, %v201_v42  ;;  %v386_v46 = vmul.f32 %v201_v42, %v201_v42  ;;  %258 = vst [vmem:[%s660_s4 + $0x68] sm:$0xff] %v233_v43 }
 0x102   :  { %v394_v6 = vmul.f32 %v233_v43, %v233_v43 }
 0x103   :  { %v365_v48 = vadd.f32 %v485_v32, %v364_v45  ;;  %v401_v49 = vadd.f32 %v400_v44, %v386_v46 }
 0x105   :  { %v402_v51 = vadd.f32 %v401_v49, %v387_v47  ;;  %v366_v52 = vadd.f32 %v486_v40, %v365_v48 }
 0x107   :  { %v367_v54 = vadd.f32 %v366_v52, %v214_v19  ;;  %v403_v55 = vadd.f32 %v402_v51, %v388_v50 }
 0x109   :  { %v404_v56 = vadd.f32 %v403_v55, %v389_v53  ;;  %v368_v57 = vadd.f32 %v367_v54, %v217_v23 }
 0x10b   :  { %v369_v60 = vadd.f32 %v489_v17, %v368_v57  ;;  %v405_v61 = vadd.f32 %v404_v56, %v390_v58 }
 0x10d   :  { %v406_v63 = vadd.f32 %v405_v61, %v391_v59  ;;  %v370_v0 = vadd.f32 %v490_v21, %v369_v60 }
 0x10f   :  { %v371_v2 = vadd.f32 %v370_v0, %v230_v36  ;;  %v407_v3 = vadd.f32 %v406_v63, %v392_v62 }
 0x111   :  { %v408_v4 = vadd.f32 %v407_v3, %v393_v1  ;;  %v372_v5 = vadd.f32 %v371_v2, %v233_v43 }
 0x113   :  { %v373_v8 = vadd.f32 %v493_v34, %v372_v5  ;;  %v409_v9 = vadd.f32 %v408_v4, %v394_v6 }
 0x115   :  { %v374_v11 = vadd.f32 %v494_v41, %v373_v8  ;;  %v410_v12 = vadd.f32 %v409_v9, %v395_v7 }
 0x117   :  { %v375_v13 = vrot.slane %v374_v11, 4  ;;  %v411_v14 = vadd.f32 %v410_v12, %v396_v10 }
 0x119   :  { %v376_v15 = vadd.f32 %v375_v13, %v374_v11  ;;  %v412_v16 = vrot.slane %v411_v14, 4 }
 0x11b   :  { %v377_v17 = vrot.slane %v376_v15, 2  ;;  %v413_v18 = vadd.f32 %v412_v16, %v411_v14 }
 0x11d   :  { %v378_v19 = vadd.f32 %v377_v17, %v376_v15  ;;  %v414_v20 = vrot.slane %v413_v18, 2 }
 0x11f   :  { %v379_v21 = vrot.slane %v378_v19, 1  ;;  %v415_v22 = vadd.f32 %v414_v20, %v413_v18 }
 0x121   :  { %v416_v23 = vrot.slane %v415_v22, 1  ;;  %v380_v24 = vadd.f32 %v379_v21, %v378_v19 }
 0x123   :  { %v417_v25 = vadd.f32 %v416_v23, %v415_v22 }
 0x125   :  { %v419_v26 = vsel %vm418_vm0, %v380_v24, %v417_v25 }
 0x126   :  { %v421_v27 = vsel %vm420_vm1, %v419_v26, 0.0 }
 0x127   :  { %422 = vst [vmem:[%s661_s5] sm:$0xff] %v421_v27 }

// kernel: a_call__.9
= control target key start
LH: loop header
LB: loop body
LE: loop exit
PB: predicated region body
PF: predicated region fallthrough
CT: control target
= control target key end

     0   :  { %s473_s0 = inlined_call_operand.vmem [shape: f32[128,128], index: 0, kind: input, shape index: {}]   ;;  %s474_s1 = inlined_call_operand.vmem [shape: f32[128,128], index: 1, kind: input, shape index: {}]   ;;  %s475_s2 = inlined_call_operand.vmem [shape: f32[1,128], index: 2, kind: input, shape index: {}]   ;;  %s476_s3 = inlined_call_operand.vmem [shape: f32[1,128], index: 3, kind: input, shape index: {}]   ;;  %s477_s4 = inlined_call_operand.vmem [shape: f32[1,128], index: 4, kind: input, shape index: {}]   ;;  %s478_s5 = inlined_call_operand.vmem [shape: f32[1,128], index: 5, kind: input, shape index: {}]   ;;  %s479_s6 = inlined_call_operand.hbm [shape: f32[128,128], index: 6, kind: output, shape index: {}]  }
   0x1   :  { %v24_v0 = vld [vmem:[%s473_s0] sm:$0xff]  ;;  %v25_v8 = vld [vmem:[%s473_s0 + $0x8] sm:$0xff]  ;;  %v26_v10 = vld [vmem:[%s473_s0 + $0x10] sm:$0xff] }
   0x2   :  { %v287_v1 = vld [vmem:[%s475_s2] ss:$0 sm:$0xff]  ;;  %v87_v9 = vld [vmem:[%s474_s1 + $0x8] sm:$0xff]  ;;  %v88_v15 = vld [vmem:[%s474_s1 + $0x10] sm:$0xff] }
   0x3   :  { %v292_v2 = vld [vmem:[%s476_s3] ss:$0 sm:$0xff]  ;;  %v47_v3 = vmul.f32 %v287_v1, %v24_v0  ;;  %v48_v12 = vmul.f32 %v287_v1, %v25_v8  ;;  %v49_v14 = vmul.f32 %v287_v1, %v26_v10  ;;  %v27_v16 = vld [vmem:[%s473_s0 + $0x18] sm:$0xff]  ;;  %v29_v24 = vld [vmem:[%s473_s0 + $0x28] sm:$0xff] }
   0x4   :  { %v86_v4 = vld [vmem:[%s474_s1] sm:$0xff]  ;;  %v89_v17 = vld [vmem:[%s474_s1 + $0x18] sm:$0xff]  ;;  %v50_v20 = vmul.f32 %v287_v1, %v27_v16  ;;  %v91_v29 = vld [vmem:[%s474_s1 + $0x28] sm:$0xff]  ;;  %v52_v38 = vmul.f32 %v287_v1, %v29_v24 }
   0x5   :  { %v301_v5 = vld [vmem:[%s477_s4] ss:$0 sm:$0xff]  ;;  %v70_v11 = vadd.f32 %v292_v2, %v47_v3  ;;  %v71_v25 = vadd.f32 %v292_v2, %v48_v12  ;;  %v72_v27 = vadd.f32 %v292_v2, %v49_v14  ;;  %v30_v34 = vld [vmem:[%s473_s0 + $0x30] sm:$0xff]  ;;  %v31_v44 = vld [vmem:[%s473_s0 + $0x38] sm:$0xff] }
   0x6   :  { %v306_v6 = vld [vmem:[%s478_s5] ss:$0 sm:$0xff]  ;;  %v109_v7 = vmul.f32 %v301_v5, %v86_v4  ;;  %v110_v13 = vmul.f32 %v301_v5, %v87_v9  ;;  %v111_v19 = vmul.f32 %v301_v5, %v88_v15  ;;  %v112_v21 = vmul.f32 %v301_v5, %v89_v17  ;;  %v92_v39 = vld [vmem:[%s474_s1 + $0x30] sm:$0xff]  ;;  %v93_v45 = vld [vmem:[%s474_s1 + $0x38] sm:$0xff] }
   0x7   :  { %v28_v22 = vld [vmem:[%s473_s0 + $0x20] sm:$0xff]  ;;  %v73_v32 = vadd.f32 %v292_v2, %v50_v20  ;;  %v114_v43 = vmul.f32 %v301_v5, %v91_v29  ;;  %v75_v48 = vadd.f32 %v292_v2, %v52_v38  ;;  %v53_v49 = vmul.f32 %v287_v1, %v30_v34  ;;  %v33_v56 = vld [vmem:[%s473_s0 + $0x48] sm:$0xff]  ;;  %v34_v4 = vld [vmem:[%s473_s0 + $0x50] sm:$0xff] }
   0x8   :  { %v132_v18 = vadd.f32 %v306_v6, %v109_v7  ;;  %v90_v23 = vld [vmem:[%s474_s1 + $0x20] sm:$0xff]  ;;  %v133_v26 = vadd.f32 %v306_v6, %v110_v13  ;;  %v51_v28 = vmul.f32 %v287_v1, %v28_v22  ;;  %v134_v31 = vadd.f32 %v306_v6, %v111_v19  ;;  %v95_v3 = vld [vmem:[%s474_s1 + $0x48] sm:$0xff] }
   0x9   :  { %v135_v33 = vadd.f32 %v306_v6, %v112_v21  ;;  %v113_v37 = vmul.f32 %v301_v5, %v90_v23  ;;  %v32_v50 = vld [vmem:[%s473_s0 + $0x40] sm:$0xff]  ;;  %v137_v54 = vadd.f32 %v306_v6, %v114_v43  ;;  %v115_v55 = vmul.f32 %v301_v5, %v92_v39 }
   0xa   :  { %v148_v30 = vadd.f32 %v132_v18, %v70_v11  ;;  %v149_v35 = vadd.f32 %v133_v26, %v71_v25  ;;  %v74_v36 = vadd.f32 %v292_v2, %v51_v28  ;;  %v150_v41 = vadd.f32 %v134_v31, %v72_v27  ;;  %v94_v51 = vld [vmem:[%s474_s1 + $0x40] sm:$0xff] }
   0xb   :  { %v151_v42 = vadd.f32 %v135_v33, %v73_v32  ;;  %v136_v47 = vadd.f32 %v306_v6, %v113_v37  ;;  %v76_v58 = vadd.f32 %v292_v2, %v53_v49  ;;  %v54_v59 = vmul.f32 %v287_v1, %v31_v44 }
   0xc   :  { %v164_v40 = vmax.f32 %v148_v30, 0.0  ;;  %v165_v46 = vmax.f32 %v149_v35, 0.0  ;;  %v166_v52 = vmax.f32 %v150_v41, 0.0  ;;  %v116_v60 = vmul.f32 %v301_v5, %v93_v45 }
   0xd   :  { %v167_v53 = vmax.f32 %v151_v42, 0.0  ;;  %v152_v57 = vadd.f32 %v136_v47, %v74_v36  ;;  %v153_v61 = vadd.f32 %v137_v54, %v75_v48  ;;  %v138_v62 = vadd.f32 %v306_v6, %v115_v55 }
   0xe   :  { %180 = vst [vmem:[#allocation2] sm:$0xff] %v164_v40  ;;  %181 = vst [vmem:[#allocation2 + $0x8] sm:$0xff] %v165_v46  ;;  %v55_v63 = vmul.f32 %v287_v1, %v32_v50  ;;  %v117_v0 = vmul.f32 %v301_v5, %v94_v51 }
   0xf   :  { %182 = vst [vmem:[#allocation2 + $0x10] sm:$0xff] %v166_v52  ;;  %183 = vst [vmem:[#allocation2 + $0x18] sm:$0xff] %v167_v53 }
  0x10   :  { %11 = vsyncpa [#allocation3], 0  ;;  %v168_v7 = vmax.f32 %v152_v57, 0.0  ;;  %v77_v8 = vadd.f32 %v292_v2, %v54_v59  ;;  %v139_v9 = vadd.f32 %v306_v6, %v116_v60  ;;  %v56_v10 = vmul.f32 %v287_v1, %v33_v56  ;;  %v96_v11 = vld [vmem:[%s474_s1 + $0x50] sm:$0xff]  ;;  %v35_v12 = vld [vmem:[%s473_s0 + $0x58] sm:$0xff] }
  0x11   :  { %v169_v13 = vmax.f32 %v153_v61, 0.0  ;;  %v154_v14 = vadd.f32 %v138_v62, %v76_v58  ;;  %v78_v15 = vadd.f32 %v292_v2, %v55_v63  ;;  %v140_v16 = vadd.f32 %v306_v6, %v117_v0  ;;  %v97_v17 = vld [vmem:[%s474_s1 + $0x58] sm:$0xff]  ;;  %v36_v22 = vld [vmem:[%s473_s0 + $0x60] sm:$0xff]  ;;  %v37_v28 = vld [vmem:[%s473_s0 + $0x68] sm:$0xff] }
  0x12   :  { %184 = vst [vmem:[#allocation2 + $0x20] sm:$0xff] %v168_v7  ;;  %v155_v18 = vadd.f32 %v139_v9, %v77_v8  ;;  %v79_v19 = vadd.f32 %v292_v2, %v56_v10  ;;  %v118_v20 = vmul.f32 %v301_v5, %v95_v3  ;;  %v57_v21 = vmul.f32 %v287_v1, %v34_v4  ;;  %v98_v27 = vld [vmem:[%s474_s1 + $0x60] sm:$0xff]  ;;  %v99_v33 = vld [vmem:[%s474_s1 + $0x68] sm:$0xff]  ;;  %v38_v34 = vld [vmem:[%s473_s0 + $0x70] sm:$0xff] }
  0x13   :  { %185 = vst [vmem:[#allocation2 + $0x28] sm:$0xff] %v169_v13  ;;  %v170_v23 = vmax.f32 %v154_v14, 0.0  ;;  %v156_v24 = vadd.f32 %v140_v16, %v78_v15  ;;  %v119_v25 = vmul.f32 %v301_v5, %v96_v11  ;;  %v58_v26 = vmul.f32 %v287_v1, %v35_v12  ;;  %v100_v43 = vld [vmem:[%s474_s1 + $0x70] sm:$0xff]  ;;  %v39_v48 = vld [vmem:[%s473_s0 + $0x78] sm:$0xff]  ;;  %s243_s0 = smov [#allocation2]  }
  0x14   :  { %v171_v29 = vmax.f32 %v155_v18, 0.0  ;;  %v141_v30 = vadd.f32 %v306_v6, %v118_v20  ;;  %v80_v31 = vadd.f32 %v292_v2, %v57_v21  ;;  %v120_v32 = vmul.f32 %v301_v5, %v97_v17  ;;  %v101_v49 = vld [vmem:[%s474_s1 + $0x78] sm:$0xff]  ;;  %s201_s1 = sshll.u32 %s243_s0, 4  ;;  %s202_s1 = int_to_ptr.vmem [resolvable:$true] %s201_s1 }
  0x15   :  { %186 = vst [vmem:[#allocation2 + $0x30] sm:$0xff] %v170_v23  ;;  %v172_v35 = vmax.f32 %v156_v24, 0.0  ;;  %v142_v36 = vadd.f32 %v306_v6, %v119_v25  ;;  %v81_v37 = vadd.f32 %v292_v2, %v58_v26  ;;  %v59_v38 = vmul.f32 %v287_v1, %v36_v22  ;;  %s219_s11 = scalar_lea.vmem %s202_s1, 2048  ;;  %p224_p1 = scmp.lt.s32.totalorder %s202_s1, %s202_s1 }
  0x16   :  { %187 = vst [vmem:[#allocation2 + $0x38] sm:$0xff] %v171_v29  ;;  %v157_v39 = vadd.f32 %v141_v30, %v79_v19  ;;  %v143_v40 = vadd.f32 %v306_v6, %v120_v32  ;;  %v121_v41 = vmul.f32 %v301_v5, %v98_v27  ;;  %v60_v42 = vmul.f32 %v287_v1, %v37_v28  ;;  %p220_p0 = scmp.ne.s32.totalorder %s202_s1, %s219_s11  ;;  %p225_p2 = scmp.lt.s32.totalorder %s219_s11, %s219_s11 }
  0x17   :  { %188 = vst [vmem:[#allocation2 + $0x40] sm:$0xff] %v172_v35  ;;  %v158_v44 = vadd.f32 %v142_v36, %v80_v31  ;;  %v82_v45 = vadd.f32 %v292_v2, %v59_v38  ;;  %v122_v46 = vmul.f32 %v301_v5, %v99_v33  ;;  %v61_v47 = vmul.f32 %v287_v1, %v38_v34 }
  0x18   :  { %v173_v50 = vmax.f32 %v157_v39, 0.0  ;;  %v159_v51 = vadd.f32 %v143_v40, %v81_v37  ;;  %v144_v52 = vadd.f32 %v306_v6, %v121_v41  ;;  %v83_v53 = vadd.f32 %v292_v2, %v60_v42  ;;  %p226_p3 = por %p225_p2, %p224_p1 }
  0x19   :  { %v174_v54 = vmax.f32 %v158_v44, 0.0  ;;  %v145_v55 = vadd.f32 %v306_v6, %v122_v46  ;;  %v84_v56 = vadd.f32 %v292_v2, %v61_v47  ;;  %v123_v57 = vmul.f32 %v301_v5, %v100_v43 }
  0x1a   :  { %189 = vst [vmem:[#allocation2 + $0x48] sm:$0xff] %v173_v50  ;;  %v175_v58 = vmax.f32 %v159_v51, 0.0  ;;  %v160_v59 = vadd.f32 %v144_v52, %v82_v45  ;;  %v62_v60 = vmul.f32 %v287_v1, %v39_v48  ;;  %v124_v61 = vmul.f32 %v301_v5, %v101_v49  ;;  %p227_p4 = pnand %p226_p3, %p220_p0 }
  0x1b   :  { %190 = vst [vmem:[#allocation2 + $0x50] sm:$0xff] %v174_v54  ;;  %v161_v62 = vadd.f32 %v145_v55, %v83_v53  ;;  %v146_v63 = vadd.f32 %v306_v6, %v123_v57 }
  0x1c   :  { %191 = vst [vmem:[#allocation2 + $0x58] sm:$0xff] %v175_v58  ;;  %v176_v0 = vmax.f32 %v160_v59, 0.0  ;;  %v85_v3 = vadd.f32 %v292_v2, %v62_v60  ;;  %v147_v4 = vadd.f32 %v306_v6, %v124_v61 }
  0x1d   :  { %v177_v7 = vmax.f32 %v161_v62, 0.0  ;;  %v162_v8 = vadd.f32 %v146_v63, %v84_v56 }
  0x1e   :  { %192 = vst [vmem:[#allocation2 + $0x60] sm:$0xff] %v176_v0  ;;  %v163_v9 = vadd.f32 %v147_v4, %v85_v3 }
  0x1f   :  { %193 = vst [vmem:[#allocation2 + $0x68] sm:$0xff] %v177_v7  ;;  %v178_v1 = vmax.f32 %v162_v8, 0.0 }
  0x20   :  { %v179_v5 = vmax.f32 %v163_v9, 0.0 }
  0x21   :  { %194 = vst [vmem:[#allocation2 + $0x70] sm:$0xff] %v178_v1 }
  0x22   :  { %195 = vst [vmem:[#allocation2 + $0x78] sm:$0xff] %v179_v5 }
  0x23   :  { %230 = shalt.err (!%p227_p4)
}
  0x24   :  { %s231_s5 = scalar_lea.hbm %s479_s6, 2048 }
  0x25   :  { %p232_p5 = scmp.ne.s32.totalorder %s479_s6, %s231_s5  ;;  %p235_p6 = scmp.lt.u32.totalorder %s231_s5, %s479_s6 }
  0x27   :  { %p237_p7 = pnand %p235_p6, %p232_p5 }
  0x29   :  { %240 = shalt.err (!%p237_p7)
}
  0x2a   :  { %s244_s17 = smov 128   ;;  %s245_s18 = smov 8  }
  0x2b   :  { %207 = dma.vmem_to_hbm [thread:$0]  %s202_s1, 2048, %s479_s6, [#allocation3], %s244_s17, %s244_s17, %s245_s18  }
  0x2c   :  { %241 = dma.done.wait [#allocation3], 2048  }
  0x2d   :  { %242 = vsyncadd [#allocation3], 4294965248 }
  0x2e   :  { %211 = vsyncpa [#allocation3], 1 }

</bundles_post_ra>
